<compile_context>
chip_gen: v7x
topology: tpu7x:2x2x1
jax: 0.10.0
libtpu: 0.0.40
codegen_flags: <defaults>
</compile_context>

<pallas_src>
import functools

import jax
import jax.numpy as jnp
from jax.experimental import pallas as pl
from jax.experimental.pallas import tpu as pltpu

EPS = 1e-5
EXPANSION = 4
LANE = 128                      # channel dims are zero-padded to the lane width
TM = 1024                       # row tile (multiple of 8) for the (M, C) kernels


def _round_up(x, m):
    return (x + m - 1) // m * m


def _pad_to(a, shape):
    return jnp.pad(a, [(0, s - d) for d, s in zip(a.shape, shape)])


@functools.lru_cache(maxsize=None)
def _vmem_limit_bytes():
    """Generation-dependent scoped-VMEM cap (~3/4 of physical, capped at 96 MiB)."""
    try:
        cap = int(pltpu.get_tpu_info().vmem_capacity_bytes)
    except Exception:
        cap = 64 * 1024 * 1024
    return max(32 * 1024 * 1024, min(cap * 3 // 4, 96 * 1024 * 1024))


@functools.lru_cache(maxsize=None)
def _mxu_k_is_256():
    """True on chips with a 256-deep MXU (v6e / v7x); False on v5e and unknown."""
    try:
        kind = jax.devices()[0].device_kind.lower()
    except Exception:
        return False
    if "v5" in kind or "v4" in kind:
        return False
    return any(tag in kind for tag in ("v6", "v7", "trillium"))


def _compiler_params():
    return pltpu.CompilerParams(dimension_semantics=("parallel",),
                                vmem_limit_bytes=_vmem_limit_bytes())


# ----------------------------- Pallas kernels ------------------------------ #

def _mm1x1_kernel(x_ref, ss_ref, w_ref, y_ref, stats_ref, *,
                  apply_prologue, tm, m_total):
    """1x1 conv as a row-tiled matmul.

    Optionally fuses the previous stage's BN+ReLU as a prologue
    (x -> relu(x*scale + shift)) and emits per-tile partial per-channel
    (sum, sum_sq) of the fp32 matmul result so BN stats stay exact under
    M-tiling.
      x: (TM, K) bf16, ss: (2, K) f32 [scale, shift], w: (K, C) bf16
      y: (TM, C) bf16, stats: (1, 2, C) f32
    """
    x = x_ref[...]
    if apply_prologue:
        xf = x.astype(jnp.float32) * ss_ref[0:1, :] + ss_ref[1:2, :]
        x = jnp.maximum(xf, 0.0).astype(jnp.bfloat16)
    y = jnp.dot(x, w_ref[...], preferred_element_type=jnp.float32)

    # Mask rows past the logical end of the array (ragged last tile) so the
    # BN statistics only see real rows.
    row = jax.lax.broadcasted_iota(jnp.int32, (tm, 1), 0) + pl.program_id(0) * tm
    yv = jnp.where(row < m_total, y, 0.0)
    stats_ref[0] = jnp.concatenate(
        [jnp.sum(yv, axis=0, keepdims=True),
         jnp.sum(yv * yv, axis=0, keepdims=True)], axis=0)
    y_ref[...] = y.astype(y_ref.dtype)


def _conv3x3_kernel(x_ref, ss_ref, w_ref, b_ref, y_ref, *opt_refs,
                    apply_prologue, emit_stats, merged, height, width):
    """3x3 valid conv (stride 1) for one image, with no im2col in HBM.

    The NHWC image stays flattened as (H*W, Cin); the conv is nine row-shifted
    (Ho*W, Cin) x (Cin, Cout) matmuls accumulated in fp32 (merged into five
    K=2*Cin matmuls on 256-deep-MXU chips).  Row-wrap artifacts only land in
    output columns w >= Wo, which are masked out of the BN statistics and
    sliced away before the (compact) store.
      x: (1, H*W, Cin) bf16, ss: (2, Cin) f32,
      w: (9, Cin, Cout) or (5, 2*Cin, Cout) bf16, b: (1, Cout) f32,
      y: (1, Ho, Wo, Cout) bf16, stats (optional): (1, 2, Cout) f32
    """
    ho, wo = height - 2, width - 2
    nro = ho * width
    cin = x_ref.shape[2]
    cout = w_ref.shape[2]

    x = x_ref[0]
    if apply_prologue:                      # fused BN + ReLU of the previous stage
        xf = x.astype(jnp.float32) * ss_ref[0:1, :] + ss_ref[1:2, :]
        xb = jnp.maximum(xf, 0.0).astype(jnp.bfloat16)
    else:
        xb = x
    # Pad a few zero rows so every shifted slice below stays in range; padded
    # rows only ever contribute to discarded (w >= Wo) columns.  Slab stays bf16.
    xb = jnp.concatenate([xb, jnp.zeros((8, cin), jnp.bfloat16)], axis=0)

    offs = [kh * width + kw for kh in range(3) for kw in range(3)]
    acc = jnp.zeros((nro, cout), jnp.float32)
    if merged:
        # Pairs of taps merged along K to fill the 256-deep MXU (v6e / v7x).
        for p in range(4):
            a = xb[offs[2 * p]:offs[2 * p] + nro, :]
            b = xb[offs[2 * p + 1]:offs[2 * p + 1] + nro, :]
            acc = acc + jnp.dot(jnp.concatenate([a, b], axis=1), w_ref[p],
                                preferred_element_type=jnp.float32)
        a = xb[offs[8]:offs[8] + nro, :]
        # second half of w_ref[4] is zero, so duplicating the patch is harmless
        acc = acc + jnp.dot(jnp.concatenate([a, a], axis=1), w_ref[4],
                            preferred_element_type=jnp.float32)
    else:
        for t in range(9):
            acc = acc + jnp.dot(xb[offs[t]:offs[t] + nro, :], w_ref[t],
                                preferred_element_type=jnp.float32)
    acc = acc + b_ref[...]

    if emit_stats:
        # Per-channel partial (sum, sum_sq) over the *valid* output columns only.
        valid = jax.lax.broadcasted_iota(jnp.int32, (1, width, 1), 1) < wo
        av = jnp.where(valid, acc.reshape(ho, width, cout), 0.0).reshape(nro, cout)
        opt_refs[0][0] = jnp.concatenate(
            [jnp.sum(av, axis=0, keepdims=True),
             jnp.sum(av * av, axis=0, keepdims=True)], axis=0)

    # Compact store: drop the wrapped columns in-kernel so no XLA slice pass is
    # needed downstream (the (n, Ho, Wo, C) -> (M, C) reshape is a free bitcast).
    y_ref[0] = acc.reshape(ho, width, cout)[:, 0:wo, :].astype(y_ref.dtype)


def _bn_add_relu_kernel(y_ref, ss_ref, r_ref, o_ref):
    """Fused bn3-apply + residual add + ReLU (single tiled elementwise pass)."""
    y = y_ref[...].astype(jnp.float32) * ss_ref[0:1, :] + ss_ref[1:2, :]
    o_ref[...] = jnp.maximum(y + r_ref[...].astype(jnp.float32),
                             0.0).astype(o_ref.dtype)


# ----------------------------- pallas_call wrappers ------------------------ #

def _mm1x1(x2d, ss, w, *, apply_prologue):
    m, k = x2d.shape
    c = w.shape[1]
    tm = min(TM, _round_up(m, 8))
    grid_m = pl.cdiv(m, tm)
    kern = functools.partial(_mm1x1_kernel, apply_prologue=apply_prologue,
                             tm=tm, m_total=m)
    return pl.pallas_call(
        kern,
        grid=(grid_m,),
        in_specs=[pl.BlockSpec((tm, k), lambda i: (i, 0)),
                  pl.BlockSpec((2, k), lambda i: (0, 0)),
                  pl.BlockSpec((k, c), lambda i: (0, 0))],
        out_specs=[pl.BlockSpec((tm, c), lambda i: (i, 0)),
                   pl.BlockSpec((1, 2, c), lambda i: (i, 0, 0))],
        out_shape=[jax.ShapeDtypeStruct((m, c), jnp.bfloat16),
                   jax.ShapeDtypeStruct((grid_m, 2, c), jnp.float32)],
        compiler_params=_compiler_params(),
    )(x2d, ss, w)


def _conv3x3(x3d, ss, w_taps, bias, *, apply_prologue, emit_stats, merged,
             height, width):
    n, hw, cin = x3d.shape
    assert hw == height * width
    ntap, kdim, cout = w_taps.shape
    ho, wo = height - 2, width - 2
    kern = functools.partial(_conv3x3_kernel, apply_prologue=apply_prologue,
                             emit_stats=emit_stats, merged=merged,
                             height=height, width=width)
    out_specs = [pl.BlockSpec((1, ho, wo, cout), lambda i: (i, 0, 0, 0))]
    out_shape = [jax.ShapeDtypeStruct((n, ho, wo, cout), jnp.bfloat16)]
    if emit_stats:
        out_specs.append(pl.BlockSpec((1, 2, cout), lambda i: (i, 0, 0)))
        out_shape.append(jax.ShapeDtypeStruct((n, 2, cout), jnp.float32))
    res = pl.pallas_call(
        kern,
        grid=(n,),
        in_specs=[pl.BlockSpec((1, hw, cin), lambda i: (i, 0, 0)),
                  pl.BlockSpec((2, cin), lambda i: (0, 0)),
                  pl.BlockSpec((ntap, kdim, cout), lambda i: (0, 0, 0)),
                  pl.BlockSpec((1, cout), lambda i: (0, 0))],
        out_specs=out_specs,
        out_shape=out_shape,
        compiler_params=_compiler_params(),
    )(x3d, ss, w_taps, bias)
    if emit_stats:
        y, st = res
        return y, st
    y = res[0] if isinstance(res, (list, tuple)) else res
    return y, None


def _bn_add_relu(y3, ss, r):
    m, c = y3.shape
    tm = min(TM, _round_up(m, 8))
    grid_m = pl.cdiv(m, tm)
    return pl.pallas_call(
        _bn_add_relu_kernel,
        grid=(grid_m,),
        in_specs=[pl.BlockSpec((tm, c), lambda i: (i, 0)),
                  pl.BlockSpec((2, c), lambda i: (0, 0)),
                  pl.BlockSpec((tm, c), lambda i: (i, 0))],
        out_specs=pl.BlockSpec((tm, c), lambda i: (i, 0)),
        out_shape=jax.ShapeDtypeStruct((m, c), jnp.bfloat16),
        compiler_params=_compiler_params(),
    )(y3, ss, r)


# ----------------------------- small JAX glue ------------------------------ #

def _bn_scale_shift(partial_stats, count, gamma, beta):
    """Fold per-tile (sum, sum_sq) into affine (scale, shift): bn(x)=x*scale+shift."""
    s = jnp.sum(partial_stats.astype(jnp.float32), axis=0)           # (2, C)
    mean = s[0:1] / count
    var = jnp.maximum(s[1:2] / count - mean * mean, 0.0)             # biased var
    scale = gamma * jax.lax.rsqrt(var + EPS)
    shift = beta - mean * scale
    # NOTE: padded lanes have gamma=0 / beta=0, so they stay exactly zero.
    return jnp.concatenate([scale, shift], axis=0)                   # (2, C)


def _merge_taps(w9):
    """(9, Cin, Cout) -> (5, 2*Cin, Cout): pairs of taps stacked along K."""
    pairs = [jnp.concatenate([w9[2 * i], w9[2 * i + 1]], axis=0) for i in range(4)]
    last = jnp.concatenate([w9[8], jnp.zeros_like(w9[8])], axis=0)
    return jnp.stack(pairs + [last], axis=0)


def init_params(key, inplanes, planes):
    """Returns (lane-padded bf16/f32 kernel params, raw f32 params for reference)."""
    cout = planes * EXPANSION
    cin_p, pp, cout_p = (_round_up(c, LANE) for c in (inplanes, planes, cout))
    ks = jax.random.split(key, 5)
    f32, bf16 = jnp.float32, jnp.bfloat16

    raw = {
        # conv1: 1x1, inplanes -> planes, bias=False
        "w1": 0.1 * jax.random.normal(ks[0], (inplanes, planes), f32),
        "g1": jnp.ones((1, planes), f32), "b1": jnp.zeros((1, planes), f32),
        # conv2: 3x3, planes -> planes, padding=0, bias=True (HWIO)
        "w2": 0.1 * jax.random.normal(ks[1], (3, 3, planes, planes), f32),
        "bias2": 0.01 * jax.random.normal(ks[2], (1, planes), f32),
        "g2": jnp.ones((1, planes), f32), "b2": jnp.zeros((1, planes), f32),
        # conv3: 1x1, planes -> planes*4, bias=False
        "w3": 0.1 * jax.random.normal(ks[3], (planes, cout), f32),
        "g3": jnp.ones((1, cout), f32), "b3": jnp.zeros((1, cout), f32),
        # downsample: 3x3 valid conv inplanes -> planes*4 (makes residual match)
        "wd": 0.1 * jax.random.normal(ks[4], (3, 3, inplanes, cout), f32),
        "bd": jnp.zeros((1, cout), f32),
    }
    params = {
        "w1": _pad_to(raw["w1"], (cin_p, pp)).astype(bf16),
        "g1": _pad_to(raw["g1"], (1, pp)), "b1": _pad_to(raw["b1"], (1, pp)),
        "w2": _pad_to(raw["w2"], (3, 3, pp, pp)).reshape(9, pp, pp).astype(bf16),
        "bias2": _pad_to(raw["bias2"], (1, pp)),
        "g2": _pad_to(raw["g2"], (1, pp)), "b2": _pad_to(raw["b2"], (1, pp)),
        "w3": _pad_to(raw["w3"], (pp, cout_p)).astype(bf16),
        "g3": _pad_to(raw["g3"], (1, cout_p)), "b3": _pad_to(raw["b3"], (1, cout_p)),
        "wd": _pad_to(raw["wd"], (3, 3, cin_p, cout_p)).reshape(9, cin_p, cout_p).astype(bf16),
        "bd": _pad_to(raw["bd"], (1, cout_p)),
    }
    return params, raw


def bottleneck_forward(x_nchw, params, *, stride=1, out_channels):
    """NCHW in / NCHW out; all intermediates stay channels-last, lane-dense bf16."""
    x = jnp.transpose(x_nchw, (0, 2, 3, 1))                          # NHWC, once
    n, h, w, _ = x.shape
    cin_p, pp = params["w1"].shape
    cout_p = params["w3"].shape[1]
    ho = (h - 3) // stride + 1
    wo = (w - 3) // stride + 1
    m1, m2 = n * h * w, n * ho * wo

    xp = _pad_to(x, (n, h, w, cin_p)).astype(jnp.bfloat16)
    x2d = xp.reshape(m1, cin_p)
    no_ss = jnp.zeros((2, cin_p), jnp.float32)                       # unused prologue

    mxu256 = _mxu_k_is_256()
    merge2 = mxu256 and pp == LANE
    merge_d = mxu256 and cin_p == LANE
    w2_taps = _merge_taps(params["w2"]) if merge2 else params["w2"]
    wd_taps = _merge_taps(params["wd"]) if merge_d else params["wd"]

    # conv1 (1x1, no bias) + bn1 partial stats
    y1, st1 = _mm1x1(x2d, no_ss, params["w1"], apply_prologue=False)
    ss1 = _bn_scale_shift(st1, m1, params["g1"], params["b1"])

    # conv2 (3x3 valid, bias) with fused bn1+relu prologue + bn2 partial stats;
    # output is already compact (n, Ho1, Wo1, C) so the reshape below is free.
    y2c, st2 = _conv3x3(y1.reshape(n, h * w, pp), ss1, w2_taps, params["bias2"],
                        apply_prologue=True, emit_stats=True, merged=merge2,
                        height=h, width=w)
    if stride == 1:
        y2d = y2c.reshape(m2, pp)
        ss2 = _bn_scale_shift(st2, m2, params["g2"], params["b2"])
    else:
        # TODO(synk): stride>1 falls back to an XLA subsample of the compact
        # stride-1 conv output and recomputes bn2 stats from bf16 values; a
        # fused strided in-kernel path was not added.
        y2d = y2c[:, ::stride, ::stride, :].reshape(m2, pp)
        y2f = y2d.astype(jnp.float32)
        st2 = jnp.stack([jnp.sum(y2f, axis=0), jnp.sum(y2f * y2f, axis=0)])[None]
        ss2 = _bn_scale_shift(st2, m2, params["g2"], params["b2"])

    # conv3 (1x1, no bias) with fused bn2+relu prologue + bn3 partial stats
    y3, st3 = _mm1x1(y2d, ss2, params["w3"], apply_prologue=True)
    ss3 = _bn_scale_shift(st3, m2, params["g3"], params["b3"])

    # downsample residual: 3x3 valid conv on raw x (no prologue, no stats)
    r, _ = _conv3x3(x2d.reshape(n, h * w, cin_p), no_ss, wd_taps, params["bd"],
                    apply_prologue=False, emit_stats=False, merged=merge_d,
                    height=h, width=w)
    if stride != 1:
        r = r[:, ::stride, ::stride, :]
    r2d = r.reshape(m2, cout_p)

    # bn3-apply + residual add + relu, fused into one tiled pass (bf16 store)
    out = _bn_add_relu(y3, ss3, r2d)                                 # (M2, Cout_p) bf16
    out = out.reshape(n, ho, wo, cout_p)[..., :out_channels]
    return jnp.transpose(out, (0, 3, 1, 2)).astype(jnp.float32)      # back to NCHW


def _ref_forward(x_nchw, raw, stride):
    """Pure-JAX fp32 reference with the same semantics (validation only)."""
    x = jnp.transpose(x_nchw, (0, 2, 3, 1)).astype(jnp.float32)

    def conv(v, w, b=None, s=1):
        y = jax.lax.conv_general_dilated(
            v, w, (s, s), "VALID", dimension_numbers=("NHWC", "HWIO", "NHWC"))
        return y if b is None else y + b.reshape(1, 1, 1, -1)

    def bn(v, g, b):
        mean = jnp.mean(v, axis=(0, 1, 2), keepdims=True)
        var = jnp.mean((v - mean) ** 2, axis=(0, 1, 2), keepdims=True)
        return (g.reshape(1, 1, 1, -1) * (v - mean) * jax.lax.rsqrt(var + EPS)
                + b.reshape(1, 1, 1, -1))

    out = jax.nn.relu(bn(conv(x, raw["w1"][None, None]), raw["g1"], raw["b1"]))
    out = jax.nn.relu(bn(conv(out, raw["w2"], raw["bias2"], stride),
                         raw["g2"], raw["b2"]))
    out = bn(conv(out, raw["w3"][None, None]), raw["g3"], raw["b3"])
    out = jax.nn.relu(out + conv(x, raw["wd"], raw["bd"], stride))
    return jnp.transpose(out, (0, 3, 1, 2))


if __name__ == "__main__":
    key = jax.random.PRNGKey(0)
    k_x, k_p = jax.random.split(key)

    inplanes, planes, stride = 4, 4, 1
    x = jax.random.normal(k_x, (2, inplanes, 16, 16), jnp.float32)   # NCHW input
    params, raw = init_params(k_p, inplanes, planes)

    fwd = jax.jit(functools.partial(bottleneck_forward, stride=stride,
                                    out_channels=planes * EXPANSION))
    y = fwd(x, params)
    jax.block_until_ready(y)

    expected = (2, planes * EXPANSION, 14, 14)   # un-padded 3x3 conv shrinks H,W by 2
    assert y.shape == expected, (y.shape, expected)
    assert bool(jnp.all(jnp.isfinite(y))), "non-finite output"

    # Validate against a pure-JAX fp32 reference (bf16 storage -> loose tolerance).
    y_gold = _ref_forward(x, raw, stride)
    max_err = float(jnp.max(jnp.abs(y - y_gold)))
    mean_err = float(jnp.mean(jnp.abs(y - y_gold)))
    assert max_err < 0.35 and mean_err < 0.05, (max_err, mean_err)

    print("KERNEL_OK")
</pallas_src>

<mosaic_0001>
module attributes {stable_mosaic.version = 11 : i64} {
  func.func @_conv3x3_kernel(%arg0: i32, %arg1: memref<1x256x128xbf16, #tpu.memory_space<vmem>>, %arg2: memref<2x128xf32, #tpu.memory_space<vmem>>, %arg3: memref<9x128x128xbf16, #tpu.memory_space<vmem>>, %arg4: memref<1x128xf32, #tpu.memory_space<vmem>>, %arg5: memref<1x14x14x128xbf16, #tpu.memory_space<vmem>>, %arg6: memref<1x2x128xf32, #tpu.memory_space<vmem>>) attributes {dimension_semantics = [#tpu.dimension_semantics<parallel>], iteration_bounds = array<i64: 2>, scalar_prefetch = 0 : i64, scratch_operands = 0 : i64, tpu.core_type = #tpu.core_type<tc>, window_params = [{transform_indices = @transform_0, window_bounds = array<i64: 1, 256, 128>}, {pipeline_mode = #tpu.pipeline_mode<synchronous>, transform_indices = @transform_1, window_bounds = array<i64: 2, 128>}, {pipeline_mode = #tpu.pipeline_mode<synchronous>, transform_indices = @transform_2, window_bounds = array<i64: 9, 128, 128>}, {pipeline_mode = #tpu.pipeline_mode<synchronous>, transform_indices = @transform_3, window_bounds = array<i64: 1, 128>}, {transform_indices = @transform_4, window_bounds = array<i64: 1, 14, 14, 128>}, {transform_indices = @transform_5, window_bounds = array<i64: 1, 2, 128>}]} {
    %c0 = arith.constant 0 : index
    %c0_0 = arith.constant 0 : index
    %c0_1 = arith.constant 0 : index
    %0 = vector.load %arg1[%c0, %c0_0, %c0_1] : memref<1x256x128xbf16, #tpu.memory_space<vmem>>, vector<1x256x128xbf16>
    %1 = vector.shape_cast %0 : vector<1x256x128xbf16> to vector<256x128xbf16>
    %2 = arith.extf %1 : vector<256x128xbf16> to vector<256x128xf32>
    %c0_2 = arith.constant 0 : index
    %c0_3 = arith.constant 0 : index
    %3 = vector.load %arg2[%c0_2, %c0_3] : memref<2x128xf32, #tpu.memory_space<vmem>>, vector<1x128xf32>
    %4 = vector.broadcast %3 : vector<1x128xf32> to vector<256x128xf32>
    %5 = arith.mulf %2, %4 : vector<256x128xf32>
    %c1 = arith.constant 1 : index
    %c0_4 = arith.constant 0 : index
    %6 = vector.load %arg2[%c1, %c0_4] : memref<2x128xf32, #tpu.memory_space<vmem>>, vector<1x128xf32>
    %7 = vector.broadcast %6 : vector<1x128xf32> to vector<256x128xf32>
    %8 = arith.addf %5, %7 : vector<256x128xf32>
    %cst = arith.constant 0.000000e+00 : f32
    %9 = vector.broadcast %cst : f32 to vector<256x128xf32>
    %10 = arith.maximumf %8, %9 : vector<256x128xf32>
    %11 = arith.truncf %10 : vector<256x128xf32> to vector<256x128xbf16>
    %cst_5 = arith.constant 0.000000e+00 : bf16
    %12 = vector.broadcast %cst_5 : bf16 to vector<8x128xbf16>
    %13 = tpu.concatenate %11, %12 in 0 : vector<256x128xbf16>, vector<8x128xbf16> -> vector<264x128xbf16>
    %cst_6 = arith.constant 0.000000e+00 : f32
    %14 = vector.broadcast %cst_6 : f32 to vector<224x128xf32>
    %15 = vector.extract_strided_slice %13 {offsets = [0, 0], sizes = [224, 128], strides = [1, 1]} : vector<264x128xbf16> to vector<224x128xbf16>
    %c0_7 = arith.constant 0 : index
    %c0_8 = arith.constant 0 : index
    %c0_9 = arith.constant 0 : index
    %16 = vector.load %arg3[%c0_7, %c0_8, %c0_9] : memref<9x128x128xbf16, #tpu.memory_space<vmem>>, vector<1x128x128xbf16>
    %17 = vector.shape_cast %16 : vector<1x128x128xbf16> to vector<128x128xbf16>
    %cst_10 = arith.constant dense<0.000000e+00> : vector<224x128xf32>
    %18 = tpu.matmul %15, %17, %cst_10 {dimension_numbers = #tpu.dot_dimension_numbers<[1], [0], [0], [1], [0, 0, 1, 1], [], []>} : vector<224x128xbf16>, vector<128x128xbf16>, vector<224x128xf32> -> vector<224x128xf32>
    %19 = arith.addf %14, %18 : vector<224x128xf32>
    %20 = vector.extract_strided_slice %13 {offsets = [1, 0], sizes = [224, 128], strides = [1, 1]} : vector<264x128xbf16> to vector<224x128xbf16>
    %c1_11 = arith.constant 1 : index
    %c0_12 = arith.constant 0 : index
    %c0_13 = arith.constant 0 : index
    %21 = vector.load %arg3[%c1_11, %c0_12, %c0_13] : memref<9x128x128xbf16, #tpu.memory_space<vmem>>, vector<1x128x128xbf16>
    %22 = vector.shape_cast %21 : vector<1x128x128xbf16> to vector<128x128xbf16>
    %cst_14 = arith.constant dense<0.000000e+00> : vector<224x128xf32>
    %23 = tpu.matmul %20, %22, %cst_14 {dimension_numbers = #tpu.dot_dimension_numbers<[1], [0], [0], [1], [0, 0, 1, 1], [], []>} : vector<224x128xbf16>, vector<128x128xbf16>, vector<224x128xf32> -> vector<224x128xf32>
    %24 = arith.addf %19, %23 : vector<224x128xf32>
    %25 = vector.extract_strided_slice %13 {offsets = [2, 0], sizes = [224, 128], strides = [1, 1]} : vector<264x128xbf16> to vector<224x128xbf16>
    %c2 = arith.constant 2 : index
    %c0_15 = arith.constant 0 : index
    %c0_16 = arith.constant 0 : index
    %26 = vector.load %arg3[%c2, %c0_15, %c0_16] : memref<9x128x128xbf16, #tpu.memory_space<vmem>>, vector<1x128x128xbf16>
    %27 = vector.shape_cast %26 : vector<1x128x128xbf16> to vector<128x128xbf16>
    %cst_17 = arith.constant dense<0.000000e+00> : vector<224x128xf32>
    %28 = tpu.matmul %25, %27, %cst_17 {dimension_numbers = #tpu.dot_dimension_numbers<[1], [0], [0], [1], [0, 0, 1, 1], [], []>} : vector<224x128xbf16>, vector<128x128xbf16>, vector<224x128xf32> -> vector<224x128xf32>
    %29 = arith.addf %24, %28 : vector<224x128xf32>
    %30 = vector.extract_strided_slice %13 {offsets = [16, 0], sizes = [224, 128], strides = [1, 1]} : vector<264x128xbf16> to vector<224x128xbf16>
    %c3 = arith.constant 3 : index
    %c0_18 = arith.constant 0 : index
    %c0_19 = arith.constant 0 : index
    %31 = vector.load %arg3[%c3, %c0_18, %c0_19] : memref<9x128x128xbf16, #tpu.memory_space<vmem>>, vector<1x128x128xbf16>
    %32 = vector.shape_cast %31 : vector<1x128x128xbf16> to vector<128x128xbf16>
    %cst_20 = arith.constant dense<0.000000e+00> : vector<224x128xf32>
    %33 = tpu.matmul %30, %32, %cst_20 {dimension_numbers = #tpu.dot_dimension_numbers<[1], [0], [0], [1], [0, 0, 1, 1], [], []>} : vector<224x128xbf16>, vector<128x128xbf16>, vector<224x128xf32> -> vector<224x128xf32>
    %34 = arith.addf %29, %33 : vector<224x128xf32>
    %35 = vector.extract_strided_slice %13 {offsets = [17, 0], sizes = [224, 128], strides = [1, 1]} : vector<264x128xbf16> to vector<224x128xbf16>
    %c4 = arith.constant 4 : index
    %c0_21 = arith.constant 0 : index
    %c0_22 = arith.constant 0 : index
    %36 = vector.load %arg3[%c4, %c0_21, %c0_22] : memref<9x128x128xbf16, #tpu.memory_space<vmem>>, vector<1x128x128xbf16>
    %37 = vector.shape_cast %36 : vector<1x128x128xbf16> to vector<128x128xbf16>
    %cst_23 = arith.constant dense<0.000000e+00> : vector<224x128xf32>
    %38 = tpu.matmul %35, %37, %cst_23 {dimension_numbers = #tpu.dot_dimension_numbers<[1], [0], [0], [1], [0, 0, 1, 1], [], []>} : vector<224x128xbf16>, vector<128x128xbf16>, vector<224x128xf32> -> vector<224x128xf32>
    %39 = arith.addf %34, %38 : vector<224x128xf32>
    %40 = vector.extract_strided_slice %13 {offsets = [18, 0], sizes = [224, 128], strides = [1, 1]} : vector<264x128xbf16> to vector<224x128xbf16>
    %c5 = arith.constant 5 : index
    %c0_24 = arith.constant 0 : index
    %c0_25 = arith.constant 0 : index
    %41 = vector.load %arg3[%c5, %c0_24, %c0_25] : memref<9x128x128xbf16, #tpu.memory_space<vmem>>, vector<1x128x128xbf16>
    %42 = vector.shape_cast %41 : vector<1x128x128xbf16> to vector<128x128xbf16>
    %cst_26 = arith.constant dense<0.000000e+00> : vector<224x128xf32>
    %43 = tpu.matmul %40, %42, %cst_26 {dimension_numbers = #tpu.dot_dimension_numbers<[1], [0], [0], [1], [0, 0, 1, 1], [], []>} : vector<224x128xbf16>, vector<128x128xbf16>, vector<224x128xf32> -> vector<224x128xf32>
    %44 = arith.addf %39, %43 : vector<224x128xf32>
    %45 = vector.extract_strided_slice %13 {offsets = [32, 0], sizes = [224, 128], strides = [1, 1]} : vector<264x128xbf16> to vector<224x128xbf16>
    %c6 = arith.constant 6 : index
    %c0_27 = arith.constant 0 : index
    %c0_28 = arith.constant 0 : index
    %46 = vector.load %arg3[%c6, %c0_27, %c0_28] : memref<9x128x128xbf16, #tpu.memory_space<vmem>>, vector<1x128x128xbf16>
    %47 = vector.shape_cast %46 : vector<1x128x128xbf16> to vector<128x128xbf16>
    %cst_29 = arith.constant dense<0.000000e+00> : vector<224x128xf32>
    %48 = tpu.matmul %45, %47, %cst_29 {dimension_numbers = #tpu.dot_dimension_numbers<[1], [0], [0], [1], [0, 0, 1, 1], [], []>} : vector<224x128xbf16>, vector<128x128xbf16>, vector<224x128xf32> -> vector<224x128xf32>
    %49 = arith.addf %44, %48 : vector<224x128xf32>
    %50 = vector.extract_strided_slice %13 {offsets = [33, 0], sizes = [224, 128], strides = [1, 1]} : vector<264x128xbf16> to vector<224x128xbf16>
    %c7 = arith.constant 7 : index
    %c0_30 = arith.constant 0 : index
    %c0_31 = arith.constant 0 : index
    %51 = vector.load %arg3[%c7, %c0_30, %c0_31] : memref<9x128x128xbf16, #tpu.memory_space<vmem>>, vector<1x128x128xbf16>
    %52 = vector.shape_cast %51 : vector<1x128x128xbf16> to vector<128x128xbf16>
    %cst_32 = arith.constant dense<0.000000e+00> : vector<224x128xf32>
    %53 = tpu.matmul %50, %52, %cst_32 {dimension_numbers = #tpu.dot_dimension_numbers<[1], [0], [0], [1], [0, 0, 1, 1], [], []>} : vector<224x128xbf16>, vector<128x128xbf16>, vector<224x128xf32> -> vector<224x128xf32>
    %54 = arith.addf %49, %53 : vector<224x128xf32>
    %55 = vector.extract_strided_slice %13 {offsets = [34, 0], sizes = [224, 128], strides = [1, 1]} : vector<264x128xbf16> to vector<224x128xbf16>
    %c8 = arith.constant 8 : index
    %c0_33 = arith.constant 0 : index
    %c0_34 = arith.constant 0 : index
    %56 = vector.load %arg3[%c8, %c0_33, %c0_34] : memref<9x128x128xbf16, #tpu.memory_space<vmem>>, vector<1x128x128xbf16>
    %57 = vector.shape_cast %56 : vector<1x128x128xbf16> to vector<128x128xbf16>
    %cst_35 = arith.constant dense<0.000000e+00> : vector<224x128xf32>
    %58 = tpu.matmul %55, %57, %cst_35 {dimension_numbers = #tpu.dot_dimension_numbers<[1], [0], [0], [1], [0, 0, 1, 1], [], []>} : vector<224x128xbf16>, vector<128x128xbf16>, vector<224x128xf32> -> vector<224x128xf32>
    %59 = arith.addf %54, %58 : vector<224x128xf32>
    %c0_36 = arith.constant 0 : index
    %c0_37 = arith.constant 0 : index
    %60 = vector.load %arg4[%c0_36, %c0_37] : memref<1x128xf32, #tpu.memory_space<vmem>>, vector<1x128xf32>
    %61 = vector.broadcast %60 : vector<1x128xf32> to vector<224x128xf32>
    %62 = arith.addf %59, %61 : vector<224x128xf32>
    %63 = tpu.iota {dimensions = array<i32: 1>} : vector<1x16x1xi32>
    %c14_i32 = arith.constant 14 : i32
    %64 = vector.broadcast %c14_i32 : i32 to vector<1x16x1xi32>
    %65 = arith.cmpi slt, %63, %64 : vector<1x16x1xi32>
    %66 = vector.shape_cast %62 : vector<224x128xf32> to vector<14x16x128xf32>
    %cst_38 = arith.constant 0.000000e+00 : f32
    %67 = vector.shape_cast %65 : vector<1x16x1xi1> to vector<1x16x1xi1>
    %68 = vector.broadcast %67 : vector<1x16x1xi1> to vector<14x16x128xi1>
    %69 = vector.broadcast %cst_38 : f32 to vector<14x16x128xf32>
    %70 = arith.select %68, %66, %69 : vector<14x16x128xi1>, vector<14x16x128xf32>
    %71 = vector.shape_cast %70 : vector<14x16x128xf32> to vector<224x128xf32>
    %cst_39 = arith.constant dense<0.000000e+00> : vector<128xf32>
    %72 = vector.multi_reduction <add>, %71, %cst_39 [0] : vector<224x128xf32> to vector<128xf32>
    %73 = vector.shape_cast %72 : vector<128xf32> to vector<1x128xf32>
    %74 = arith.mulf %71, %71 : vector<224x128xf32>
    %cst_40 = arith.constant dense<0.000000e+00> : vector<128xf32>
    %75 = vector.multi_reduction <add>, %74, %cst_40 [0] : vector<224x128xf32> to vector<128xf32>
    %76 = vector.shape_cast %75 : vector<128xf32> to vector<1x128xf32>
    %77 = tpu.concatenate %73, %76 in 0 : vector<1x128xf32>, vector<1x128xf32> -> vector<2x128xf32>
    %c0_41 = arith.constant 0 : index
    %c0_42 = arith.constant 0 : index
    %c0_43 = arith.constant 0 : index
    %78 = vector.load %arg6[%c0_41, %c0_42, %c0_43] : memref<1x2x128xf32, #tpu.memory_space<vmem>>, vector<1x2x128xf32>
    %79 = vector.shape_cast %78 : vector<1x2x128xf32> to vector<2x128xf32>
    %80 = vector.shape_cast %77 : vector<2x128xf32> to vector<1x2x128xf32>
    tpu.vector_store %arg6[%c0_41, %c0_42, %c0_43], %80 {strides = array<i32>} : memref<1x2x128xf32, #tpu.memory_space<vmem>>, vector<1x2x128xf32>,
    %81 = vector.shape_cast %62 : vector<224x128xf32> to vector<14x16x128xf32>
    %82 = vector.extract_strided_slice %81 {offsets = [0, 0, 0], sizes = [14, 14, 128], strides = [1, 1, 1]} : vector<14x16x128xf32> to vector<14x14x128xf32>
    %83 = arith.truncf %82 : vector<14x14x128xf32> to vector<14x14x128xbf16>
    %c0_44 = arith.constant 0 : index
    %c0_45 = arith.constant 0 : index
    %c0_46 = arith.constant 0 : index
    %c0_47 = arith.constant 0 : index
    %84 = vector.load %arg5[%c0_44, %c0_45, %c0_46, %c0_47] : memref<1x14x14x128xbf16, #tpu.memory_space<vmem>>, vector<1x14x14x128xbf16>
    %85 = vector.shape_cast %84 : vector<1x14x14x128xbf16> to vector<14x14x128xbf16>
    %86 = vector.shape_cast %83 : vector<14x14x128xbf16> to vector<1x14x14x128xbf16>
    tpu.vector_store %arg5[%c0_44, %c0_45, %c0_46, %c0_47], %86 {strides = array<i32>} : memref<1x14x14x128xbf16, #tpu.memory_space<vmem>>, vector<1x14x14x128xbf16>,
    return
  }
  func.func @transform_0(%arg0: i32) -> (i32, i32, i32) {
    %c0_i32 = arith.constant 0 : i32
    %c0_i32_0 = arith.constant 0 : i32
    %c0_i32_1 = arith.constant 0 : i32
    return %arg0, %c0_i32, %c0_i32_0 : i32, i32, i32
  }
  func.func @transform_1(%arg0: i32) -> (i32, i32) {
    %c0_i32 = arith.constant 0 : i32
    %c0_i32_0 = arith.constant 0 : i32
    %c0_i32_1 = arith.constant 0 : i32
    return %c0_i32, %c0_i32_0 : i32, i32
  }
  func.func @transform_2(%arg0: i32) -> (i32, i32, i32) {
    %c0_i32 = arith.constant 0 : i32
    %c0_i32_0 = arith.constant 0 : i32
    %c0_i32_1 = arith.constant 0 : i32
    %c0_i32_2 = arith.constant 0 : i32
    return %c0_i32, %c0_i32_0, %c0_i32_1 : i32, i32, i32
  }
  func.func @transform_3(%arg0: i32) -> (i32, i32) {
    %c0_i32 = arith.constant 0 : i32
    %c0_i32_0 = arith.constant 0 : i32
    %c0_i32_1 = arith.constant 0 : i32
    return %c0_i32, %c0_i32_0 : i32, i32
  }
  func.func @transform_4(%arg0: i32) -> (i32, i32, i32, i32) {
    %c0_i32 = arith.constant 0 : i32
    %c0_i32_0 = arith.constant 0 : i32
    %c0_i32_1 = arith.constant 0 : i32
    %c0_i32_2 = arith.constant 0 : i32
    return %arg0, %c0_i32, %c0_i32_0, %c0_i32_1 : i32, i32, i32, i32
  }
  func.func @transform_5(%arg0: i32) -> (i32, i32, i32) {
    %c0_i32 = arith.constant 0 : i32
    %c0_i32_0 = arith.constant 0 : i32
    %c0_i32_1 = arith.constant 0 : i32
    return %arg0, %c0_i32, %c0_i32_0 : i32, i32, i32
  }
}

module attributes {stable_mosaic.version = 11 : i64} {
  func.func @_mm1x1_kernel(%arg0: i32, %arg1: memref<512x128xbf16, #tpu.memory_space<vmem>>, %arg2: memref<2x128xf32, #tpu.memory_space<vmem>>, %arg3: memref<128x128xbf16, #tpu.memory_space<vmem>>, %arg4: memref<512x128xbf16, #tpu.memory_space<vmem>>, %arg5: memref<1x2x128xf32, #tpu.memory_space<vmem>>) attributes {dimension_semantics = [#tpu.dimension_semantics<parallel>], iteration_bounds = array<i64: 1>, scalar_prefetch = 0 : i64, scratch_operands = 0 : i64, tpu.core_type = #tpu.core_type<tc>, window_params = [{transform_indices = @transform_0, window_bounds = array<i64: 512, 128>}, {pipeline_mode = #tpu.pipeline_mode<synchronous>, transform_indices = @transform_1, window_bounds = array<i64: 2, 128>}, {pipeline_mode = #tpu.pipeline_mode<synchronous>, transform_indices = @transform_2, window_bounds = array<i64: 128, 128>}, {transform_indices = @transform_3, window_bounds = array<i64: 512, 128>}, {transform_indices = @transform_4, window_bounds = array<i64: 1, 2, 128>}]} {
    %c0 = arith.constant 0 : index
    %c0_0 = arith.constant 0 : index
    %0 = vector.load %arg1[%c0, %c0_0] : memref<512x128xbf16, #tpu.memory_space<vmem>>, vector<512x128xbf16>
    %c0_1 = arith.constant 0 : index
    %c0_2 = arith.constant 0 : index
    %1 = vector.load %arg3[%c0_1, %c0_2] : memref<128x128xbf16, #tpu.memory_space<vmem>>, vector<128x128xbf16>
    %cst = arith.constant dense<0.000000e+00> : vector<512x128xf32>
    %2 = tpu.matmul %0, %1, %cst {dimension_numbers = #tpu.dot_dimension_numbers<[1], [0], [0], [1], [0, 0, 1, 1], [], []>} : vector<512x128xbf16>, vector<128x128xbf16>, vector<512x128xf32> -> vector<512x128xf32>
    %3 = tpu.iota {dimensions = array<i32: 0>} : vector<512x1xi32>
    %c512_i32 = arith.constant 512 : i32
    %4 = arith.muli %arg0, %c512_i32 : i32
    %5 = vector.broadcast %4 : i32 to vector<512x1xi32>
    %6 = arith.addi %3, %5 : vector<512x1xi32>
    %c512_i32_3 = arith.constant 512 : i32
    %7 = vector.broadcast %c512_i32_3 : i32 to vector<512x1xi32>
    %8 = arith.cmpi slt, %6, %7 : vector<512x1xi32>
    %cst_4 = arith.constant 0.000000e+00 : f32
    %9 = vector.shape_cast %8 : vector<512x1xi1> to vector<512x1xi1>
    %10 = vector.broadcast %9 : vector<512x1xi1> to vector<512x128xi1>
    %11 = vector.broadcast %cst_4 : f32 to vector<512x128xf32>
    %12 = arith.select %10, %2, %11 : vector<512x128xi1>, vector<512x128xf32>
    %cst_5 = arith.constant dense<0.000000e+00> : vector<128xf32>
    %13 = vector.multi_reduction <add>, %12, %cst_5 [0] : vector<512x128xf32> to vector<128xf32>
    %14 = vector.shape_cast %13 : vector<128xf32> to vector<1x128xf32>
    %15 = arith.mulf %12, %12 : vector<512x128xf32>
    %cst_6 = arith.constant dense<0.000000e+00> : vector<128xf32>
    %16 = vector.multi_reduction <add>, %15, %cst_6 [0] : vector<512x128xf32> to vector<128xf32>
    %17 = vector.shape_cast %16 : vector<128xf32> to vector<1x128xf32>
    %18 = tpu.concatenate %14, %17 in 0 : vector<1x128xf32>, vector<1x128xf32> -> vector<2x128xf32>
    %c0_7 = arith.constant 0 : index
    %c0_8 = arith.constant 0 : index
    %c0_9 = arith.constant 0 : index
    %19 = vector.load %arg5[%c0_7, %c0_8, %c0_9] : memref<1x2x128xf32, #tpu.memory_space<vmem>>, vector<1x2x128xf32>
    %20 = vector.shape_cast %19 : vector<1x2x128xf32> to vector<2x128xf32>
    %21 = vector.shape_cast %18 : vector<2x128xf32> to vector<1x2x128xf32>
    tpu.vector_store %arg5[%c0_7, %c0_8, %c0_9], %21 {strides = array<i32>} : memref<1x2x128xf32, #tpu.memory_space<vmem>>, vector<1x2x128xf32>,
    %22 = arith.truncf %2 : vector<512x128xf32> to vector<512x128xbf16>
    %c0_10 = arith.constant 0 : index
    %c0_11 = arith.constant 0 : index
    %23 = vector.load %arg4[%c0_10, %c0_11] : memref<512x128xbf16, #tpu.memory_space<vmem>>, vector<512x128xbf16>
    tpu.vector_store %arg4[%c0_10, %c0_11], %22 {strides = array<i32>} : memref<512x128xbf16, #tpu.memory_space<vmem>>, vector<512x128xbf16>,
    return
  }
  func.func @transform_0(%arg0: i32) -> (i32, i32) {
    %c0_i32 = arith.constant 0 : i32
    %c0_i32_0 = arith.constant 0 : i32
    return %arg0, %c0_i32 : i32, i32
  }
  func.func @transform_1(%arg0: i32) -> (i32, i32) {
    %c0_i32 = arith.constant 0 : i32
    %c0_i32_0 = arith.constant 0 : i32
    %c0_i32_1 = arith.constant 0 : i32
    return %c0_i32, %c0_i32_0 : i32, i32
  }
  func.func @transform_2(%arg0: i32) -> (i32, i32) {
    %c0_i32 = arith.constant 0 : i32
    %c0_i32_0 = arith.constant 0 : i32
    %c0_i32_1 = arith.constant 0 : i32
    return %c0_i32, %c0_i32_0 : i32, i32
  }
  func.func @transform_3(%arg0: i32) -> (i32, i32) {
    %c0_i32 = arith.constant 0 : i32
    %c0_i32_0 = arith.constant 0 : i32
    return %arg0, %c0_i32 : i32, i32
  }
  func.func @transform_4(%arg0: i32) -> (i32, i32, i32) {
    %c0_i32 = arith.constant 0 : i32
    %c0_i32_0 = arith.constant 0 : i32
    %c0_i32_1 = arith.constant 0 : i32
    return %arg0, %c0_i32, %c0_i32_0 : i32, i32, i32
  }
}

module attributes {stable_mosaic.version = 11 : i64} {
  func.func @_conv3x3_kernel(%arg0: i32, %arg1: memref<1x256x128xbf16, #tpu.memory_space<vmem>>, %arg2: memref<2x128xf32, #tpu.memory_space<vmem>>, %arg3: memref<9x128x128xbf16, #tpu.memory_space<vmem>>, %arg4: memref<1x128xf32, #tpu.memory_space<vmem>>, %arg5: memref<1x14x14x128xbf16, #tpu.memory_space<vmem>>) attributes {dimension_semantics = [#tpu.dimension_semantics<parallel>], iteration_bounds = array<i64: 2>, scalar_prefetch = 0 : i64, scratch_operands = 0 : i64, tpu.core_type = #tpu.core_type<tc>, window_params = [{transform_indices = @transform_0, window_bounds = array<i64: 1, 256, 128>}, {pipeline_mode = #tpu.pipeline_mode<synchronous>, transform_indices = @transform_1, window_bounds = array<i64: 2, 128>}, {pipeline_mode = #tpu.pipeline_mode<synchronous>, transform_indices = @transform_2, window_bounds = array<i64: 9, 128, 128>}, {pipeline_mode = #tpu.pipeline_mode<synchronous>, transform_indices = @transform_3, window_bounds = array<i64: 1, 128>}, {transform_indices = @transform_4, window_bounds = array<i64: 1, 14, 14, 128>}]} {
    %c0 = arith.constant 0 : index
    %c0_0 = arith.constant 0 : index
    %c0_1 = arith.constant 0 : index
    %0 = vector.load %arg1[%c0, %c0_0, %c0_1] : memref<1x256x128xbf16, #tpu.memory_space<vmem>>, vector<1x256x128xbf16>
    %1 = vector.shape_cast %0 : vector<1x256x128xbf16> to vector<256x128xbf16>
    %cst = arith.constant 0.000000e+00 : bf16
    %2 = vector.broadcast %cst : bf16 to vector<8x128xbf16>
    %3 = tpu.concatenate %1, %2 in 0 : vector<256x128xbf16>, vector<8x128xbf16> -> vector<264x128xbf16>
    %cst_2 = arith.constant 0.000000e+00 : f32
    %4 = vector.broadcast %cst_2 : f32 to vector<224x128xf32>
    %5 = vector.extract_strided_slice %3 {offsets = [0, 0], sizes = [224, 128], strides = [1, 1]} : vector<264x128xbf16> to vector<224x128xbf16>
    %c0_3 = arith.constant 0 : index
    %c0_4 = arith.constant 0 : index
    %c0_5 = arith.constant 0 : index
    %6 = vector.load %arg3[%c0_3, %c0_4, %c0_5] : memref<9x128x128xbf16, #tpu.memory_space<vmem>>, vector<1x128x128xbf16>
    %7 = vector.shape_cast %6 : vector<1x128x128xbf16> to vector<128x128xbf16>
    %cst_6 = arith.constant dense<0.000000e+00> : vector<224x128xf32>
    %8 = tpu.matmul %5, %7, %cst_6 {dimension_numbers = #tpu.dot_dimension_numbers<[1], [0], [0], [1], [0, 0, 1, 1], [], []>} : vector<224x128xbf16>, vector<128x128xbf16>, vector<224x128xf32> -> vector<224x128xf32>
    %9 = arith.addf %4, %8 : vector<224x128xf32>
    %10 = vector.extract_strided_slice %3 {offsets = [1, 0], sizes = [224, 128], strides = [1, 1]} : vector<264x128xbf16> to vector<224x128xbf16>
    %c1 = arith.constant 1 : index
    %c0_7 = arith.constant 0 : index
    %c0_8 = arith.constant 0 : index
    %11 = vector.load %arg3[%c1, %c0_7, %c0_8] : memref<9x128x128xbf16, #tpu.memory_space<vmem>>, vector<1x128x128xbf16>
    %12 = vector.shape_cast %11 : vector<1x128x128xbf16> to vector<128x128xbf16>
    %cst_9 = arith.constant dense<0.000000e+00> : vector<224x128xf32>
    %13 = tpu.matmul %10, %12, %cst_9 {dimension_numbers = #tpu.dot_dimension_numbers<[1], [0], [0], [1], [0, 0, 1, 1], [], []>} : vector<224x128xbf16>, vector<128x128xbf16>, vector<224x128xf32> -> vector<224x128xf32>
    %14 = arith.addf %9, %13 : vector<224x128xf32>
    %15 = vector.extract_strided_slice %3 {offsets = [2, 0], sizes = [224, 128], strides = [1, 1]} : vector<264x128xbf16> to vector<224x128xbf16>
    %c2 = arith.constant 2 : index
    %c0_10 = arith.constant 0 : index
    %c0_11 = arith.constant 0 : index
    %16 = vector.load %arg3[%c2, %c0_10, %c0_11] : memref<9x128x128xbf16, #tpu.memory_space<vmem>>, vector<1x128x128xbf16>
    %17 = vector.shape_cast %16 : vector<1x128x128xbf16> to vector<128x128xbf16>
    %cst_12 = arith.constant dense<0.000000e+00> : vector<224x128xf32>
    %18 = tpu.matmul %15, %17, %cst_12 {dimension_numbers = #tpu.dot_dimension_numbers<[1], [0], [0], [1], [0, 0, 1, 1], [], []>} : vector<224x128xbf16>, vector<128x128xbf16>, vector<224x128xf32> -> vector<224x128xf32>
    %19 = arith.addf %14, %18 : vector<224x128xf32>
    %20 = vector.extract_strided_slice %3 {offsets = [16, 0], sizes = [224, 128], strides = [1, 1]} : vector<264x128xbf16> to vector<224x128xbf16>
    %c3 = arith.constant 3 : index
    %c0_13 = arith.constant 0 : index
    %c0_14 = arith.constant 0 : index
    %21 = vector.load %arg3[%c3, %c0_13, %c0_14] : memref<9x128x128xbf16, #tpu.memory_space<vmem>>, vector<1x128x128xbf16>
    %22 = vector.shape_cast %21 : vector<1x128x128xbf16> to vector<128x128xbf16>
    %cst_15 = arith.constant dense<0.000000e+00> : vector<224x128xf32>
    %23 = tpu.matmul %20, %22, %cst_15 {dimension_numbers = #tpu.dot_dimension_numbers<[1], [0], [0], [1], [0, 0, 1, 1], [], []>} : vector<224x128xbf16>, vector<128x128xbf16>, vector<224x128xf32> -> vector<224x128xf32>
    %24 = arith.addf %19, %23 : vector<224x128xf32>
    %25 = vector.extract_strided_slice %3 {offsets = [17, 0], sizes = [224, 128], strides = [1, 1]} : vector<264x128xbf16> to vector<224x128xbf16>
    %c4 = arith.constant 4 : index
    %c0_16 = arith.constant 0 : index
    %c0_17 = arith.constant 0 : index
    %26 = vector.load %arg3[%c4, %c0_16, %c0_17] : memref<9x128x128xbf16, #tpu.memory_space<vmem>>, vector<1x128x128xbf16>
    %27 = vector.shape_cast %26 : vector<1x128x128xbf16> to vector<128x128xbf16>
    %cst_18 = arith.constant dense<0.000000e+00> : vector<224x128xf32>
    %28 = tpu.matmul %25, %27, %cst_18 {dimension_numbers = #tpu.dot_dimension_numbers<[1], [0], [0], [1], [0, 0, 1, 1], [], []>} : vector<224x128xbf16>, vector<128x128xbf16>, vector<224x128xf32> -> vector<224x128xf32>
    %29 = arith.addf %24, %28 : vector<224x128xf32>
    %30 = vector.extract_strided_slice %3 {offsets = [18, 0], sizes = [224, 128], strides = [1, 1]} : vector<264x128xbf16> to vector<224x128xbf16>
    %c5 = arith.constant 5 : index
    %c0_19 = arith.constant 0 : index
    %c0_20 = arith.constant 0 : index
    %31 = vector.load %arg3[%c5, %c0_19, %c0_20] : memref<9x128x128xbf16, #tpu.memory_space<vmem>>, vector<1x128x128xbf16>
    %32 = vector.shape_cast %31 : vector<1x128x128xbf16> to vector<128x128xbf16>
    %cst_21 = arith.constant dense<0.000000e+00> : vector<224x128xf32>
    %33 = tpu.matmul %30, %32, %cst_21 {dimension_numbers = #tpu.dot_dimension_numbers<[1], [0], [0], [1], [0, 0, 1, 1], [], []>} : vector<224x128xbf16>, vector<128x128xbf16>, vector<224x128xf32> -> vector<224x128xf32>
    %34 = arith.addf %29, %33 : vector<224x128xf32>
    %35 = vector.extract_strided_slice %3 {offsets = [32, 0], sizes = [224, 128], strides = [1, 1]} : vector<264x128xbf16> to vector<224x128xbf16>
    %c6 = arith.constant 6 : index
    %c0_22 = arith.constant 0 : index
    %c0_23 = arith.constant 0 : index
    %36 = vector.load %arg3[%c6, %c0_22, %c0_23] : memref<9x128x128xbf16, #tpu.memory_space<vmem>>, vector<1x128x128xbf16>
    %37 = vector.shape_cast %36 : vector<1x128x128xbf16> to vector<128x128xbf16>
    %cst_24 = arith.constant dense<0.000000e+00> : vector<224x128xf32>
    %38 = tpu.matmul %35, %37, %cst_24 {dimension_numbers = #tpu.dot_dimension_numbers<[1], [0], [0], [1], [0, 0, 1, 1], [], []>} : vector<224x128xbf16>, vector<128x128xbf16>, vector<224x128xf32> -> vector<224x128xf32>
    %39 = arith.addf %34, %38 : vector<224x128xf32>
    %40 = vector.extract_strided_slice %3 {offsets = [33, 0], sizes = [224, 128], strides = [1, 1]} : vector<264x128xbf16> to vector<224x128xbf16>
    %c7 = arith.constant 7 : index
    %c0_25 = arith.constant 0 : index
    %c0_26 = arith.constant 0 : index
    %41 = vector.load %arg3[%c7, %c0_25, %c0_26] : memref<9x128x128xbf16, #tpu.memory_space<vmem>>, vector<1x128x128xbf16>
    %42 = vector.shape_cast %41 : vector<1x128x128xbf16> to vector<128x128xbf16>
    %cst_27 = arith.constant dense<0.000000e+00> : vector<224x128xf32>
    %43 = tpu.matmul %40, %42, %cst_27 {dimension_numbers = #tpu.dot_dimension_numbers<[1], [0], [0], [1], [0, 0, 1, 1], [], []>} : vector<224x128xbf16>, vector<128x128xbf16>, vector<224x128xf32> -> vector<224x128xf32>
    %44 = arith.addf %39, %43 : vector<224x128xf32>
    %45 = vector.extract_strided_slice %3 {offsets = [34, 0], sizes = [224, 128], strides = [1, 1]} : vector<264x128xbf16> to vector<224x128xbf16>
    %c8 = arith.constant 8 : index
    %c0_28 = arith.constant 0 : index
    %c0_29 = arith.constant 0 : index
    %46 = vector.load %arg3[%c8, %c0_28, %c0_29] : memref<9x128x128xbf16, #tpu.memory_space<vmem>>, vector<1x128x128xbf16>
    %47 = vector.shape_cast %46 : vector<1x128x128xbf16> to vector<128x128xbf16>
    %cst_30 = arith.constant dense<0.000000e+00> : vector<224x128xf32>
    %48 = tpu.matmul %45, %47, %cst_30 {dimension_numbers = #tpu.dot_dimension_numbers<[1], [0], [0], [1], [0, 0, 1, 1], [], []>} : vector<224x128xbf16>, vector<128x128xbf16>, vector<224x128xf32> -> vector<224x128xf32>
    %49 = arith.addf %44, %48 : vector<224x128xf32>
    %c0_31 = arith.constant 0 : index
    %c0_32 = arith.constant 0 : index
    %50 = vector.load %arg4[%c0_31, %c0_32] : memref<1x128xf32, #tpu.memory_space<vmem>>, vector<1x128xf32>
    %51 = vector.broadcast %50 : vector<1x128xf32> to vector<224x128xf32>
    %52 = arith.addf %49, %51 : vector<224x128xf32>
    %53 = vector.shape_cast %52 : vector<224x128xf32> to vector<14x16x128xf32>
    %54 = vector.extract_strided_slice %53 {offsets = [0, 0, 0], sizes = [14, 14, 128], strides = [1, 1, 1]} : vector<14x16x128xf32> to vector<14x14x128xf32>
    %55 = arith.truncf %54 : vector<14x14x128xf32> to vector<14x14x128xbf16>
    %c0_33 = arith.constant 0 : index
    %c0_34 = arith.constant 0 : index
    %c0_35 = arith.constant 0 : index
    %c0_36 = arith.constant 0 : index
    %56 = vector.load %arg5[%c0_33, %c0_34, %c0_35, %c0_36] : memref<1x14x14x128xbf16, #tpu.memory_space<vmem>>, vector<1x14x14x128xbf16>
    %57 = vector.shape_cast %56 : vector<1x14x14x128xbf16> to vector<14x14x128xbf16>
    %58 = vector.shape_cast %55 : vector<14x14x128xbf16> to vector<1x14x14x128xbf16>
    tpu.vector_store %arg5[%c0_33, %c0_34, %c0_35, %c0_36], %58 {strides = array<i32>} : memref<1x14x14x128xbf16, #tpu.memory_space<vmem>>, vector<1x14x14x128xbf16>,
    return
  }
  func.func @transform_0(%arg0: i32) -> (i32, i32, i32) {
    %c0_i32 = arith.constant 0 : i32
    %c0_i32_0 = arith.constant 0 : i32
    %c0_i32_1 = arith.constant 0 : i32
    return %arg0, %c0_i32, %c0_i32_0 : i32, i32, i32
  }
  func.func @transform_1(%arg0: i32) -> (i32, i32) {
    %c0_i32 = arith.constant 0 : i32
    %c0_i32_0 = arith.constant 0 : i32
    %c0_i32_1 = arith.constant 0 : i32
    return %c0_i32, %c0_i32_0 : i32, i32
  }
  func.func @transform_2(%arg0: i32) -> (i32, i32, i32) {
    %c0_i32 = arith.constant 0 : i32
    %c0_i32_0 = arith.constant 0 : i32
    %c0_i32_1 = arith.constant 0 : i32
    %c0_i32_2 = arith.constant 0 : i32
    return %c0_i32, %c0_i32_0, %c0_i32_1 : i32, i32, i32
  }
  func.func @transform_3(%arg0: i32) -> (i32, i32) {
    %c0_i32 = arith.constant 0 : i32
    %c0_i32_0 = arith.constant 0 : i32
    %c0_i32_1 = arith.constant 0 : i32
    return %c0_i32, %c0_i32_0 : i32, i32
  }
  func.func @transform_4(%arg0: i32) -> (i32, i32, i32, i32) {
    %c0_i32 = arith.constant 0 : i32
    %c0_i32_0 = arith.constant 0 : i32
    %c0_i32_1 = arith.constant 0 : i32
    %c0_i32_2 = arith.constant 0 : i32
    return %arg0, %c0_i32, %c0_i32_0, %c0_i32_1 : i32, i32, i32, i32
  }
}

module attributes {stable_mosaic.version = 11 : i64} {
  func.func @_mm1x1_kernel(%arg0: i32, %arg1: memref<392x128xbf16, #tpu.memory_space<vmem>>, %arg2: memref<2x128xf32, #tpu.memory_space<vmem>>, %arg3: memref<128x128xbf16, #tpu.memory_space<vmem>>, %arg4: memref<392x128xbf16, #tpu.memory_space<vmem>>, %arg5: memref<1x2x128xf32, #tpu.memory_space<vmem>>) attributes {dimension_semantics = [#tpu.dimension_semantics<parallel>], iteration_bounds = array<i64: 1>, scalar_prefetch = 0 : i64, scratch_operands = 0 : i64, tpu.core_type = #tpu.core_type<tc>, window_params = [{transform_indices = @transform_0, window_bounds = array<i64: 392, 128>}, {pipeline_mode = #tpu.pipeline_mode<synchronous>, transform_indices = @transform_1, window_bounds = array<i64: 2, 128>}, {pipeline_mode = #tpu.pipeline_mode<synchronous>, transform_indices = @transform_2, window_bounds = array<i64: 128, 128>}, {transform_indices = @transform_3, window_bounds = array<i64: 392, 128>}, {transform_indices = @transform_4, window_bounds = array<i64: 1, 2, 128>}]} {
    %c0 = arith.constant 0 : index
    %c0_0 = arith.constant 0 : index
    %0 = vector.load %arg1[%c0, %c0_0] : memref<392x128xbf16, #tpu.memory_space<vmem>>, vector<392x128xbf16>
    %1 = arith.extf %0 : vector<392x128xbf16> to vector<392x128xf32>
    %c0_1 = arith.constant 0 : index
    %c0_2 = arith.constant 0 : index
    %2 = vector.load %arg2[%c0_1, %c0_2] : memref<2x128xf32, #tpu.memory_space<vmem>>, vector<1x128xf32>
    %3 = vector.broadcast %2 : vector<1x128xf32> to vector<392x128xf32>
    %4 = arith.mulf %1, %3 : vector<392x128xf32>
    %c1 = arith.constant 1 : index
    %c0_3 = arith.constant 0 : index
    %5 = vector.load %arg2[%c1, %c0_3] : memref<2x128xf32, #tpu.memory_space<vmem>>, vector<1x128xf32>
    %6 = vector.broadcast %5 : vector<1x128xf32> to vector<392x128xf32>
    %7 = arith.addf %4, %6 : vector<392x128xf32>
    %cst = arith.constant 0.000000e+00 : f32
    %8 = vector.broadcast %cst : f32 to vector<392x128xf32>
    %9 = arith.maximumf %7, %8 : vector<392x128xf32>
    %10 = arith.truncf %9 : vector<392x128xf32> to vector<392x128xbf16>
    %c0_4 = arith.constant 0 : index
    %c0_5 = arith.constant 0 : index
    %11 = vector.load %arg3[%c0_4, %c0_5] : memref<128x128xbf16, #tpu.memory_space<vmem>>, vector<128x128xbf16>
    %cst_6 = arith.constant dense<0.000000e+00> : vector<392x128xf32>
    %12 = tpu.matmul %10, %11, %cst_6 {dimension_numbers = #tpu.dot_dimension_numbers<[1], [0], [0], [1], [0, 0, 1, 1], [], []>} : vector<392x128xbf16>, vector<128x128xbf16>, vector<392x128xf32> -> vector<392x128xf32>
    %13 = tpu.iota {dimensions = array<i32: 0>} : vector<392x1xi32>
    %c392_i32 = arith.constant 392 : i32
    %14 = arith.muli %arg0, %c392_i32 : i32
    %15 = vector.broadcast %14 : i32 to vector<392x1xi32>
    %16 = arith.addi %13, %15 : vector<392x1xi32>
    %c392_i32_7 = arith.constant 392 : i32
    %17 = vector.broadcast %c392_i32_7 : i32 to vector<392x1xi32>
    %18 = arith.cmpi slt, %16, %17 : vector<392x1xi32>
    %cst_8 = arith.constant 0.000000e+00 : f32
    %19 = vector.shape_cast %18 : vector<392x1xi1> to vector<392x1xi1>
    %20 = vector.broadcast %19 : vector<392x1xi1> to vector<392x128xi1>
    %21 = vector.broadcast %cst_8 : f32 to vector<392x128xf32>
    %22 = arith.select %20, %12, %21 : vector<392x128xi1>, vector<392x128xf32>
    %cst_9 = arith.constant dense<0.000000e+00> : vector<128xf32>
    %23 = vector.multi_reduction <add>, %22, %cst_9 [0] : vector<392x128xf32> to vector<128xf32>
    %24 = vector.shape_cast %23 : vector<128xf32> to vector<1x128xf32>
    %25 = arith.mulf %22, %22 : vector<392x128xf32>
    %cst_10 = arith.constant dense<0.000000e+00> : vector<128xf32>
    %26 = vector.multi_reduction <add>, %25, %cst_10 [0] : vector<392x128xf32> to vector<128xf32>
    %27 = vector.shape_cast %26 : vector<128xf32> to vector<1x128xf32>
    %28 = tpu.concatenate %24, %27 in 0 : vector<1x128xf32>, vector<1x128xf32> -> vector<2x128xf32>
    %c0_11 = arith.constant 0 : index
    %c0_12 = arith.constant 0 : index
    %c0_13 = arith.constant 0 : index
    %29 = vector.load %arg5[%c0_11, %c0_12, %c0_13] : memref<1x2x128xf32, #tpu.memory_space<vmem>>, vector<1x2x128xf32>
    %30 = vector.shape_cast %29 : vector<1x2x128xf32> to vector<2x128xf32>
    %31 = vector.shape_cast %28 : vector<2x128xf32> to vector<1x2x128xf32>
    tpu.vector_store %arg5[%c0_11, %c0_12, %c0_13], %31 {strides = array<i32>} : memref<1x2x128xf32, #tpu.memory_space<vmem>>, vector<1x2x128xf32>,
    %32 = arith.truncf %12 : vector<392x128xf32> to vector<392x128xbf16>
    %c0_14 = arith.constant 0 : index
    %c0_15 = arith.constant 0 : index
    %33 = vector.load %arg4[%c0_14, %c0_15] : memref<392x128xbf16, #tpu.memory_space<vmem>>, vector<392x128xbf16>
    tpu.vector_store %arg4[%c0_14, %c0_15], %32 {strides = array<i32>} : memref<392x128xbf16, #tpu.memory_space<vmem>>, vector<392x128xbf16>,
    return
  }
  func.func @transform_0(%arg0: i32) -> (i32, i32) {
    %c0_i32 = arith.constant 0 : i32
    %c0_i32_0 = arith.constant 0 : i32
    return %arg0, %c0_i32 : i32, i32
  }
  func.func @transform_1(%arg0: i32) -> (i32, i32) {
    %c0_i32 = arith.constant 0 : i32
    %c0_i32_0 = arith.constant 0 : i32
    %c0_i32_1 = arith.constant 0 : i32
    return %c0_i32, %c0_i32_0 : i32, i32
  }
  func.func @transform_2(%arg0: i32) -> (i32, i32) {
    %c0_i32 = arith.constant 0 : i32
    %c0_i32_0 = arith.constant 0 : i32
    %c0_i32_1 = arith.constant 0 : i32
    return %c0_i32, %c0_i32_0 : i32, i32
  }
  func.func @transform_3(%arg0: i32) -> (i32, i32) {
    %c0_i32 = arith.constant 0 : i32
    %c0_i32_0 = arith.constant 0 : i32
    return %arg0, %c0_i32 : i32, i32
  }
  func.func @transform_4(%arg0: i32) -> (i32, i32, i32) {
    %c0_i32 = arith.constant 0 : i32
    %c0_i32_0 = arith.constant 0 : i32
    %c0_i32_1 = arith.constant 0 : i32
    return %arg0, %c0_i32, %c0_i32_0 : i32, i32, i32
  }
}

module attributes {stable_mosaic.version = 11 : i64} {
  func.func @_bn_add_relu_kernel(%arg0: i32, %arg1: memref<392x128xbf16, #tpu.memory_space<vmem>>, %arg2: memref<2x128xf32, #tpu.memory_space<vmem>>, %arg3: memref<392x128xbf16, #tpu.memory_space<vmem>>, %arg4: memref<392x128xbf16, #tpu.memory_space<vmem>>) attributes {dimension_semantics = [#tpu.dimension_semantics<parallel>], iteration_bounds = array<i64: 1>, scalar_prefetch = 0 : i64, scratch_operands = 0 : i64, tpu.core_type = #tpu.core_type<tc>, window_params = [{transform_indices = @transform_0, window_bounds = array<i64: 392, 128>}, {pipeline_mode = #tpu.pipeline_mode<synchronous>, transform_indices = @transform_1, window_bounds = array<i64: 2, 128>}, {transform_indices = @transform_2, window_bounds = array<i64: 392, 128>}, {transform_indices = @transform_3, window_bounds = array<i64: 392, 128>}]} {
    %c0 = arith.constant 0 : index
    %c0_0 = arith.constant 0 : index
    %0 = vector.load %arg1[%c0, %c0_0] : memref<392x128xbf16, #tpu.memory_space<vmem>>, vector<392x128xbf16>
    %1 = arith.extf %0 : vector<392x128xbf16> to vector<392x128xf32>
    %c0_1 = arith.constant 0 : index
    %c0_2 = arith.constant 0 : index
    %2 = vector.load %arg2[%c0_1, %c0_2] : memref<2x128xf32, #tpu.memory_space<vmem>>, vector<1x128xf32>
    %3 = vector.broadcast %2 : vector<1x128xf32> to vector<392x128xf32>
    %4 = arith.mulf %1, %3 : vector<392x128xf32>
    %c1 = arith.constant 1 : index
    %c0_3 = arith.constant 0 : index
    %5 = vector.load %arg2[%c1, %c0_3] : memref<2x128xf32, #tpu.memory_space<vmem>>, vector<1x128xf32>
    %6 = vector.broadcast %5 : vector<1x128xf32> to vector<392x128xf32>
    %7 = arith.addf %4, %6 : vector<392x128xf32>
    %c0_4 = arith.constant 0 : index
    %c0_5 = arith.constant 0 : index
    %8 = vector.load %arg3[%c0_4, %c0_5] : memref<392x128xbf16, #tpu.memory_space<vmem>>, vector<392x128xbf16>
    %9 = arith.extf %8 : vector<392x128xbf16> to vector<392x128xf32>
    %10 = arith.addf %7, %9 : vector<392x128xf32>
    %cst = arith.constant 0.000000e+00 : f32
    %11 = vector.broadcast %cst : f32 to vector<392x128xf32>
    %12 = arith.maximumf %10, %11 : vector<392x128xf32>
    %13 = arith.truncf %12 : vector<392x128xf32> to vector<392x128xbf16>
    %c0_6 = arith.constant 0 : index
    %c0_7 = arith.constant 0 : index
    %14 = vector.load %arg4[%c0_6, %c0_7] : memref<392x128xbf16, #tpu.memory_space<vmem>>, vector<392x128xbf16>
    tpu.vector_store %arg4[%c0_6, %c0_7], %13 {strides = array<i32>} : memref<392x128xbf16, #tpu.memory_space<vmem>>, vector<392x128xbf16>,
    return
  }
  func.func @transform_0(%arg0: i32) -> (i32, i32) {
    %c0_i32 = arith.constant 0 : i32
    %c0_i32_0 = arith.constant 0 : i32
    return %arg0, %c0_i32 : i32, i32
  }
  func.func @transform_1(%arg0: i32) -> (i32, i32) {
    %c0_i32 = arith.constant 0 : i32
    %c0_i32_0 = arith.constant 0 : i32
    %c0_i32_1 = arith.constant 0 : i32
    return %c0_i32, %c0_i32_0 : i32, i32
  }
  func.func @transform_2(%arg0: i32) -> (i32, i32) {
    %c0_i32 = arith.constant 0 : i32
    %c0_i32_0 = arith.constant 0 : i32
    return %arg0, %c0_i32 : i32, i32
  }
  func.func @transform_3(%arg0: i32) -> (i32, i32) {
    %c0_i32 = arith.constant 0 : i32
    %c0_i32_0 = arith.constant 0 : i32
    return %arg0, %c0_i32 : i32, i32
  }
}

</mosaic_0001>

<bundles_post_ra>
// kernel: bottleneck_forward.6
= control target key start
LH: loop header
LB: loop body
LE: loop exit
PB: predicated region body
PF: predicated region fallthrough
CT: control target
= control target key end

     0   :  { %s4432_s18 = smov 0   ;;  %s5212_s0 = inlined_call_operand.vmem [shape: bf16[2,256,128], index: 0, kind: input, shape index: {}]   ;;  %s5213_s1 = inlined_call_operand.vmem [shape: f32[2,128], index: 1, kind: input, shape index: {}]   ;;  %s5214_s2 = inlined_call_operand.vmem [shape: bf16[9,128,128], index: 2, kind: input, shape index: {}]   ;;  %s5215_s3 = inlined_call_operand.vmem [shape: f32[1,128], index: 3, kind: input, shape index: {}]   ;;  %s5216_s4 = inlined_call_operand.vmem [shape: bf16[2,14,14,128], index: 4, kind: output, shape index: {0}]   ;;  %s5217_s5 = inlined_call_operand.vmem [shape: f32[2,2,128], index: 5, kind: output, shape index: {1}]  }
   0x1 LB: > { %s3119_s19 = sadd.s32 4294967295, %s4399_s18   ;;  %p3123_p0 = scmp.ge.s32.totalorder %s4399_s18, 1  ;;  %s4399_s18 = sphi %s4432_s18, %s16_s18  }
   0x2   : > { %p190_p1 = scmp.lt.s32.totalorder %s4399_s18, 3 }
   0x4   : > { %p191_p2 = pnand %p3123_p0, %p190_p1 }
   0x5   : > { %v4313_v0 = vld [vmem:[%s5214_s2 + $0x40] sm:$0xff] (!%p191_p2)   ;;  %v4315_v2 = vld [vmem:[%s5214_s2 + $0x48] sm:$0xff] (!%p191_p2)   ;;  %p222_p3 = scmp.lt.s32.totalorder (!%p191_p2), %s3119_s19, 1  ;;  %v4317_v4 = vld [vmem:[%s5214_s2 + $0x50] sm:$0xff] (!%p191_p2)   ;;  %vm456_vm0 = vsmask.f32 (!%p191_p2), 7424 }
   0x6   : > { %194 = sbr.rel (%p191_p2) target bundleno = 529 (0x211), region = 36  ;;  %v4314_v1 = vld [vmem:[%s5214_s2 + $0x100] sm:$0xff] (!%p191_p2)   ;;  %3667 = vmatprep.subr.bf16.mxu1 (!%p191_p2), %v4313_v0  ;;  %v4316_v3 = vld [vmem:[%s5214_s2 + $0x108] sm:$0xff] (!%p191_p2)   ;;  %v4318_v5 = vld [vmem:[%s5214_s2 + $0x110] sm:$0xff] (!%p191_p2)   ;;  %vm1005_vm1 = vcmask (!%p191_p2), 1046528   ;;  %vm2890_vm3 = vcmask (!%p191_p2), 1040384  }
   0x7   : > { %3843 = vmatprep.subr.bf16.mxu0 (!%p191_p2), %v4314_v1  ;;  %3668 = vmatpush3.bf16.msra.mxu1 (!%p191_p2), %v4313_v0  ;;  %v4319_v6 = vld [vmem:[%s5214_s2 + $0x58] sm:$0xff] (!%p191_p2)   ;;  %v4321_v8 = vld [vmem:[%s5214_s2 + $0x60] sm:$0xff] (!%p191_p2)   ;;  %v4323_v10 = vld [vmem:[%s5214_s2 + $0x68] sm:$0xff] (!%p191_p2)  }
   0x8   : > { %3844 = vmatpush3.bf16.msra.mxu0 (!%p191_p2), %v4314_v1  ;;  %3669 = vmatprep.subr.bf16.mxu1 (!%p191_p2), %v4315_v2  ;;  %v4320_v7 = vld [vmem:[%s5214_s2 + $0x118] sm:$0xff] (!%p191_p2)   ;;  %v4322_v9 = vld [vmem:[%s5214_s2 + $0x120] sm:$0xff] (!%p191_p2)   ;;  %v4324_v14 = vld [vmem:[%s5214_s2 + $0x128] sm:$0xff] (!%p191_p2)  }
   0x9   : > { %3845 = vmatprep.subr.bf16.mxu0 (!%p191_p2), %v4316_v3  ;;  %v4486_v13 = vld [vmem:[%s5213_s1] ss:$0 sm:$0xff] (!%p191_p2)  ;;  %v4496_v21 = vld [vmem:[%s5213_s1 + $0x1] ss:$0 sm:$0xff] (!%p191_p2)  ;;  %v4325_v30 = vld [vmem:[%s5214_s2 + $0x70] sm:$0xff] (!%p191_p2)  }
   0xa   : > { %v4326_v34 = vld [vmem:[%s5214_s2 + $0x130] sm:$0xff] (!%p191_p2)   ;;  %v4327_v49 = vld [vmem:[%s5214_s2 + $0x78] sm:$0xff] (!%p191_p2)  }
   0xb   : > { %3670 = vmatpush3.bf16.msra.mxu1 (!%p191_p2), %v4315_v2  ;;  %v4328_v54 = vld [vmem:[%s5214_s2 + $0x138] sm:$0xff] (!%p191_p2)  }
   0xc   : > { %3846 = vmatpush3.bf16.msra.mxu0 (!%p191_p2), %v4316_v3  ;;  %3671 = vmatprep.subr.bf16.mxu1 (!%p191_p2), %v4317_v4  ;;  %v4329_v3 = vld [vmem:[%s5214_s2 + $0x140] sm:$0xff] (!%p191_p2)  }
   0xd   : > { %s5219_s19 = smov (!%p222_p3, %s3119_s19), 1  ;;  %3847 = vmatprep.subr.bf16.mxu0 %v4318_v5 }
   0xe   : > { %s3361_s11 = sshll.u32 %s5219_s19, 7  ;;  %s4303_s29 = smul.u32 112, %s5219_s19 }
   0xf   : > { %3672 = vmatpush3.bf16.msra.mxu1 %v4317_v4  ;;  %s4476_s20 = scalar_lea.vmem %s5212_s0, %s3361_s11  ;;  %v4331_v4 = vld [vmem:[%s5214_s2] sm:$0xff]   ;;  %s3127_s9 = sshll.u32 %s5219_s19, 1 }
  0x10   : > { %3848 = vmatpush3.bf16.msra.mxu0 %v4318_v5  ;;  %3673 = vmatprep.subr.bf16.mxu1 %v4319_v6  ;;  %v3391_v11 = vld [vmem:[%s4476_s20] sm:$0xff]   ;;  %v3454_v12 = vld [vmem:[%s4476_s20 + $0x8] sm:$0xff]   ;;  %v3455_v19 = vld [vmem:[%s4476_s20 + $0x10] sm:$0xff]   ;;  %s5111_s8 = scalar_lea.vmem %s5216_s4, %s4303_s29  ;;  %s235_s12 = scalar_lea.vmem %s5217_s5, %s3127_s9 }
  0x11   : > { %3849 = vmatprep.subr.bf16.mxu0 %v4320_v7  ;;  %v3392_v15 = vunpack.c.l.bf16 %v3391_v11  ;;  %v3393_v16 = vunpack.c.h.bf16 %v3391_v11  ;;  %v3396_v17 = vunpack.c.l.bf16 %v3454_v12  ;;  %v3397_v18 = vunpack.c.h.bf16 %v3454_v12  ;;  %v3456_v20 = vld [vmem:[%s4476_s20 + $0x18] sm:$0xff]   ;;  %v3457_v39 = vld [vmem:[%s4476_s20 + $0x20] sm:$0xff]   ;;  %v3458_v44 = vld [vmem:[%s4476_s20 + $0x28] sm:$0xff]  }
  0x12   : > { %v3400_v22 = vunpack.c.l.bf16 %v3455_v19  ;;  %v3401_v23 = vunpack.c.h.bf16 %v3455_v19  ;;  %v3404_v24 = vunpack.c.l.bf16 %v3456_v20  ;;  %v3405_v25 = vunpack.c.h.bf16 %v3456_v20 }
  0x13   : > { %3674 = vmatpush3.bf16.msra.mxu1 %v4319_v6  ;;  %v306_v26 = vmul.f32 %v3392_v15, %v4486_v13  ;;  %v307_v27 = vmul.f32 %v3393_v16, %v4486_v13  ;;  %v308_v28 = vmul.f32 %v3396_v17, %v4486_v13  ;;  %v309_v29 = vmul.f32 %v3397_v18, %v4486_v13  ;;  %v3459_v18 = vld [vmem:[%s4476_s20 + $0x30] sm:$0xff]  }
  0x14   : > { %3850 = vmatpush3.bf16.msra.mxu0 %v4320_v7  ;;  %3675 = vmatprep.subr.bf16.mxu1 %v4321_v8  ;;  %v310_v31 = vmul.f32 %v3400_v22, %v4486_v13  ;;  %v311_v32 = vmul.f32 %v3401_v23, %v4486_v13  ;;  %v312_v33 = vmul.f32 %v3404_v24, %v4486_v13  ;;  %v3408_v57 = vunpack.c.l.bf16 %v3457_v39  ;;  %v4330_v22 = vld [vmem:[%s5214_s2 + $0x148] sm:$0xff]  }
  0x15   : > { %3851 = vmatprep.subr.bf16.mxu0 %v4322_v9  ;;  %v343_v35 = vadd.f32 %v4496_v21, %v306_v26  ;;  %v344_v36 = vadd.f32 %v4496_v21, %v307_v27  ;;  %v345_v37 = vadd.f32 %v4496_v21, %v308_v28  ;;  %v346_v38 = vadd.f32 %v4496_v21, %v309_v29 }
  0x16   : > { %v347_v40 = vadd.f32 %v4496_v21, %v310_v31  ;;  %v348_v41 = vadd.f32 %v4496_v21, %v311_v32  ;;  %v313_v42 = vmul.f32 %v3405_v25, %v4486_v13  ;;  %v349_v43 = vadd.f32 %v4496_v21, %v312_v33  ;;  %v3460_v25 = vld [vmem:[%s4476_s20 + $0x38] sm:$0xff]  }
  0x17   : > { %3676 = vmatpush3.bf16.msra.mxu1 %v4321_v8  ;;  %v375_v45 = vmax.f32 %v343_v35, 0.0  ;;  %v376_v46 = vmax.f32 %v344_v36, 0.0  ;;  %v377_v47 = vmax.f32 %v345_v37, 0.0  ;;  %v378_v48 = vmax.f32 %v346_v38, 0.0  ;;  %v4334_v38 = vld [vmem:[%s5214_s2 + $0x8] sm:$0xff]  }
  0x18   : > { %3852 = vmatpush3.bf16.msra.mxu0 %v4322_v9  ;;  %3677 = vmatprep.subr.bf16.mxu1 %v4323_v10  ;;  %v379_v50 = vmax.f32 %v347_v40, 0.0  ;;  %v380_v51 = vmax.f32 %v348_v41, 0.0  ;;  %v350_v52 = vadd.f32 %v4496_v21, %v313_v42  ;;  %v381_v53 = vmax.f32 %v349_v43, 0.0 }
  0x19   : > { %3853 = vmatprep.subr.bf16.mxu0 %v4324_v14  ;;  %v4528_v55 = vpack.c.bf16 %v376_v46, %v375_v45  ;;  %v4530_v56 = vpack.c.bf16 %v378_v48, %v377_v47  ;;  %v3409_v58 = vunpack.c.h.bf16 %v3457_v39  ;;  %v3412_v61 = vunpack.c.l.bf16 %v3458_v44 }
  0x1a   : > { %v4532_v59 = vpack.c.bf16 %v380_v51, %v379_v50  ;;  %v382_v60 = vmax.f32 %v350_v52, 0.0  ;;  %v3413_v62 = vunpack.c.h.bf16 %v3458_v44  ;;  %v314_v8 = vmul.f32 %v3408_v57, %v4486_v13  ;;  %v4332_v44 = vld [vmem:[%s5214_s2 + $0x150] sm:$0xff]  }
  0x1b   : > { %3678 = vmatpush3.bf16.msra.mxu1 %v4323_v10  ;;  %v458_v63 = vshrl.u32 %v4528_v55, 16  ;;  %v460_v0 = vshll.u32 %v4528_v55, 16  ;;  %v465_v1 = vshll.u32 %v4530_v56, 16  ;;  %v469_v2 = vshrl.u32 %v4530_v56, 16 }
  0x1c   : > { %3854 = vmatpush3.bf16.msra.mxu0 %v4324_v14  ;;  %3679 = vmatprep.subr.bf16.mxu1 %v4325_v30  ;;  %v473_v5 = vshll.u32 %v4532_v59, 16  ;;  %v4545_v6 = vpack.c.bf16 %v382_v60, %v381_v53  ;;  %v477_v7 = vshrl.u32 %v4532_v59, 16  ;;  %v315_v11 = vmul.f32 %v3409_v58, %v4486_v13  ;;  %v4337_v58 = vld [vmem:[%s5214_s2 + $0x10] sm:$0xff]  }
  0x1d   : > { %3855 = vmatprep.subr.bf16.mxu0 %v4326_v34  ;;  %v462_v9 = vrot.slane %v460_v0, 1  ;;  %v467_v10 = vrot.slane %v465_v1, 1  ;;  %v316_v12 = vmul.f32 %v3412_v61, %v4486_v13  ;;  %v351_v16 = vadd.f32 %v4496_v21, %v314_v8 }
  0x1e   : > { %v475_v14 = vrot.slane %v473_v5, 1  ;;  %v481_v15 = vshll.u32 %v4545_v6, 16  ;;  %v485_v17 = vshrl.u32 %v4545_v6, 16  ;;  %v352_v23 = vadd.f32 %v4496_v21, %v315_v11  ;;  %v3462_v5 = vld [vmem:[%s4476_s20 + $0x48] sm:$0xff]   ;;  %v4333_v11 = vld [vmem:[%s5214_s2 + $0x158] sm:$0xff]  }
  0x1f   : > { %3680 = vmatpush3.bf16.msra.mxu1 %v4325_v30  ;;  %v463_v19 = vor.u32 %v462_v9, %v458_v63  ;;  %v471_v20 = vor.u32 %v469_v2, %v467_v10  ;;  %v317_v24 = vmul.f32 %v3413_v62, %v4486_v13  ;;  %v383_v28 = vmax.f32 %v351_v16, 0.0 }
  0x20   : > { %3856 = vmatpush3.bf16.msra.mxu0 %v4326_v34  ;;  %3681 = vmatprep.subr.bf16.mxu1 %v4327_v49  ;;  %v479_v26 = vor.u32 %v477_v7, %v475_v14  ;;  %v483_v27 = vrot.slane %v481_v15, 1  ;;  %v353_v29 = vadd.f32 %v4496_v21, %v316_v12  ;;  %v384_v32 = vmax.f32 %v352_v23, 0.0  ;;  %v3461_v34 = vld [vmem:[%s4476_s20 + $0x40] sm:$0xff]  }
  0x21   : > { %3857 = vmatprep.subr.bf16.mxu0 %v4328_v54  ;;  %v468_v30 = vsel %vm456_vm0, %v463_v19, %v467_v10  ;;  %v476_v31 = vsel %vm456_vm0, %v471_v20, %v475_v14  ;;  %v354_v33 = vadd.f32 %v4496_v21, %v317_v24  ;;  %v3416_v39 = vunpack.c.l.bf16 %v3459_v18 }
  0x22   : > { %3683 = vmatprep.mubr.bf16.mxu1 %v468_v30  ;;  %3859 = vmatprep.mubr.bf16.mxu0 %v476_v31  ;;  %v4567_v35 = vsel %vm456_vm0, %v479_v26, %v483_v27  ;;  %v487_v36 = vor.u32 %v485_v17, %v483_v27  ;;  %v385_v37 = vmax.f32 %v353_v29, 0.0  ;;  %v4573_v40 = vpack.c.bf16 %v384_v32, %v383_v28  ;;  %v4340_v17 = vld [vmem:[%s5214_s2 + $0x18] sm:$0xff]   ;;  %v3463_v26 = vld [vmem:[%s4476_s20 + $0x50] sm:$0xff]   ;;  %v4335_v30 = vld [vmem:[%s5214_s2 + $0x160] sm:$0xff]  }
  0x23   : > { %3682 = vmatpush3.bf16.msra.mxu1 %v4327_v49  ;;  %v386_v41 = vmax.f32 %v354_v33, 0.0  ;;  %v3417_v42 = vunpack.c.h.bf16 %v3459_v18  ;;  %v3420_v43 = vunpack.c.l.bf16 %v3460_v25  ;;  %v318_v45 = vmul.f32 %v3416_v39, %v4486_v13 }
  0x24   : > { %3858 = vmatpush3.bf16.msra.mxu0 %v4328_v54  ;;  %3711 = vmatprep.subr.bf16.mxu1 %v4331_v4  ;;  %v3421_v46 = vunpack.c.h.bf16 %v3460_v25  ;;  %v3424_v47 = vunpack.c.l.bf16 %v3461_v34  ;;  %v3425_v48 = vunpack.c.h.bf16 %v3461_v34  ;;  %v489_v49 = vshll.u32 %v4573_v40, 16 }
  0x25   : > { %3887 = vmatprep.subr.bf16.mxu0 %v4329_v3  ;;  %v4581_v50 = vpack.c.bf16 %v386_v41, %v385_v37  ;;  %v493_v51 = vshrl.u32 %v4573_v40, 16  ;;  %v319_v52 = vmul.f32 %v3417_v42, %v4486_v13  ;;  %v355_v53 = vadd.f32 %v4496_v21, %v318_v45  ;;  %v4342_v41 = vld [vmem:[%s5214_s2 + $0x20] sm:$0xff]  }
  0x26   : > { %3684 = vmatmul.mubr.bf16.vlgmr.msra.gmra.mrb[0].mxu1 %v476_v31  ;;  %v320_v54 = vmul.f32 %v3420_v43, %v4486_v13  ;;  %v321_v57 = vmul.f32 %v3421_v46, %v4486_v13  ;;  %v322_v60 = vmul.f32 %v3424_v47, %v4486_v13  ;;  %v491_v61 = vrot.slane %v489_v49, 1  ;;  %v4336_v43 = vld [vmem:[%s5214_s2 + $0x168] sm:$0xff]   ;;  %v3464_v46 = vld [vmem:[%s4476_s20 + $0x58] sm:$0xff]  }
  0x27   : > { %3860 = vmatmul.mubr.bf16.vlgmr.msra.gmra.mrb[0].mxu0 %v4567_v35  ;;  %3687 = vmatprep.mubr.bf16.mxu1 %v4567_v35  ;;  %v497_v62 = vshll.u32 %v4581_v50, 16  ;;  %v356_v63 = vadd.f32 %v4496_v21, %v319_v52  ;;  %v501_v0 = vshrl.u32 %v4581_v50, 16  ;;  %v387_v1 = vmax.f32 %v355_v53, 0.0 }
  0x28   : > { %3888 = vmatpush3.bf16.msra.mxu0 %v4329_v3  ;;  %3712 = vmatpush3.bf16.msra.mxu1 %v4331_v4  ;;  %v357_v2 = vadd.f32 %v4496_v21, %v320_v54  ;;  %v358_v3 = vadd.f32 %v4496_v21, %v321_v57  ;;  %v323_v4 = vmul.f32 %v3425_v48, %v4486_v13  ;;  %v3428_v20 = vunpack.c.l.bf16 %v3462_v5 }
  0x29   : > { %3889 = vmatprep.subr.bf16.mxu0 %v4330_v22  ;;  %3713 = vmatprep.subr.bf16.mxu1 %v4334_v38  ;;  %v4600_v7 = vsel %vm456_vm0, %v487_v36, %v491_v61  ;;  %v495_v8 = vor.u32 %v493_v51, %v491_v61  ;;  %v499_v9 = vrot.slane %v497_v62, 1  ;;  %v388_v10 = vmax.f32 %v356_v63, 0.0  ;;  %v4344_v62 = vld [vmem:[%s5214_s2 + $0x28] sm:$0xff]  }
  0x2a   : > { %3863 = vmatprep.mubr.bf16.mxu0 %v4600_v7  ;;  %v389_v12 = vmax.f32 %v357_v2, 0.0  ;;  %v390_v14 = vmax.f32 %v358_v3, 0.0  ;;  %v359_v15 = vadd.f32 %v4496_v21, %v322_v60  ;;  %v360_v16 = vadd.f32 %v4496_v21, %v323_v4  ;;  %v3465_v2 = vld [vmem:[%s4476_s20 + $0x60] sm:$0xff]  }
  0x2b   : > { %v4613_v18 = vsel %vm456_vm0, %v495_v8, %v499_v9  ;;  %v4615_v19 = vpack.c.bf16 %v388_v10, %v387_v1  ;;  %v3429_v25 = vunpack.c.h.bf16 %v3462_v5  ;;  %v503_v27 = vor.u32 %v501_v0, %v499_v9 }
  0x2c   : > { %3890 = vmatpush3.bf16.msra.mxu0 %v4330_v22  ;;  %3714 = vmatpush3.bf16.msra.mxu1 %v4334_v38  ;;  %v4619_v22 = vpack.c.bf16 %v390_v14, %v389_v12  ;;  %v391_v23 = vmax.f32 %v359_v15, 0.0  ;;  %v392_v24 = vmax.f32 %v360_v16, 0.0  ;;  %v324_v31 = vmul.f32 %v3428_v20, %v4486_v13  ;;  %v3466_v15 = vld [vmem:[%s4476_s20 + $0x68] sm:$0xff]  }
  0x2d   : > { %3891 = vmatprep.subr.bf16.mxu0 %v4332_v44  ;;  %3715 = vmatprep.subr.bf16.mxu1 %v4337_v58  ;;  %v505_v28 = vshll.u32 %v4615_v19, 16  ;;  %v509_v29 = vshrl.u32 %v4615_v19, 16  ;;  %v325_v36 = vmul.f32 %v3429_v25, %v4486_v13  ;;  %v3432_v39 = vunpack.c.l.bf16 %v3463_v26  ;;  %v4339_v25 = vld [vmem:[%s5214_s2 + $0x178] sm:$0xff]  }
  0x2e   : > { %3688 = vmatmul.mubr.bf16.gmra.mrb[4].mxu1 %v4600_v7  ;;  %v513_v32 = vshll.u32 %v4619_v22, 16  ;;  %v4629_v33 = vpack.c.bf16 %v392_v24, %v391_v23  ;;  %v517_v34 = vshrl.u32 %v4619_v22, 16  ;;  %v361_v38 = vadd.f32 %v4496_v21, %v324_v31 }
  0x2f   : > { %3864 = vmatmul.mubr.bf16.gmra.mrb[4].mxu0 %v4613_v18  ;;  %3691 = vmatprep.mubr.bf16.mxu1 %v4613_v18  ;;  %v507_v37 = vrot.slane %v505_v28, 1  ;;  %v362_v45 = vadd.f32 %v4496_v21, %v325_v36  ;;  %v3433_v57 = vunpack.c.h.bf16 %v3463_v26  ;;  %v326_v60 = vmul.f32 %v3432_v39, %v4486_v13 }
  0x30   : > { %3892 = vmatpush3.bf16.msra.mxu0 %v4332_v44  ;;  %3716 = vmatpush3.bf16.msra.mxu1 %v4337_v58  ;;  %v515_v42 = vrot.slane %v513_v32, 1  ;;  %v521_v44 = vshll.u32 %v4629_v33, 16  ;;  %v393_v49 = vmax.f32 %v361_v38, 0.0  ;;  %v525_v51 = vshrl.u32 %v4629_v33, 16 }
  0x31   : > { %3893 = vmatprep.subr.bf16.mxu0 %v4333_v11  ;;  %3717 = vmatprep.subr.bf16.mxu1 %v4340_v17  ;;  %v4644_v47 = vsel %vm456_vm0, %v503_v27, %v507_v37  ;;  %v511_v48 = vor.u32 %v509_v29, %v507_v37  ;;  %v394_v54 = vmax.f32 %v362_v45, 0.0  ;;  %v3436_v61 = vunpack.c.l.bf16 %v3464_v46  ;;  %v4346_v29 = vld [vmem:[%s5214_s2 + $0x30] sm:$0xff]  }
  0x32   : > { %3867 = vmatprep.mubr.bf16.mxu0 %v4644_v47  ;;  %v519_v52 = vor.u32 %v517_v34, %v515_v42  ;;  %v523_v53 = vrot.slane %v521_v44, 1  ;;  %v3437_v1 = vunpack.c.h.bf16 %v3464_v46  ;;  %v1007_v3 = vrot.slane %v4530_v56, 1  ;;  %v3467_v45 = vld [vmem:[%s4476_s20 + $0x70] sm:$0xff]  }
  0x33   : > { %v4650_v58 = vsel %vm456_vm0, %v511_v48, %v515_v42  ;;  %v4661_v0 = vpack.c.bf16 %v394_v54, %v393_v49  ;;  %v1009_v4 = vrot.slane %v4532_v59, 1  ;;  %v327_v5 = vmul.f32 %v3433_v57, %v4486_v13 }
  0x34   : > { %3894 = vmatpush3.bf16.msra.mxu0 %v4333_v11  ;;  %3718 = vmatpush3.bf16.msra.mxu1 %v4340_v17  ;;  %v4659_v63 = vsel %vm456_vm0, %v519_v52, %v523_v53  ;;  %v363_v8 = vadd.f32 %v4496_v21, %v326_v60  ;;  %v527_v9 = vor.u32 %v525_v51, %v523_v53  ;;  %v4338_v11 = vld [vmem:[%s5214_s2 + $0x170] sm:$0xff]   ;;  %v3440_v23 = vunpack.c.l.bf16 %v3465_v2  ;;  %v4347_v52 = vld [vmem:[%s5214_s2 + $0x38] sm:$0xff]  }
  0x35   : > { %3895 = vmatprep.subr.bf16.mxu0 %v4335_v30  ;;  %3719 = vmatprep.subr.bf16.mxu1 %v4342_v41  ;;  %v529_v10 = vshll.u32 %v4661_v0, 16  ;;  %v328_v12 = vmul.f32 %v3436_v61, %v4486_v13  ;;  %v329_v14 = vmul.f32 %v3437_v1, %v4486_v13  ;;  %v364_v16 = vadd.f32 %v4496_v21, %v327_v5  ;;  %v4341_v61 = vld [vmem:[%s5214_s2 + $0x180] sm:$0xff]  }
  0x36   : > { %3692 = vmatmul.mubr.bf16.gmra.mrb[8].mxu1 %v4644_v47  ;;  %v395_v17 = vmax.f32 %v363_v8, 0.0  ;;  %v533_v20 = vshrl.u32 %v4661_v0, 16  ;;  %v3441_v28 = vunpack.c.h.bf16 %v3465_v2  ;;  %v1011_v31 = vrot.slane %v4545_v6, 1 }
  0x37   : > { %3868 = vmatmul.mubr.bf16.gmra.mrb[8].mxu0 %v4650_v58  ;;  %3695 = vmatprep.mubr.bf16.mxu1 %v4650_v58  ;;  %v531_v24 = vrot.slane %v529_v10, 1  ;;  %v365_v26 = vadd.f32 %v4496_v21, %v328_v12  ;;  %v366_v27 = vadd.f32 %v4496_v21, %v329_v14  ;;  %v330_v32 = vmul.f32 %v3440_v23, %v4486_v13 }
  0x38   : > { %3896 = vmatpush3.bf16.msra.mxu0 %v4335_v30  ;;  %3871 = vmatprep.mubr.bf16.mxu0 %v4659_v63  ;;  %v396_v30 = vmax.f32 %v364_v16, 0.0  ;;  %v3444_v34 = vunpack.c.l.bf16 %v3466_v15  ;;  %v4694_v37 = vsel %vm1005_vm1, %v1007_v3, %v1009_v4  ;;  %v1013_v42 = vrot.slane %v4573_v40, 1 }
  0x39   : > { %3897 = vmatprep.subr.bf16.mxu0 %v4336_v43  ;;  %3720 = vmatpush3.bf16.msra.mxu1 %v4342_v41  ;;  %v4689_v36 = vsel %vm456_vm0, %v527_v9, %v531_v24  ;;  %v397_v38 = vmax.f32 %v365_v26, 0.0  ;;  %v398_v39 = vmax.f32 %v366_v27, 0.0  ;;  %v367_v44 = vadd.f32 %v4496_v21, %v330_v32  ;;  %v4343_v26 = vld [vmem:[%s5214_s2 + $0x188] sm:$0xff]  }
  0x3a   : > { %3721 = vmatprep.subr.bf16.mxu1 %v4344_v62  ;;  %v4697_v41 = vpack.c.bf16 %v396_v30, %v395_v17  ;;  %v535_v46 = vor.u32 %v533_v20, %v531_v24  ;;  %v3445_v49 = vunpack.c.h.bf16 %v3466_v15  ;;  %v332_v51 = vmul.f32 %v3444_v34, %v4486_v13 }
  0x3b   : > { %v4705_v48 = vpack.c.bf16 %v398_v39, %v397_v38  ;;  %v399_v60 = vmax.f32 %v367_v44, 0.0  ;;  %v4723_v9 = vsel %vm1005_vm1, %v1009_v4, %v1011_v31  ;;  %v3449_v16 = vunpack.c.h.bf16 %v3467_v45 }
  0x3c   : > { %3898 = vmatpush3.bf16.msra.mxu0 %v4336_v43  ;;  %v331_v43 = vmul.f32 %v3441_v28, %v4486_v13  ;;  %v537_v53 = vshll.u32 %v4697_v41, 16  ;;  %v541_v54 = vshrl.u32 %v4697_v41, 16  ;;  %v333_v2 = vmul.f32 %v3445_v49, %v4486_v13  ;;  %v4744_v28 = vld [vmem:[%s5214_s2 + $0x80] sm:$0xff]  }
  0x3d   : > { %3899 = vmatprep.subr.bf16.mxu0 %v4338_v11  ;;  %3722 = vmatpush3.bf16.msra.mxu1 %v4344_v62  ;;  %v545_v62 = vshll.u32 %v4705_v48, 16  ;;  %v549_v1 = vshrl.u32 %v4705_v48, 16  ;;  %v369_v5 = vadd.f32 %v4496_v21, %v332_v51  ;;  %v4735_v4 = vsel %vm1005_vm1, %v1011_v31, %v1013_v42 }
  0x3e   : > { %3696 = vmatmul.mubr.bf16.gmra.mrb[12].mxu1 %v4659_v63  ;;  %v368_v57 = vadd.f32 %v4496_v21, %v331_v43  ;;  %3723 = vmatprep.subr.bf16.mxu1 %v4346_v29  ;;  %v539_v8 = vrot.slane %v537_v53, 1  ;;  %v370_v14 = vadd.f32 %v4496_v21, %v333_v2  ;;  %v1015_v44 = vrot.slane %v4581_v50, 1 }
  0x3f   : > { %3872 = vmatmul.mubr.bf16.gmra.mrb[12].mxu0 %v4689_v36  ;;  %3699 = vmatprep.mubr.bf16.mxu1 %v4689_v36  ;;  %v547_v12 = vrot.slane %v545_v62, 1  ;;  %v401_v15 = vmax.f32 %v369_v5, 0.0  ;;  %v1017_v51 = vrot.slane %v4615_v19, 1 }
  0x40   : > { %3900 = vmatpush3.bf16.msra.mxu0 %v4338_v11  ;;  %3903 = vmatprep.mubr.bf16.mxu0 %v4694_v37  ;;  %v400_v10 = vmax.f32 %v368_v57, 0.0  ;;  %v3448_v11 = vunpack.c.l.bf16 %v3467_v45  ;;  %v4727_v17 = vsel %vm456_vm0, %v535_v46, %v539_v8  ;;  %v543_v20 = vor.u32 %v541_v54, %v539_v8  ;;  %v4345_v45 = vld [vmem:[%s5214_s2 + $0x190] sm:$0xff]   ;;  %v3468_v54 = vld [vmem:[%s4476_s20 + $0x78] sm:$0xff]  }
  0x41   : > { %3901 = vmatprep.subr.bf16.mxu0 %v4339_v25  ;;  %3724 = vmatpush3.bf16.msra.mxu1 %v4346_v29  ;;  %v402_v27 = vmax.f32 %v370_v14, 0.0  ;;  %v551_v34 = vor.u32 %v549_v1, %v547_v12  ;;  %v4776_v2 = vsel %vm1005_vm1, %v1013_v42, %v1015_v44  ;;  %v3452_v5 = vunpack.c.l.bf16 %v3468_v54  ;;  %v4348_v14 = vld [vmem:[%s5214_s2 + $0x198] sm:$0xff]  }
  0x42   : > { %3725 = vmatprep.subr.bf16.mxu1 %v4347_v52  ;;  %v4729_v23 = vpack.c.bf16 %v400_v10, %v399_v60  ;;  %v334_v24 = vmul.f32 %v3448_v11, %v4486_v13  ;;  %v4748_v29 = vsel %vm456_vm0, %v543_v20, %v547_v12  ;;  %v1006_v8 = vrot.slane %v4528_v55, 1 }
  0x43   : > { %v4755_v38 = vpack.c.bf16 %v402_v27, %v401_v15  ;;  %v4783_v11 = vsel %vm1005_vm1, %v1015_v44, %v1017_v51  ;;  %v336_v42 = vmul.f32 %v3452_v5, %v4486_v13 }
  0x44   : > { %3902 = vmatpush3.bf16.msra.mxu0 %v4339_v25  ;;  %v335_v25 = vmul.f32 %v3449_v16, %v4486_v13  ;;  %v553_v30 = vshll.u32 %v4729_v23, 16  ;;  %v557_v31 = vshrl.u32 %v4729_v23, 16  ;;  %v371_v32 = vadd.f32 %v4496_v21, %v334_v24 }
  0x45   : > { %3931 = vmatprep.subr.bf16.mxu0 %v4341_v61  ;;  %v561_v49 = vshll.u32 %v4755_v38, 16  ;;  %3726 = vmatpush3.bf16.msra.mxu1 %v4347_v52  ;;  %v565_v1 = vshrl.u32 %v4755_v38, 16  ;;  %v3453_v52 = vunpack.c.h.bf16 %v3468_v54  ;;  %v4799_v24 = vsel %vm1005_vm1, %v1006_v8, %v1007_v3 }
  0x46   : > { %3700 = vmatmul.mubr.bf16.gmra.mrb[16].mxu1 %v4727_v17  ;;  %v372_v39 = vadd.f32 %v4496_v21, %v335_v25  ;;  %v555_v43 = vrot.slane %v553_v30, 1  ;;  %v403_v46 = vmax.f32 %v371_v32, 0.0  ;;  %3755 = vmatprep.subr.bf16.mxu1 %v4744_v28  ;;  %v373_v27 = vadd.f32 %v4496_v21, %v336_v42  ;;  %v4349_v30 = vld [vmem:[%s5214_s2 + $0x1a0] sm:$0xff]  }
  0x47   : > { %3904 = vmatmul.mubr.bf16.vlgmr.msra.gmra.mrb[0].mxu0 %v4723_v9  ;;  %3703 = vmatprep.mubr.bf16.mxu1 %v4748_v29  ;;  %v337_v20 = vmul.f32 %v3453_v52, %v4486_v13  ;;  %v1021_v25 = vrot.slane %v4629_v33, 1  ;;  %v1027_v54 = vrot.slane %v4705_v48, 1  ;;  %v1031_v8 = vrot.slane %v4755_v38, 1 }
  0x48   : > { %3932 = vmatpush3.bf16.msra.mxu0 %v4341_v61  ;;  %3907 = vmatprep.mubr.bf16.mxu0 %v4735_v4  ;;  %v404_v53 = vmax.f32 %v372_v39, 0.0  ;;  %v559_v57 = vor.u32 %v557_v31, %v555_v43  ;;  %v4768_v60 = vsel %vm456_vm0, %v551_v34, %v555_v43  ;;  %v563_v61 = vrot.slane %v561_v49, 1  ;;  %v4351_v43 = vld [vmem:[%s5214_s2 + $0x1a8] sm:$0xff]  }
  0x49   : > { %3933 = vmatprep.subr.bf16.mxu0 %v4343_v26  ;;  %v374_v13 = vadd.f32 %v4496_v21, %v337_v20  ;;  %v405_v31 = vmax.f32 %v373_v27, 0.0  ;;  %v1023_v21 = vrot.slane %v4661_v0, 1  ;;  %v4360_v20 = vld [vmem:[%s5214_s2 + $0xa8] sm:$0xff]   ;;  %v4362_v27 = vld [vmem:[%s5214_s2 + $0xb0] sm:$0xff]  }
  0x4a   : > { %v4770_v62 = vpack.c.bf16 %v404_v53, %v403_v46  ;;  %v4780_v10 = vsel %vm456_vm0, %v559_v57, %v563_v61  ;;  %v567_v15 = vor.u32 %v565_v1, %v563_v61  ;;  %v4353_v46 = vld [vmem:[%s5214_s2 + $0x1b0] sm:$0xff]   ;;  %v4355_v53 = vld [vmem:[%s5214_s2 + $0x1b8] sm:$0xff]   ;;  %v1029_v57 = vrot.slane %v4729_v23, 1  ;;  %v4357_v1 = vld [vmem:[%s5214_s2 + $0x1c0] sm:$0xff]  }
  0x4b   : > { %v406_v32 = vmax.f32 %v374_v13, 0.0  ;;  %v4834_v49 = vsel %vm1005_vm1, %v1021_v25, %v1023_v21  ;;  %v4354_v61 = vld [vmem:[%s5214_s2 + $0x90] sm:$0xff]   ;;  %v4366_v13 = vld [vmem:[%s5214_s2 + $0xc0] sm:$0xff]  }
  0x4c   : > { %3934 = vmatpush3.bf16.msra.mxu0 %v4343_v26  ;;  %v569_v12 = vshll.u32 %v4770_v62, 16  ;;  %v1019_v26 = vrot.slane %v4619_v22, 1  ;;  %v4862_v52 = vsel %vm1005_vm1, %v1027_v54, %v1029_v57  ;;  %v4877_v42 = vsel %vm1005_vm1, %v1029_v57, %v1031_v8  ;;  %v4374_v57 = vld [vmem:[%s5214_s2 + $0xe0] sm:$0xff]  }
  0x4d   : > { %3935 = vmatprep.subr.bf16.mxu0 %v4345_v45  ;;  %v4822_v44 = vpack.c.bf16 %v406_v32, %v405_v31  ;;  %v4359_v31 = vld [vmem:[%s5214_s2 + $0x1c8] sm:$0xff]   ;;  %v4361_v32 = vld [vmem:[%s5214_s2 + $0x1d0] sm:$0xff]  }
  0x4e   : > { %3704 = vmatmul.mubr.bf16.gmra.mrb[20].mxu1 %v4768_v60  ;;  %v4793_v16 = vrot.slane %v569_v12, 1  ;;  %v4814_v34 = vsel %vm1005_vm1, %v1017_v51, %v1019_v26  ;;  %v4817_v39 = vsel %vm1005_vm1, %v1019_v26, %v1021_v25  ;;  %v1033_v12 = vrot.slane %v4770_v62, 1 }
  0x4f   : > { %3908 = vmatmul.mubr.bf16.gmra.mrb[4].mxu0 %v4776_v2  ;;  %3707 = vmatprep.mubr.bf16.mxu1 %v4780_v10  ;;  %v1773_v26 = vrot.slane %v4822_v44, 1 }
  0x50   : > { %3911 = vmatprep.mubr.bf16.mxu0 %v4783_v11  ;;  %3936 = vmatpush3.bf16.msra.mxu0 %v4345_v45  ;;  %v4811_v3 = vsel %vm456_vm0, %v567_v15, %v4793_v16  ;;  %v1025_v45 = vrot.slane %v4697_v41, 1  ;;  %v4880_v15 = vsel %vm1005_vm1, %v1031_v8, %v1033_v12  ;;  %v4375_v8 = vld [vmem:[%s5214_s2 + $0x208] sm:$0xff]  }
  0x51   : > { %3937 = vmatprep.subr.bf16.mxu0 %v4348_v14  ;;  %v4896_v25 = vsel %vm1005_vm1, %v1033_v12, %v1773_v26  ;;  %v4385_v12 = vld [vmem:[%s5214_s2 + $0x100] sm:$0xff]  }
  0x52   : > { %v4837_v51 = vsel %vm1005_vm1, %v1023_v21, %v1025_v45  ;;  %v4859_v5 = vsel %vm1005_vm1, %v1025_v45, %v1027_v54  ;;  %v4365_v21 = vld [vmem:[%s5214_s2 + $0x1e0] sm:$0xff]   ;;  %v4367_v45 = vld [vmem:[%s5214_s2 + $0x1e8] sm:$0xff]   ;;  %v4372_v54 = vld [vmem:[%s5214_s2 + $0xd8] sm:$0xff]  }
  0x54   : > { %3938 = vmatpush3.bf16.msra.mxu0 %v4348_v14  ;;  %v4358_v14 = vld [vmem:[%s5214_s2 + $0xa0] sm:$0xff]  }
  0x55   : > { %3939 = vmatprep.subr.bf16.mxu0 %v4349_v30 }
  0x56   : > { %3708 = vmatmul.mubr.bf16.gmra.mrb[24].mxu1 %v4811_v3 }
  0x57   : > { %3912 = vmatmul.mubr.bf16.gmra.mrb[8].mxu0 %v4814_v34  ;;  %3727 = vmatprep.mubr.bf16.mxu1 %v4528_v55  ;;  %v4352_v55 = vld [vmem:[%s5214_s2 + $0x88] sm:$0xff]  }
  0x58   : > { %3915 = vmatprep.mubr.bf16.mxu0 %v4817_v39  ;;  %3940 = vmatpush3.bf16.msra.mxu0 %v4349_v30  ;;  %v4363_v30 = vld [vmem:[%s5214_s2 + $0xb8] sm:$0xff]  }
  0x59   : > { %3941 = vmatprep.subr.bf16.mxu0 %v4351_v43 }
  0x5c   : > { %3942 = vmatpush3.bf16.msra.mxu0 %v4351_v43  ;;  %v4364_v43 = vld [vmem:[%s5214_s2 + $0x1d8] sm:$0xff]  }
  0x5d   : > { %3943 = vmatprep.subr.bf16.mxu0 %v4353_v46 }
  0x5e   : > { %3728 = vmatmul.mubr.bf16.vlgmr.msra.gmra.mrb[0].mxu1 %v4530_v56 }
  0x5f   : > { %3916 = vmatmul.mubr.bf16.gmra.mrb[12].mxu0 %v4834_v49  ;;  %3731 = vmatprep.mubr.bf16.mxu1 %v4532_v59 }
  0x60   : > { %3919 = vmatprep.mubr.bf16.mxu0 %v4837_v51  ;;  %3756 = vmatpush3.bf16.msra.mxu1 %v4744_v28  ;;  %v4356_v28 = vld [vmem:[%s5214_s2 + $0x98] sm:$0xff]  }
  0x61   : > { %3757 = vmatprep.subr.bf16.mxu1 %v4352_v55  ;;  %3944 = vmatpush3.bf16.msra.mxu0 %v4353_v46  ;;  %v4369_v46 = vld [vmem:[%s5214_s2 + $0x1f0] sm:$0xff]  }
  0x62   : > { %3945 = vmatprep.subr.bf16.mxu0 %v4355_v53 }
  0x64   : > { %3758 = vmatpush3.bf16.msra.mxu1 %v4352_v55  ;;  %v4368_v55 = vld [vmem:[%s5214_s2 + $0xc8] sm:$0xff]  }
  0x65   : > { %3759 = vmatprep.subr.bf16.mxu1 %v4354_v61  ;;  %3946 = vmatpush3.bf16.msra.mxu0 %v4355_v53  ;;  %v4370_v53 = vld [vmem:[%s5214_s2 + $0xd0] sm:$0xff]  }
  0x66   : > { %3732 = vmatmul.mubr.bf16.gmra.mrb[4].mxu1 %v4545_v6  ;;  %3975 = vmatprep.subr.bf16.mxu0 %v4357_v1 }
  0x67   : > { %3920 = vmatmul.mubr.bf16.gmra.mrb[16].mxu0 %v4859_v5  ;;  %3735 = vmatprep.mubr.bf16.mxu1 %v4573_v40 }
  0x68   : > { %3923 = vmatprep.mubr.bf16.mxu0 %v4862_v52  ;;  %3760 = vmatpush3.bf16.msra.mxu1 %v4354_v61  ;;  %v4376_v61 = vld [vmem:[%s5214_s2 + $0xe8] sm:$0xff]  }
  0x69   : > { %3761 = vmatprep.subr.bf16.mxu1 %v4356_v28 }
  0x6c   : > { %3762 = vmatpush3.bf16.msra.mxu1 %v4356_v28  ;;  %v4379_v28 = vld [vmem:[%s5214_s2 + $0xf8] sm:$0xff]  }
  0x6d   : > { %3763 = vmatprep.subr.bf16.mxu1 %v4358_v14 }
  0x6e   : > { %3736 = vmatmul.mubr.bf16.gmra.mrb[8].mxu1 %v4581_v50 }
  0x6f   : > { %3924 = vmatmul.mubr.bf16.gmra.mrb[20].mxu0 %v4877_v42  ;;  %3739 = vmatprep.mubr.bf16.mxu1 %v4615_v19 }
  0x70   : > { %3927 = vmatprep.mubr.bf16.mxu0 %v4880_v15  ;;  %3764 = vmatpush3.bf16.msra.mxu1 %v4358_v14  ;;  %v4380_v14 = vld [vmem:[%s5214_s2 + $0x218] sm:$0xff]  }
  0x71   : > { %3765 = vmatprep.subr.bf16.mxu1 %v4360_v20 }
  0x74   : > { %3766 = vmatpush3.bf16.msra.mxu1 %v4360_v20 }
  0x75   : > { %3767 = vmatprep.subr.bf16.mxu1 %v4362_v27 }
  0x76   : > { %3740 = vmatmul.mubr.bf16.gmra.mrb[12].mxu1 %v4619_v22 }
  0x77   : > { %3928 = vmatmul.mubr.bf16.gmra.mrb[24].mxu0 %v4896_v25  ;;  %3743 = vmatprep.mubr.bf16.mxu1 %v4629_v33 }
  0x78   : > { %3947 = vmatprep.mubr.bf16.mxu0 %v4532_v59  ;;  %3768 = vmatpush3.bf16.msra.mxu1 %v4362_v27  ;;  %v4388_v27 = vld [vmem:[%s5214_s2 + $0x118] sm:$0xff]  }
  0x79   : > { %3769 = vmatprep.subr.bf16.mxu1 %v4363_v30 }
  0x7c   : > { %3770 = vmatpush3.bf16.msra.mxu1 %v4363_v30  ;;  %v2252_v30 = vshrl.u32 %v4822_v44, 16 }
  0x7d   : > { %3799 = vmatprep.subr.bf16.mxu1 %v4366_v13 }
  0x7e   : > { %3744 = vmatmul.mubr.bf16.gmra.mrb[16].mxu1 %v4661_v0 }
  0x7f   : > { %3948 = vmatmul.mubr.bf16.vlgmr.msra.gmra.mrb[0].mxu0 %v4545_v6  ;;  %3747 = vmatprep.mubr.bf16.mxu1 %v4697_v41 }
  0x80   : > { %3976 = vmatpush3.bf16.msra.mxu0 %v4357_v1  ;;  %3951 = vmatprep.mubr.bf16.mxu0 %v4573_v40  ;;  %v4378_v1 = vld [vmem:[%s5214_s2 + $0xf0] sm:$0xff]  }
  0x81   : > { %3977 = vmatprep.subr.bf16.mxu0 %v4359_v31 }
  0x84   : > { %3978 = vmatpush3.bf16.msra.mxu0 %v4359_v31 }
  0x85   : > { %3979 = vmatprep.subr.bf16.mxu0 %v4361_v32 }
  0x86   : > { %3748 = vmatmul.mubr.bf16.gmra.mrb[20].mxu1 %v4705_v48 }
  0x87   : > { %3952 = vmatmul.mubr.bf16.gmra.mrb[4].mxu0 %v4581_v50  ;;  %3751 = vmatprep.mubr.bf16.mxu1 %v4729_v23 }
  0x88   : > { %3955 = vmatprep.mubr.bf16.mxu0 %v4615_v19  ;;  %3980 = vmatpush3.bf16.msra.mxu0 %v4361_v32  ;;  %v4390_v32 = vld [vmem:[%s5214_s2 + $0x128] sm:$0xff]  }
  0x89   : > { %3981 = vmatprep.subr.bf16.mxu0 %v4364_v43 }
  0x8c   : > { %3982 = vmatpush3.bf16.msra.mxu0 %v4364_v43 }
  0x8d   : > { %3983 = vmatprep.subr.bf16.mxu0 %v4365_v21 }
  0x8e   : > { %3752 = vmatmul.mubr.bf16.gmra.mrb[24].mxu1 %v4755_v38 }
  0x8f   : > { %3956 = vmatmul.mubr.bf16.gmra.mrb[8].mxu0 %v4619_v22  ;;  %3771 = vmatprep.mubr.bf16.mxu1 %v4799_v24  ;;  %v4371_v24 = vld [vmem:[%s5214_s2 + $0x1f8] sm:$0xff]  }
  0x90   : > { %3959 = vmatprep.mubr.bf16.mxu0 %v4629_v33  ;;  %3984 = vmatpush3.bf16.msra.mxu0 %v4365_v21 }
  0x91   : > { %3985 = vmatprep.subr.bf16.mxu0 %v4367_v45 }
  0x94   : > { %3986 = vmatpush3.bf16.msra.mxu0 %v4367_v45 }
  0x95   : > { %3987 = vmatprep.subr.bf16.mxu0 %v4369_v46 }
  0x96   : > { %3772 = vmatmul.mubr.bf16.vlgmr.msra.gmra.mrb[0].mxu1 %v4694_v37  ;;  %v4373_v37 = vld [vmem:[%s5214_s2 + $0x200] sm:$0xff]  }
  0x97   : > { %3960 = vmatmul.mubr.bf16.gmra.mrb[12].mxu0 %v4661_v0  ;;  %3775 = vmatprep.mubr.bf16.mxu1 %v4723_v9 }
  0x98   : > { %3963 = vmatprep.mubr.bf16.mxu0 %v4697_v41  ;;  %3800 = vmatpush3.bf16.msra.mxu1 %v4366_v13  ;;  %v4401_v13 = vmov 0  }
  0x99   : > { %3801 = vmatprep.subr.bf16.mxu1 %v4368_v55  ;;  %3988 = vmatpush3.bf16.msra.mxu0 %v4369_v46  ;;  %v2258_v31 = vrot.slane %v4401_v13, 1 }
  0x9a   : > { %3989 = vmatprep.subr.bf16.mxu0 %v4371_v24 }
  0x9c   : > { %3802 = vmatpush3.bf16.msra.mxu1 %v4368_v55 }
  0x9d   : > { %3803 = vmatprep.subr.bf16.mxu1 %v4370_v53  ;;  %3990 = vmatpush3.bf16.msra.mxu0 %v4371_v24 }
  0x9e   : > { %3776 = vmatmul.mubr.bf16.gmra.mrb[4].mxu1 %v4735_v4  ;;  %4019 = vmatprep.subr.bf16.mxu0 %v4373_v37 }
  0x9f   : > { %3964 = vmatmul.mubr.bf16.gmra.mrb[16].mxu0 %v4705_v48  ;;  %3779 = vmatprep.mubr.bf16.mxu1 %v4776_v2 }
  0xa0   : > { %3967 = vmatprep.mubr.bf16.mxu0 %v4729_v23  ;;  %3804 = vmatpush3.bf16.msra.mxu1 %v4370_v53 }
  0xa1   : > { %3805 = vmatprep.subr.bf16.mxu1 %v4372_v54 }
  0xa4   : > { %3806 = vmatpush3.bf16.msra.mxu1 %v4372_v54 }
  0xa5   : > { %3807 = vmatprep.subr.bf16.mxu1 %v4374_v57 }
  0xa6   : > { %3780 = vmatmul.mubr.bf16.gmra.mrb[8].mxu1 %v4783_v11 }
  0xa7   : > { %3968 = vmatmul.mubr.bf16.gmra.mrb[20].mxu0 %v4755_v38  ;;  %3783 = vmatprep.mubr.bf16.mxu1 %v4814_v34 }
  0xa8   : > { %3971 = vmatprep.mubr.bf16.mxu0 %v4770_v62  ;;  %3808 = vmatpush3.bf16.msra.mxu1 %v4374_v57 }
  0xa9   : > { %3809 = vmatprep.subr.bf16.mxu1 %v4376_v61 }
  0xac   : > { %3810 = vmatpush3.bf16.msra.mxu1 %v4376_v61 }
  0xad   : > { %3811 = vmatprep.subr.bf16.mxu1 %v4378_v1 }
  0xae   : > { %3784 = vmatmul.mubr.bf16.gmra.mrb[12].mxu1 %v4817_v39 }
  0xaf   : > { %3972 = vmatmul.mubr.bf16.gmra.mrb[24].mxu0 %v4822_v44  ;;  %3787 = vmatprep.mubr.bf16.mxu1 %v4834_v49 }
  0xb0   : > { %3991 = vmatprep.mubr.bf16.mxu0 %v4567_v35  ;;  %3812 = vmatpush3.bf16.msra.mxu1 %v4378_v1  ;;  %v4377_v35 = vld [vmem:[%s5214_s2 + $0x210] sm:$0xff]  }
  0xb1   : > { %3813 = vmatprep.subr.bf16.mxu1 %v4379_v28 }
  0xb4   : > { %3814 = vmatpush3.bf16.msra.mxu1 %v4379_v28 }
  0xb5   : > { %4063 = vmatprep.subr.bf16.mxu1 %v4385_v12 }
  0xb6   : > { %3788 = vmatmul.mubr.bf16.gmra.mrb[16].mxu1 %v4837_v51 }
  0xb7   : > { %3992 = vmatmul.mubr.bf16.vlgmr.msra.gmra.mrb[0].mxu0 %v4600_v7  ;;  %3791 = vmatprep.mubr.bf16.mxu1 %v4859_v5  ;;  %v4381_v7 = vld [vmem:[%s5214_s2 + $0x220] sm:$0xff]  }
  0xb8   : > { %4020 = vmatpush3.bf16.msra.mxu0 %v4373_v37  ;;  %3995 = vmatprep.mubr.bf16.mxu0 %v4613_v18  ;;  %v4382_v18 = vld [vmem:[%s5214_s2 + $0x228] sm:$0xff]  }
  0xb9   : > { %4021 = vmatprep.subr.bf16.mxu0 %v4375_v8 }
  0xbc   : > { %4022 = vmatpush3.bf16.msra.mxu0 %v4375_v8 }
  0xbd   : > { %4023 = vmatprep.subr.bf16.mxu0 %v4377_v35 }
  0xbe   : > { %3792 = vmatmul.mubr.bf16.gmra.mrb[20].mxu1 %v4862_v52 }
  0xbf   : > { %3996 = vmatmul.mubr.bf16.gmra.mrb[4].mxu0 %v4644_v47  ;;  %3795 = vmatprep.mubr.bf16.mxu1 %v4877_v42  ;;  %v4383_v47 = vld [vmem:[%s5214_s2 + $0x230] sm:$0xff]  }
  0xc0   : > { %3999 = vmatprep.mubr.bf16.mxu0 %v4650_v58  ;;  %4024 = vmatpush3.bf16.msra.mxu0 %v4377_v35  ;;  %v4384_v58 = vld [vmem:[%s5214_s2 + $0x238] sm:$0xff]  }
  0xc1   : > { %4025 = vmatprep.subr.bf16.mxu0 %v4380_v14 }
  0xc4   : > { %4026 = vmatpush3.bf16.msra.mxu0 %v4380_v14 }
  0xc5   : > { %4027 = vmatprep.subr.bf16.mxu0 %v4381_v7 }
  0xc6   : > { %3796 = vmatmul.mubr.bf16.gmra.mrb[24].mxu1 %v4880_v15 }
  0xc7   : > { %4000 = vmatmul.mubr.bf16.gmra.mrb[8].mxu0 %v4659_v63  ;;  %3815 = vmatprep.mubr.bf16.mxu1 %v4530_v56  ;;  %v4386_v56 = vld [vmem:[%s5214_s2 + $0x108] sm:$0xff]   ;;  %v1525_v63 = vshrl.u32 %v4770_v62, 16 }
  0xc8   : > { %4003 = vmatprep.mubr.bf16.mxu0 %v4689_v36  ;;  %4028 = vmatpush3.bf16.msra.mxu0 %v4381_v7 }
  0xc9   : > { %4029 = vmatprep.subr.bf16.mxu0 %v4382_v18  ;;  %v1527_v36 = vor.u32 %v1525_v63, %v4793_v16 }
  0xcc   : > { %4030 = vmatpush3.bf16.msra.mxu0 %v4382_v18 }
  0xcd   : > { %4031 = vmatprep.subr.bf16.mxu0 %v4383_v47 }
  0xce   : > { %3816 = vmatmul.mubr.bf16.vlgmr.msra.gmra.mrb[0].mxu1 %v4532_v59  ;;  %v4387_v59 = vld [vmem:[%s5214_s2 + $0x110] sm:$0xff]  }
  0xcf   : > { %4004 = vmatmul.mubr.bf16.gmra.mrb[12].mxu0 %v4727_v17  ;;  %3819 = vmatprep.mubr.bf16.mxu1 %v4545_v6  ;;  %v1529_v6 = vshll.u32 %v4822_v44, 16 }
  0xd0   : > { %4007 = vmatprep.mubr.bf16.mxu0 %v4748_v29  ;;  %4071 = vmatpush3.bf16.msra.mxu1 %v4385_v12 }
  0xd1   : > { %4064 = vmatprep.subr.bf16.mxu1 %v4386_v56  ;;  %4032 = vmatpush3.bf16.msra.mxu0 %v4383_v47  ;;  %v1531_v20 = vrot.slane %v1529_v6, 1 }
  0xd2   : > { %4033 = vmatprep.subr.bf16.mxu0 %v4384_v58 }
  0xd3   : > { %v2254_v16 = vor.u32 %v2252_v30, %v1531_v20 }
  0xd4   : > { %4072 = vmatpush3.bf16.msra.mxu1 %v4386_v56 }
  0xd5   : > { %4065 = vmatprep.subr.bf16.mxu1 %v4387_v59  ;;  %4034 = vmatpush3.bf16.msra.mxu0 %v4384_v58  ;;  %v2259_v43 = vsel %vm456_vm0, %v2254_v16, %v2258_v31 }
  0xd6   : > { %3820 = vmatmul.mubr.bf16.gmra.mrb[4].mxu1 %v4573_v40  ;;  %v1532_v40 = vsel %vm456_vm0, %v1527_v36, %v1531_v20 }
  0xd7   : > { %4008 = vmatmul.mubr.bf16.gmra.mrb[16].mxu0 %v4768_v60  ;;  %3823 = vmatprep.mubr.bf16.mxu1 %v4581_v50  ;;  %v4389_v50 = vld [vmem:[%s5214_s2 + $0x120] sm:$0xff]  }
  0xd8   : > { %4011 = vmatprep.mubr.bf16.mxu0 %v4780_v10  ;;  %4073 = vmatpush3.bf16.msra.mxu1 %v4387_v59 }
  0xd9   : > { %4066 = vmatprep.subr.bf16.mxu1 %v4388_v27 }
  0xdc   : > { %4074 = vmatpush3.bf16.msra.mxu1 %v4388_v27 }
  0xdd   : > { %4067 = vmatprep.subr.bf16.mxu1 %v4389_v50 }
  0xde   : > { %3824 = vmatmul.mubr.bf16.gmra.mrb[8].mxu1 %v4615_v19  ;;  %v4391_v19 = vld [vmem:[%s5214_s2 + $0x130] sm:$0xff]  }
  0xdf   : > { %4012 = vmatmul.mubr.bf16.gmra.mrb[20].mxu0 %v4811_v3  ;;  %3827 = vmatprep.mubr.bf16.mxu1 %v4619_v22  ;;  %v4392_v22 = vld [vmem:[%s5214_s2 + $0x138] sm:$0xff]  }
  0xe0   : > { %4015 = vmatprep.mubr.bf16.mxu0 %v1532_v40  ;;  %4075 = vmatpush3.bf16.msra.mxu1 %v4389_v50 }
  0xe1   : > { %4068 = vmatprep.subr.bf16.mxu1 %v4390_v32 }
  0xe4   : > { %4076 = vmatpush3.bf16.msra.mxu1 %v4390_v32 }
  0xe5   : > { %4069 = vmatprep.subr.bf16.mxu1 %v4391_v19 }
  0xe6   : > { %3828 = vmatmul.mubr.bf16.gmra.mrb[12].mxu1 %v4629_v33  ;;  %v2501_v33 = vsel %vm1005_vm1, %v1773_v26, %v2258_v31 }
  0xe7   : > { %4016 = vmatmul.mubr.bf16.gmra.mrb[24].mxu0 %v2259_v43  ;;  %3831 = vmatprep.mubr.bf16.mxu1 %v4661_v0 }
  0xe8   : > { %4035 = vmatprep.mubr.bf16.mxu0 %v4723_v9  ;;  %4077 = vmatpush3.bf16.msra.mxu1 %v4391_v19 }
  0xe9   : > { %4070 = vmatprep.subr.bf16.mxu1 %v4392_v22 }
  0xec   : > { %4078 = vmatpush3.bf16.msra.mxu1 %v4392_v22 }
  0xee   : > { %3832 = vmatmul.mubr.bf16.gmra.mrb[16].mxu1 %v4697_v41 }
  0xef   : > { %4036 = vmatmul.mubr.bf16.vlgmr.msra.gmra.mrb[0].mxu0 %v4735_v4  ;;  %3835 = vmatprep.mubr.bf16.mxu1 %v4705_v48 }
  0xf0   : > { %4039 = vmatprep.mubr.bf16.mxu0 %v4776_v2 }
  0xf6   : > { %3836 = vmatmul.mubr.bf16.gmra.mrb[20].mxu1 %v4729_v23 }
  0xf7   : > { %4040 = vmatmul.mubr.bf16.gmra.mrb[4].mxu0 %v4783_v11  ;;  %3839 = vmatprep.mubr.bf16.mxu1 %v4755_v38 }
  0xf8   : > { %4043 = vmatprep.mubr.bf16.mxu0 %v4814_v34  ;;  %v2759_v34 = vlaneseq }
  0xfa   : > { %v2760_v44 = vshrl.u32 %v2759_v34, 7 }
  0xfe   : > { %3840 = vmatmul.mubr.bf16.gmra.mrb[24].mxu1 %v4770_v62 }
  0xff   : > { %4044 = vmatmul.mubr.bf16.gmra.mrb[8].mxu0 %v4817_v39  ;;  %3875 = vmatprep.mubr.bf16.mxu1 %v4727_v17 }
 0x100   : > { %4047 = vmatprep.mubr.bf16.mxu0 %v4834_v49 }
 0x106   : > { %3876 = vmatmul.mubr.bf16.vlgmr.msra.gmra.mrb[16].mxu1 %v4748_v29 }
 0x107   : > { %4048 = vmatmul.mubr.bf16.gmra.mrb[12].mxu0 %v4837_v51  ;;  %3879 = vmatprep.mubr.bf16.mxu1 %v4768_v60  ;;  %v5103_v51 = vld [vmem:[%s5215_s3] ss:$0 sm:$0xff] }
 0x108   : > { %4051 = vmatprep.mubr.bf16.mxu0 %v4859_v5 }
 0x10e   : > { %3880 = vmatmul.mubr.bf16.gmra.mrb[20].mxu1 %v4780_v10 }
 0x10f   : > { %4052 = vmatmul.mubr.bf16.gmra.mrb[16].mxu0 %v4862_v52  ;;  %3883 = vmatprep.mubr.bf16.mxu1 %v4811_v3 }
 0x110   : > { %4055 = vmatprep.mubr.bf16.mxu0 %v4877_v42  ;;  %v5105_v42 = vadd.s32 8, %v2760_v44 }
 0x112   : > { %vm2763_vm2 = vcmp.lt.s32.totalorder %v5105_v42, 14 }
 0x116   : > { %3884 = vmatmul.mubr.bf16.gmra.mrb[24].mxu1 %v1532_v40 }
 0x117   : > { %4056 = vmatmul.mubr.bf16.gmra.mrb[20].mxu0 %v4880_v15 }
 0x118   : > { %4059 = vmatprep.mubr.bf16.mxu0 %v4896_v25 }
 0x11f   : > { %4060 = vmatmul.mubr.bf16.gmra.mrb[24].mxu0 %v2501_v33 }
 0x1a1   : > { %v3817_v0 = vpop.f32.mrb[0].mxu1 }
 0x1a2   : > { %v1369_v41 = vpop.f32.mrb[1].mxu1 }
 0x1a3   : > { %v3818_v48 = vpop.f32.mrb[2].mxu1 }
 0x1a4   : > { %v1372_v9 = vpop.f32.mrb[3].mxu1 }
 0x1a9   : > { %v3821_v17 = vpop.f32.mrb[4].mxu1 }
 0x1aa   : > { %v1385_v23 = vpop.f32.mrb[5].mxu1 }
 0x1ab   : > { %v3822_v4 = vpop.f32.mrb[6].mxu1 }
 0x1ac   : > { %v1388_v29 = vpop.f32.mrb[7].mxu1 }
 0x1b1   : > { %v5083_v38 = vpop.f32.mrb[8].mxu1 }
 0x1b2   : > { %v5085_v60 = vpop.f32.mrb[9].mxu1 }
 0x1b3   : > { %v5087_v62 = vpop.f32.mrb[10].mxu1 }
 0x1b4   : > { %v5089_v2 = vpop.f32.mrb[11].mxu1 }
 0x1b9   : > { %v5091_v10 = vpop.f32.mrb[12].mxu1 }
 0x1ba   : > { %v5093_v11 = vpop.f32.mrb[13].mxu1 }
 0x1bb   : > { %v5095_v3 = vpop.f32.mrb[14].mxu1 }
 0x1bc   : > { %v5097_v39 = vpop.f32.mrb[15].mxu1 }
 0x1c2   : > { %v4037_v49 = vpop.f32.mrb[0].mxu0 }
 0x1c3   : > { %v4079_v5 = vadd.f32 %v4037_v49, %v3817_v0  ;;  %v2585_v52 = vpop.f32.mrb[1].mxu0 }
 0x1c4   : > { %v4080_v15 = vadd.f32 %v2585_v52, %v1369_v41  ;;  %v4038_v26 = vpop.f32.mrb[2].mxu0 }
 0x1c5   : > { %v2733_v25 = vadd.f32 %v4079_v5, %v5103_v51  ;;  %v4081_v21 = vadd.f32 %v4038_v26, %v3818_v48  ;;  %v2588_v45 = vpop.f32.mrb[3].mxu0 }
 0x1c6   : > { %v2731_v46 = vadd.f32 %v4080_v15, %v5103_v51  ;;  %v4082_v55 = vadd.f32 %v2588_v45, %v1372_v9 }
 0x1c7   : > { %v3364_v24 = vpack.c.bf16 %v2733_v25, %v2733_v25  ;;  %v2734_v53 = vadd.f32 %v4081_v21, %v5103_v51  ;;  %v2831_v18 = vmul.f32 %v2733_v25, %v2733_v25 }
 0x1c8   : > { %v3362_v37 = vpack.c.bf16 %v2731_v46, %v2731_v46  ;;  %v2732_v54 = vadd.f32 %v4082_v55, %v5103_v51  ;;  %v2829_v8 = vmul.f32 %v2731_v46, %v2731_v46 }
 0x1c9   : > { %3007 = vst [vmem:[%s5111_s8 + $0x8] sm:$0xf] %v3364_v24  ;;  %v3365_v57 = vpack.c.bf16 %v2734_v53, %v2734_v53  ;;  %v2771_v47 = vsel %vm2763_vm2, %v2734_v53, 0.0 }
 0x1ca   : > { %3005 = vst [vmem:[%s5111_s8] sm:$0xf] %v3362_v37  ;;  %v2769_v61 = vsel %vm2763_vm2, %v2732_v54, 0.0  ;;  %v3363_v1 = vpack.c.bf16 %v2732_v54, %v2732_v54  ;;  %v4041_v28 = vpop.f32.mrb[4].mxu0  ;;  %v2832_v40 = vmul.f32 %v2771_v47, %v2771_v47 }
 0x1cb   : > { %3008 = vst [vmem:[%s5111_s8 + $0xc] sm:$0x7] %v3365_v57  ;;  %v2796_v12 = vadd.f32 %v2769_v61, %v2731_v46  ;;  %v2830_v35 = vmul.f32 %v2769_v61, %v2769_v61  ;;  %v4083_v14 = vadd.f32 %v4041_v28, %v3821_v17  ;;  %v2601_v7 = vpop.f32.mrb[5].mxu0 }
 0x1cc   : > { %3006 = vst [vmem:[%s5111_s8 + $0x4] sm:$0x7] %v3363_v1  ;;  %v4084_v58 = vadd.f32 %v2601_v7, %v1385_v23  ;;  %v4042_v56 = vpop.f32.mrb[6].mxu0 }
 0x1cd   : > { %v2797_v59 = vadd.f32 %v2796_v12, %v2733_v25  ;;  %v2857_v63 = vadd.f32 %v2830_v35, %v2829_v8  ;;  %v2737_v6 = vadd.f32 %v4083_v14, %v5103_v51  ;;  %v4085_v36 = vadd.f32 %v4042_v56, %v3822_v4  ;;  %v2604_v20 = vpop.f32.mrb[7].mxu0 }
 0x1ce   : > { %v2735_v27 = vadd.f32 %v4084_v58, %v5103_v51  ;;  %v4086_v30 = vadd.f32 %v2604_v20, %v1388_v29 }
 0x1cf   : > { %v2858_v50 = vadd.f32 %v2857_v63, %v2831_v18  ;;  %v3368_v16 = vpack.c.bf16 %v2737_v6, %v2737_v6  ;;  %v2798_v13 = vadd.f32 %v2797_v59, %v2771_v47  ;;  %v2738_v43 = vadd.f32 %v4085_v36, %v5103_v51 }
 0x1d0   : > { %v2833_v31 = vmul.f32 %v2735_v27, %v2735_v27  ;;  %v3366_v32 = vpack.c.bf16 %v2735_v27, %v2735_v27  ;;  %v2736_v19 = vadd.f32 %v4086_v30, %v5103_v51  ;;  %v2835_v52 = vmul.f32 %v2737_v6, %v2737_v6 }
 0x1d1   : > { %3011 = vst [vmem:[%s5111_s8 + $0x18] sm:$0xf] %v3368_v16  ;;  %v2799_v22 = vadd.f32 %v2798_v13, %v2735_v27  ;;  %v2859_v33 = vadd.f32 %v2858_v50, %v2832_v40  ;;  %v3369_v0 = vpack.c.bf16 %v2738_v43, %v2738_v43  ;;  %v2775_v34 = vsel %vm2763_vm2, %v2738_v43, 0.0 }
 0x1d2   : > { %3009 = vst [vmem:[%s5111_s8 + $0x10] sm:$0xf] %v3366_v32  ;;  %v2773_v41 = vsel %vm2763_vm2, %v2736_v19, 0.0  ;;  %v3367_v48 = vpack.c.bf16 %v2736_v19, %v2736_v19  ;;  %v4045_v9 = vpop.f32.mrb[8].mxu0  ;;  %v2836_v24 = vmul.f32 %v2775_v34, %v2775_v34 }
 0x1d3   : > { %v2860_v17 = vadd.f32 %v2859_v33, %v2833_v31  ;;  %v2800_v23 = vadd.f32 %v2799_v22, %v2773_v41  ;;  %v2834_v4 = vmul.f32 %v2773_v41, %v2773_v41  ;;  %v2617_v29 = vpop.f32.mrb[9].mxu0  ;;  %3012 = vst [vmem:[%s5111_s8 + $0x1c] sm:$0x7] %v3369_v0  ;;  %v4087_v44 = vadd.f32 %v4045_v9, %v5083_v38 }
 0x1d4   : > { %3010 = vst [vmem:[%s5111_s8 + $0x14] sm:$0x7] %v3367_v48  ;;  %v4088_v49 = vadd.f32 %v2617_v29, %v5085_v60  ;;  %v4046_v5 = vpop.f32.mrb[10].mxu0 }
 0x1d5   : > { %v2801_v15 = vadd.f32 %v2800_v23, %v2737_v6  ;;  %v2861_v26 = vadd.f32 %v2860_v17, %v2834_v4  ;;  %v4089_v25 = vadd.f32 %v4046_v5, %v5087_v62  ;;  %v2620_v21 = vpop.f32.mrb[11].mxu0  ;;  %v2741_v45 = vadd.f32 %v4087_v44, %v5103_v51 }
 0x1d6   : > { %v2739_v46 = vadd.f32 %v4088_v49, %v5103_v51  ;;  %v4090_v55 = vadd.f32 %v2620_v21, %v5089_v2 }
 0x1d7   : > { %v2862_v53 = vadd.f32 %v2861_v26, %v2835_v52  ;;  %v2802_v38 = vadd.f32 %v2801_v15, %v2775_v34  ;;  %v2742_v60 = vadd.f32 %v4089_v25, %v5103_v51  ;;  %v3372_v37 = vpack.c.bf16 %v2741_v45, %v2741_v45 }
 0x1d8   : > { %v2837_v54 = vmul.f32 %v2739_v46, %v2739_v46  ;;  %v3370_v57 = vpack.c.bf16 %v2739_v46, %v2739_v46  ;;  %v2740_v8 = vadd.f32 %v4090_v55, %v5103_v51 }
 0x1d9   : > { %v2803_v61 = vadd.f32 %v2802_v38, %v2739_v46  ;;  %v2863_v62 = vadd.f32 %v2862_v53, %v2836_v24  ;;  %v3373_v1 = vpack.c.bf16 %v2742_v60, %v2742_v60  ;;  %v3877_v28 = vpop.f32.mrb[16].mxu1  ;;  %3015 = vst [vmem:[%s5111_s8 + $0x28] sm:$0xf] %v3372_v37 }
 0x1da   : > { %3013 = vst [vmem:[%s5111_s8 + $0x20] sm:$0xf] %v3370_v57  ;;  %v4049_v12 = vpop.f32.mrb[12].mxu0  ;;  %v1680_v35 = vpop.f32.mrb[17].mxu1  ;;  %v2777_v47 = vsel %vm2763_vm2, %v2740_v8, 0.0  ;;  %v3371_v58 = vpack.c.bf16 %v2740_v8, %v2740_v8 }
 0x1db   : > { %v2864_v2 = vadd.f32 %v2863_v62, %v2837_v54  ;;  %3016 = vst [vmem:[%s5111_s8 + $0x2c] sm:$0x7] %v3373_v1  ;;  %v4091_v14 = vadd.f32 %v4049_v12, %v5091_v10  ;;  %v2633_v7 = vpop.f32.mrb[13].mxu0  ;;  %v3878_v18 = vpop.f32.mrb[18].mxu1  ;;  %v2804_v6 = vadd.f32 %v2803_v61, %v2777_v47  ;;  %v2838_v36 = vmul.f32 %v2777_v47, %v2777_v47 }
 0x1dc   : > { %v4092_v56 = vadd.f32 %v2633_v7, %v5093_v11  ;;  %v4050_v59 = vpop.f32.mrb[14].mxu0  ;;  %v1683_v63 = vpop.f32.mrb[19].mxu1  ;;  %v2779_v10 = vsel %vm2763_vm2, %v2742_v60, 0.0  ;;  %3014 = vst [vmem:[%s5111_s8 + $0x24] sm:$0x7] %v3371_v58  ;;  %v2839_v11 = vmul.f32 %v2741_v45, %v2741_v45 }
 0x1dd   : > { %v2745_v20 = vadd.f32 %v4091_v14, %v5103_v51  ;;  %v4093_v27 = vadd.f32 %v4050_v59, %v5095_v3  ;;  %v2636_v30 = vpop.f32.mrb[15].mxu0  ;;  %v2805_v16 = vadd.f32 %v2804_v6, %v2741_v45  ;;  %v2865_v13 = vadd.f32 %v2864_v2, %v2838_v36 }
 0x1de   : > { %v2743_v40 = vadd.f32 %v4092_v56, %v5103_v51  ;;  %v4094_v50 = vadd.f32 %v2636_v30, %v5097_v39  ;;  %v2840_v3 = vmul.f32 %v2779_v10, %v2779_v10 }
 0x1df   : > { %v3376_v31 = vpack.c.bf16 %v2745_v20, %v2745_v20  ;;  %v2746_v43 = vadd.f32 %v4093_v27, %v5103_v51  ;;  %v2866_v22 = vadd.f32 %v2865_v13, %v2839_v11  ;;  %v2806_v33 = vadd.f32 %v2805_v16, %v2779_v10 }
 0x1e0   : > { %v3374_v32 = vpack.c.bf16 %v2743_v40, %v2743_v40  ;;  %v2744_v19 = vadd.f32 %v4094_v50, %v5103_v51  ;;  %v2841_v0 = vmul.f32 %v2743_v40, %v2743_v40  ;;  %v2843_v60 = vmul.f32 %v2745_v20, %v2745_v20 }
 0x1e1   : > { %3019 = vst [vmem:[%s5111_s8 + $0x38] sm:$0xf] %v3376_v31  ;;  %v3881_v41 = vpop.f32.mrb[20].mxu1  ;;  %v3377_v48 = vpack.c.bf16 %v2746_v43, %v2746_v43  ;;  %v2807_v4 = vadd.f32 %v2806_v33, %v2743_v40  ;;  %v2867_v29 = vadd.f32 %v2866_v22, %v2840_v3  ;;  %v2783_v21 = vsel %vm2763_vm2, %v2746_v43, 0.0 }
 0x1e2   : > { %3017 = vst [vmem:[%s5111_s8 + $0x30] sm:$0xf] %v3374_v32  ;;  %v2781_v39 = vsel %vm2763_vm2, %v2744_v19, 0.0  ;;  %v3375_v9 = vpack.c.bf16 %v2744_v19, %v2744_v19  ;;  %v4053_v17 = vpop.f32.mrb[16].mxu0  ;;  %v1696_v23 = vpop.f32.mrb[21].mxu1  ;;  %v2844_v61 = vmul.f32 %v2783_v21, %v2783_v21 }
 0x1e3   : > { %v2842_v34 = vmul.f32 %v2781_v39, %v2781_v39  ;;  %v2649_v44 = vpop.f32.mrb[17].mxu0  ;;  %v3882_v49 = vpop.f32.mrb[22].mxu1  ;;  %3020 = vst [vmem:[%s5111_s8 + $0x3c] sm:$0x7] %v3377_v48  ;;  %v4095_v5 = vadd.f32 %v4053_v17, %v3877_v28  ;;  %v2868_v25 = vadd.f32 %v2867_v29, %v2841_v0  ;;  %v2808_v45 = vadd.f32 %v2807_v4, %v2781_v39 }
 0x1e4   : > { %3018 = vst [vmem:[%s5111_s8 + $0x34] sm:$0x7] %v3375_v9  ;;  %v4096_v52 = vadd.f32 %v2649_v44, %v1680_v35  ;;  %v4054_v15 = vpop.f32.mrb[18].mxu0  ;;  %v1699_v26 = vpop.f32.mrb[23].mxu1 }
 0x1e5   : > { %v4097_v46 = vadd.f32 %v4054_v15, %v3878_v18  ;;  %v2652_v55 = vpop.f32.mrb[19].mxu0  ;;  %v2749_v24 = vadd.f32 %v4095_v5, %v5103_v51  ;;  %v2809_v37 = vadd.f32 %v2808_v45, %v2745_v20  ;;  %v2869_v54 = vadd.f32 %v2868_v25, %v2842_v34 }
 0x1e6   : > { %v2747_v53 = vadd.f32 %v4096_v52, %v5103_v51  ;;  %v4098_v38 = vadd.f32 %v2652_v55, %v1683_v63 }
 0x1e7   : > { %v2750_v57 = vadd.f32 %v4097_v46, %v5103_v51  ;;  %v3380_v62 = vpack.c.bf16 %v2749_v24, %v2749_v24  ;;  %v2870_v28 = vadd.f32 %v2869_v54, %v2843_v60  ;;  %v2810_v8 = vadd.f32 %v2809_v37, %v2783_v21 }
 0x1e8   : > { %v3378_v1 = vpack.c.bf16 %v2747_v53, %v2747_v53  ;;  %v2845_v12 = vmul.f32 %v2747_v53, %v2747_v53  ;;  %v2748_v14 = vadd.f32 %v4098_v38, %v5103_v51  ;;  %v2847_v19 = vmul.f32 %v2749_v24, %v2749_v24 }
 0x1e9   : > { %v3381_v35 = vpack.c.bf16 %v2750_v57, %v2750_v57  ;;  %v3885_v2 = vpop.f32.mrb[24].mxu1  ;;  %3023 = vst [vmem:[%s5111_s8 + $0x48] sm:$0xf] %v3380_v62  ;;  %v2811_v47 = vadd.f32 %v2810_v8, %v2747_v53  ;;  %v2871_v58 = vadd.f32 %v2870_v28, %v2844_v61  ;;  %v2787_v13 = vsel %vm2763_vm2, %v2750_v57, 0.0 }
 0x1ea   : > { %3021 = vst [vmem:[%s5111_s8 + $0x40] sm:$0xf] %v3378_v1  ;;  %v4057_v7 = vpop.f32.mrb[20].mxu0  ;;  %v1712_v18 = vpop.f32.mrb[25].mxu1  ;;  %v2785_v6 = vsel %vm2763_vm2, %v2748_v14, 0.0  ;;  %v3379_v36 = vpack.c.bf16 %v2748_v14, %v2748_v14  ;;  %v2848_v39 = vmul.f32 %v2787_v13, %v2787_v13 }
 0x1eb   : > { %3024 = vst [vmem:[%s5111_s8 + $0x4c] sm:$0x7] %v3381_v35  ;;  %v4099_v56 = vadd.f32 %v4057_v7, %v3881_v41  ;;  %v2665_v59 = vpop.f32.mrb[21].mxu0  ;;  %v3886_v63 = vpop.f32.mrb[26].mxu1  ;;  %v2872_v10 = vadd.f32 %v2871_v58, %v2845_v12  ;;  %v2812_v40 = vadd.f32 %v2811_v47, %v2785_v6  ;;  %v2846_v50 = vmul.f32 %v2785_v6, %v2785_v6 }
 0x1ec   : > { %v4100_v20 = vadd.f32 %v2665_v59, %v1696_v23  ;;  %v4058_v27 = vpop.f32.mrb[22].mxu0  ;;  %v1715_v30 = vpop.f32.mrb[27].mxu1  ;;  %3022 = vst [vmem:[%s5111_s8 + $0x44] sm:$0x7] %v3379_v36 }
 0x1ed   : > { %v2753_v11 = vadd.f32 %v4099_v56, %v5103_v51  ;;  %v2668_v16 = vpop.f32.mrb[23].mxu0  ;;  %v4101_v32 = vadd.f32 %v4058_v27, %v3882_v49  ;;  %v2813_v3 = vadd.f32 %v2812_v40, %v2749_v24  ;;  %v2873_v22 = vadd.f32 %v2872_v10, %v2846_v50 }
 0x1ee   : > { %v2751_v31 = vadd.f32 %v4100_v20, %v5103_v51  ;;  %v4102_v43 = vadd.f32 %v2668_v16, %v1699_v26 }
 0x1ef   : > { %v3384_v33 = vpack.c.bf16 %v2753_v11, %v2753_v11  ;;  %v2754_v41 = vadd.f32 %v4101_v32, %v5103_v51  ;;  %v2874_v9 = vadd.f32 %v2873_v22, %v2847_v19  ;;  %v2814_v17 = vadd.f32 %v2813_v3, %v2787_v13 }
 0x1f0   : > { %v3382_v0 = vpack.c.bf16 %v2751_v31, %v2751_v31  ;;  %v2752_v48 = vadd.f32 %v4102_v43, %v5103_v51  ;;  %v2849_v23 = vmul.f32 %v2751_v31, %v2751_v31  ;;  %v2851_v54 = vmul.f32 %v2753_v11, %v2753_v11 }
 0x1f1   : > { %3027 = vst [vmem:[%s5111_s8 + $0x58] sm:$0xf] %v3384_v33  ;;  %v3385_v4 = vpack.c.bf16 %v2754_v41, %v2754_v41  ;;  %v2815_v49 = vadd.f32 %v2814_v17, %v2751_v31  ;;  %v2875_v5 = vadd.f32 %v2874_v9, %v2848_v39  ;;  %v2791_v46 = vsel %vm2763_vm2, %v2754_v41, 0.0 }
 0x1f2   : > { %3025 = vst [vmem:[%s5111_s8 + $0x50] sm:$0xf] %v3382_v0  ;;  %v2789_v29 = vsel %vm2763_vm2, %v2752_v48, 0.0  ;;  %v3383_v34 = vpack.c.bf16 %v2752_v48, %v2752_v48  ;;  %v4061_v44 = vpop.f32.mrb[24].mxu0  ;;  %v2852_v1 = vmul.f32 %v2791_v46, %v2791_v46 }
 0x1f3   : > { %v2850_v52 = vmul.f32 %v2789_v29, %v2789_v29  ;;  %v2681_v15 = vpop.f32.mrb[25].mxu0  ;;  %3028 = vst [vmem:[%s5111_s8 + $0x5c] sm:$0x7] %v3385_v4  ;;  %v4103_v26 = vadd.f32 %v4061_v44, %v3885_v2  ;;  %v2876_v45 = vadd.f32 %v2875_v5, %v2849_v23  ;;  %v2816_v55 = vadd.f32 %v2815_v49, %v2789_v29 }
 0x1f4   : > { %3026 = vst [vmem:[%s5111_s8 + $0x54] sm:$0x7] %v3383_v34  ;;  %v4104_v25 = vadd.f32 %v2681_v15, %v1712_v18  ;;  %v4062_v21 = vpop.f32.mrb[26].mxu0 }
 0x1f5   : > { %v4105_v24 = vadd.f32 %v4062_v21, %v3886_v63  ;;  %v2684_v53 = vpop.f32.mrb[27].mxu0  ;;  %v2757_v38 = vadd.f32 %v4103_v26, %v5103_v51  ;;  %v2817_v57 = vadd.f32 %v2816_v55, %v2753_v11  ;;  %v2877_v61 = vadd.f32 %v2876_v45, %v2850_v52 }
 0x1f6   : > { %v2755_v60 = vadd.f32 %v4104_v25, %v5103_v51  ;;  %v4106_v37 = vadd.f32 %v2684_v53, %v1715_v30 }
 0x1f7   : > { %v2758_v62 = vadd.f32 %v4105_v24, %v5103_v51  ;;  %v3388_v28 = vpack.c.bf16 %v2757_v38, %v2757_v38  ;;  %v2878_v12 = vadd.f32 %v2877_v61, %v2851_v54  ;;  %v2818_v35 = vadd.f32 %v2817_v57, %v2791_v46 }
 0x1f8   : > { %v3386_v8 = vpack.c.bf16 %v2755_v60, %v2755_v60  ;;  %v2853_v2 = vmul.f32 %v2755_v60, %v2755_v60  ;;  %v2756_v7 = vadd.f32 %v4106_v37, %v5103_v51  ;;  %v2855_v20 = vmul.f32 %v2757_v38, %v2757_v38 }
 0x1f9   : > { %v3389_v14 = vpack.c.bf16 %v2758_v62, %v2758_v62  ;;  %3031 = vst [vmem:[%s5111_s8 + $0x68] sm:$0xf] %v3388_v28  ;;  %v2819_v18 = vadd.f32 %v2818_v35, %v2755_v60  ;;  %v2879_v47 = vadd.f32 %v2878_v12, %v2852_v1  ;;  %v2795_v36 = vsel %vm2763_vm2, %v2758_v62, 0.0 }
 0x1fa   : > { %3029 = vst [vmem:[%s5111_s8 + $0x60] sm:$0xf] %v3386_v8  ;;  %v2793_v58 = vsel %vm2763_vm2, %v2756_v7, 0.0  ;;  %v3387_v56 = vpack.c.bf16 %v2756_v7, %v2756_v7  ;;  %v2856_v10 = vmul.f32 %v2795_v36, %v2795_v36 }
 0x1fb   : > { %3032 = vst [vmem:[%s5111_s8 + $0x6c] sm:$0x7] %v3389_v14  ;;  %v2880_v59 = vadd.f32 %v2879_v47, %v2853_v2  ;;  %v2820_v63 = vadd.f32 %v2819_v18, %v2793_v58  ;;  %v2854_v6 = vmul.f32 %v2793_v58, %v2793_v58 }
 0x1fc   : > { %3030 = vst [vmem:[%s5111_s8 + $0x64] sm:$0x7] %v3387_v56 }
 0x1fd   : > { %v2821_v27 = vadd.f32 %v2820_v63, %v2757_v38  ;;  %v2881_v30 = vadd.f32 %v2880_v59, %v2854_v6 }
 0x1ff   : > { %v2822_v51 = vadd.f32 %v2821_v27, %v2795_v36  ;;  %v2882_v40 = vadd.f32 %v2881_v30, %v2855_v20 }
 0x201   : > { %v2823_v50 = vrot.slane %v2822_v51, 4  ;;  %v2883_v11 = vadd.f32 %v2882_v40, %v2856_v10 }
 0x203   : > { %v2824_v16 = vadd.f32 %v2823_v50, %v2822_v51  ;;  %v2884_v13 = vrot.slane %v2883_v11, 4 }
 0x205   : > { %v2825_v31 = vrot.slane %v2824_v16, 2  ;;  %v2885_v32 = vadd.f32 %v2884_v13, %v2883_v11 }
 0x207   : > { %v2826_v43 = vadd.f32 %v2825_v31, %v2824_v16  ;;  %v2886_v19 = vrot.slane %v2885_v32, 2 }
 0x209   : > { %v2827_v3 = vrot.slane %v2826_v43, 1  ;;  %v2887_v22 = vadd.f32 %v2886_v19, %v2885_v32 }
 0x20b   : > { %v2888_v42 = vrot.slane %v2887_v22, 1  ;;  %v2828_v33 = vadd.f32 %v2827_v3, %v2826_v43 }
 0x20d   : > { %v2889_v0 = vadd.f32 %v2888_v42, %v2887_v22 }
 0x20f   : > { %v2891_v41 = vsel %vm2890_vm3, %v2828_v33, %v2889_v0 }
 0x210   : > { %2892 = vst [vmem:[%s235_s12] sm:$0x3] %v2891_v41 }
 0x211 PF: > { %s16_s18 = sadd.s32 1, %s4399_s18  }
 0x212   : > { %p13_p4 = scmp.ge.s32.totalorder %s16_s18, 4  }
 0x214   :  { %15 = sbr.rel (!%p13_p4) target bundleno = 1 (0x1), region = 86 }

// kernel: bottleneck_forward.5
= control target key start
LH: loop header
LB: loop body
LE: loop exit
PB: predicated region body
PF: predicated region fallthrough
CT: control target
= control target key end

     0   :  { %vm1215_vm0 = vcmask 1040384   ;;  %s2517_s1 = inlined_call_operand.vmem [shape: f32[2,128], index: 1, kind: input, shape index: {}]   ;;  %s2518_s2 = inlined_call_operand.vmem [shape: bf16[128,128], index: 2, kind: input, shape index: {}]   ;;  %s2519_s0 = inlined_call_operand.vmem [shape: bf16[512,128], index: 0, kind: input, shape index: {}]   ;;  %s2520_s3 = inlined_call_operand.vmem [shape: bf16[512,128], index: 3, kind: output, shape index: {0}]   ;;  %s2521_s4 = inlined_call_operand.vmem [shape: f32[1,2,128], index: 4, kind: output, shape index: {1}]  }
   0x1   :  { %v2041_v0 = vld [vmem:[%s2518_s2] sm:$0xff]   ;;  %v2042_v1 = vld [vmem:[%s2518_s2 + $0x8] sm:$0xff]   ;;  %v2043_v2 = vld [vmem:[%s2518_s2 + $0x10] sm:$0xff]  }
   0x2   :  { %1945 = vmatprep.subr.bf16.mxu0 %v2041_v0  ;;  %2025 = vmatprep.subr.bf16.mxu1 %v2041_v0  ;;  %v2044_v3 = vld [vmem:[%s2518_s2 + $0x18] sm:$0xff]   ;;  %v2049_v4 = vld [vmem:[%s2519_s0] sm:$0xff]   ;;  %v2046_v6 = vld [vmem:[%s2518_s2 + $0x28] sm:$0xff]  }
   0x3   :  { %1946 = vmatpush3.bf16.msra.mxu0 %v2041_v0  ;;  %2033 = vmatpush3.bf16.msra.mxu1 %v2041_v0  ;;  %v2045_v5 = vld [vmem:[%s2518_s2 + $0x20] sm:$0xff]   ;;  %v2047_v7 = vld [vmem:[%s2518_s2 + $0x30] sm:$0xff]   ;;  %v2048_v8 = vld [vmem:[%s2518_s2 + $0x38] sm:$0xff]  }
   0x4   :  { %1947 = vmatprep.subr.bf16.mxu0 %v2042_v1  ;;  %2026 = vmatprep.subr.bf16.mxu1 %v2042_v1  ;;  %v2065_v9 = vld [vmem:[%s2519_s0 + $0x80] sm:$0xff]   ;;  %v2050_v10 = vld [vmem:[%s2519_s0 + $0x8] sm:$0xff]   ;;  %v2051_v11 = vld [vmem:[%s2519_s0 + $0x10] sm:$0xff]  }
   0x5   :  { %1961 = vmatprep.mubr.bf16.mxu0 %v2049_v4  ;;  %1993 = vmatprep.mubr.bf16.mxu1 %v2065_v9  ;;  %v2066_v12 = vld [vmem:[%s2519_s0 + $0x88] sm:$0xff]   ;;  %v2067_v13 = vld [vmem:[%s2519_s0 + $0x90] sm:$0xff]   ;;  %v2052_v14 = vld [vmem:[%s2519_s0 + $0x18] sm:$0xff]  }
   0x6   :  { %v2053_v15 = vld [vmem:[%s2519_s0 + $0x20] sm:$0xff]   ;;  %v2068_v16 = vld [vmem:[%s2519_s0 + $0x98] sm:$0xff]   ;;  %v2054_v18 = vld [vmem:[%s2519_s0 + $0x28] sm:$0xff]  }
   0x7   :  { %1948 = vmatpush3.bf16.msra.mxu0 %v2042_v1  ;;  %2034 = vmatpush3.bf16.msra.mxu1 %v2042_v1  ;;  %v2069_v17 = vld [vmem:[%s2519_s0 + $0xa0] sm:$0xff]   ;;  %v2070_v19 = vld [vmem:[%s2519_s0 + $0xa8] sm:$0xff]   ;;  %v2055_v20 = vld [vmem:[%s2519_s0 + $0x30] sm:$0xff]  }
   0x8   :  { %1949 = vmatprep.subr.bf16.mxu0 %v2043_v2  ;;  %2027 = vmatprep.subr.bf16.mxu1 %v2043_v2  ;;  %v2071_v21 = vld [vmem:[%s2519_s0 + $0xb0] sm:$0xff]   ;;  %v2056_v22 = vld [vmem:[%s2519_s0 + $0x38] sm:$0xff]   ;;  %v2057_v24 = vld [vmem:[%s2519_s0 + $0x40] sm:$0xff]  }
   0x9   :  { %v2072_v23 = vld [vmem:[%s2519_s0 + $0xb8] sm:$0xff]   ;;  %v2073_v25 = vld [vmem:[%s2519_s0 + $0xc0] sm:$0xff]   ;;  %v2058_v26 = vld [vmem:[%s2519_s0 + $0x48] sm:$0xff]  }
   0xa   :  { %v2074_v27 = vld [vmem:[%s2519_s0 + $0xc8] sm:$0xff]   ;;  %v2059_v28 = vld [vmem:[%s2519_s0 + $0x50] sm:$0xff]   ;;  %v2060_v30 = vld [vmem:[%s2519_s0 + $0x58] sm:$0xff]  }
   0xb   :  { %1950 = vmatpush3.bf16.msra.mxu0 %v2043_v2  ;;  %2035 = vmatpush3.bf16.msra.mxu1 %v2043_v2  ;;  %v2075_v29 = vld [vmem:[%s2519_s0 + $0xd0] sm:$0xff]   ;;  %v2076_v31 = vld [vmem:[%s2519_s0 + $0xd8] sm:$0xff]   ;;  %v2061_v32 = vld [vmem:[%s2519_s0 + $0x60] sm:$0xff]  }
   0xc   :  { %1951 = vmatprep.subr.bf16.mxu0 %v2044_v3  ;;  %2028 = vmatprep.subr.bf16.mxu1 %v2044_v3  ;;  %v2077_v33 = vld [vmem:[%s2519_s0 + $0xe0] sm:$0xff]   ;;  %v2062_v34 = vld [vmem:[%s2519_s0 + $0x68] sm:$0xff]   ;;  %v2063_v36 = vld [vmem:[%s2519_s0 + $0x70] sm:$0xff]  }
   0xd   :  { %v2078_v35 = vld [vmem:[%s2519_s0 + $0xe8] sm:$0xff]   ;;  %v2079_v37 = vld [vmem:[%s2519_s0 + $0xf0] sm:$0xff]   ;;  %v2064_v38 = vld [vmem:[%s2519_s0 + $0x78] sm:$0xff]  }
   0xe   :  { %v2080_v39 = vld [vmem:[%s2519_s0 + $0xf8] sm:$0xff]  }
   0xf   :  { %1952 = vmatpush3.bf16.msra.mxu0 %v2044_v3  ;;  %2036 = vmatpush3.bf16.msra.mxu1 %v2044_v3 }
  0x10   :  { %1953 = vmatprep.subr.bf16.mxu0 %v2045_v5  ;;  %2029 = vmatprep.subr.bf16.mxu1 %v2045_v5 }
  0x13   :  { %1954 = vmatpush3.bf16.msra.mxu0 %v2045_v5  ;;  %2037 = vmatpush3.bf16.msra.mxu1 %v2045_v5 }
  0x14   :  { %1955 = vmatprep.subr.bf16.mxu0 %v2046_v6  ;;  %2030 = vmatprep.subr.bf16.mxu1 %v2046_v6 }
  0x17   :  { %1956 = vmatpush3.bf16.msra.mxu0 %v2046_v6  ;;  %2038 = vmatpush3.bf16.msra.mxu1 %v2046_v6 }
  0x18   :  { %1957 = vmatprep.subr.bf16.mxu0 %v2047_v7  ;;  %2031 = vmatprep.subr.bf16.mxu1 %v2047_v7 }
  0x1b   :  { %1958 = vmatpush3.bf16.msra.mxu0 %v2047_v7  ;;  %2039 = vmatpush3.bf16.msra.mxu1 %v2047_v7 }
  0x1c   :  { %1959 = vmatprep.subr.bf16.mxu0 %v2048_v8  ;;  %2032 = vmatprep.subr.bf16.mxu1 %v2048_v8 }
  0x1f   :  { %1960 = vmatpush3.bf16.msra.mxu0 %v2048_v8  ;;  %2040 = vmatpush3.bf16.msra.mxu1 %v2048_v8 }
  0x22   :  { %1962 = vmatmul.mubr.bf16.vlgmr.msra.gmra.mrb[0].mxu0 %v2050_v10  ;;  %1994 = vmatmul.mubr.bf16.vlgmr.msra.gmra.mrb[0].mxu1 %v2066_v12 }
  0x23   :  { %1965 = vmatprep.mubr.bf16.mxu0 %v2051_v11  ;;  %1997 = vmatprep.mubr.bf16.mxu1 %v2067_v13 }
  0x2a   :  { %1966 = vmatmul.mubr.bf16.gmra.mrb[4].mxu0 %v2052_v14  ;;  %1998 = vmatmul.mubr.bf16.gmra.mrb[4].mxu1 %v2068_v16 }
  0x2b   :  { %1969 = vmatprep.mubr.bf16.mxu0 %v2053_v15  ;;  %2001 = vmatprep.mubr.bf16.mxu1 %v2069_v17 }
  0x32   :  { %1970 = vmatmul.mubr.bf16.gmra.mrb[8].mxu0 %v2054_v18  ;;  %2002 = vmatmul.mubr.bf16.gmra.mrb[8].mxu1 %v2070_v19 }
  0x33   :  { %1973 = vmatprep.mubr.bf16.mxu0 %v2055_v20  ;;  %2005 = vmatprep.mubr.bf16.mxu1 %v2071_v21 }
  0x3a   :  { %1974 = vmatmul.mubr.bf16.gmra.mrb[12].mxu0 %v2056_v22  ;;  %2006 = vmatmul.mubr.bf16.gmra.mrb[12].mxu1 %v2072_v23 }
  0x3b   :  { %1977 = vmatprep.mubr.bf16.mxu0 %v2057_v24  ;;  %2009 = vmatprep.mubr.bf16.mxu1 %v2073_v25 }
  0x42   :  { %1978 = vmatmul.mubr.bf16.gmra.mrb[16].mxu0 %v2058_v26  ;;  %2010 = vmatmul.mubr.bf16.gmra.mrb[16].mxu1 %v2074_v27 }
  0x43   :  { %1981 = vmatprep.mubr.bf16.mxu0 %v2059_v28  ;;  %2013 = vmatprep.mubr.bf16.mxu1 %v2075_v29 }
  0x4a   :  { %1982 = vmatmul.mubr.bf16.gmra.mrb[20].mxu0 %v2060_v30  ;;  %2014 = vmatmul.mubr.bf16.gmra.mrb[20].mxu1 %v2076_v31 }
  0x4b   :  { %1985 = vmatprep.mubr.bf16.mxu0 %v2061_v32  ;;  %2017 = vmatprep.mubr.bf16.mxu1 %v2077_v33 }
  0x52   :  { %1986 = vmatmul.mubr.bf16.gmra.mrb[24].mxu0 %v2062_v34  ;;  %2018 = vmatmul.mubr.bf16.gmra.mrb[24].mxu1 %v2078_v35 }
  0x53   :  { %1989 = vmatprep.mubr.bf16.mxu0 %v2063_v36  ;;  %2021 = vmatprep.mubr.bf16.mxu1 %v2079_v37 }
  0x5a   :  { %1990 = vmatmul.mubr.bf16.gmra.mrb[28].mxu0 %v2064_v38  ;;  %2022 = vmatmul.mubr.bf16.gmra.mrb[28].mxu1 %v2080_v39 }
  0xf5   :  { %v1963_v40 = vpop.f32.mrb[0].mxu0  ;;  %v2226_v41 = vpop.f32.mrb[0].mxu1 }
  0xf6   :  { %v371_v42 = vpop.f32.mrb[1].mxu0  ;;  %v2228_v43 = vpop.f32.mrb[1].mxu1  ;;  %v1084_v55 = vmul.f32 %v1963_v40, %v1963_v40 }
  0xf7   :  { %v1964_v44 = vpop.f32.mrb[2].mxu0  ;;  %v2230_v45 = vpop.f32.mrb[2].mxu1  ;;  %v1082_v50 = vmul.f32 %v371_v42, %v371_v42 }
  0xf8   :  { %v1722_v46 = vpack.c.bf16 %v1964_v44, %v1963_v40  ;;  %v374_v47 = vpop.f32.mrb[3].mxu0  ;;  %v1802_v48 = vpack.c.bf16 %v2230_v45, %v2226_v41  ;;  %v2234_v49 = vpop.f32.mrb[3].mxu1  ;;  %v1085_v58 = vmul.f32 %v1964_v44, %v1964_v44 }
  0xf9   :  { %v1013_v51 = vadd.f32 %v374_v47, %v371_v42  ;;  %v1083_v52 = vmul.f32 %v374_v47, %v374_v47  ;;  %v1717_v53 = vpack.c.bf16 %v374_v47, %v371_v42  ;;  %v1797_v54 = vpack.c.bf16 %v2234_v49, %v2228_v43 }
  0xfa   :  { %1874 = vst [vmem:[%s2520_s3 + $0x8] sm:$0xff] %v1722_v46   ;;  %1890 = vst [vmem:[%s2520_s3 + $0x88] sm:$0xff] %v1802_v48  }
  0xfb   :  { %v1014_v56 = vadd.f32 %v1963_v40, %v1013_v51  ;;  %v1146_v57 = vadd.f32 %v1083_v52, %v1082_v50  ;;  %1718 = vst [vmem:[%s2520_s3] sm:$0xff] %v1717_v53   ;;  %1889 = vst [vmem:[%s2520_s3 + $0x80] sm:$0xff] %v1797_v54  }
  0xfd   :  { %v1147_v59 = vadd.f32 %v1146_v57, %v1084_v55  ;;  %v1967_v60 = vpop.f32.mrb[4].mxu0  ;;  %v1015_v61 = vadd.f32 %v1964_v44, %v1014_v56  ;;  %v2250_v62 = vpop.f32.mrb[4].mxu1 }
  0xfe   :  { %v387_v63 = vpop.f32.mrb[5].mxu0  ;;  %v2252_v0 = vpop.f32.mrb[5].mxu1  ;;  %v1088_v15 = vmul.f32 %v1967_v60, %v1967_v60 }
  0xff   :  { %v1016_v1 = vadd.f32 %v1015_v61, %v387_v63  ;;  %v1086_v2 = vmul.f32 %v387_v63, %v387_v63  ;;  %v1148_v3 = vadd.f32 %v1147_v59, %v1085_v58  ;;  %v1968_v4 = vpop.f32.mrb[6].mxu0  ;;  %v2254_v5 = vpop.f32.mrb[6].mxu1 }
 0x100   :  { %v1732_v6 = vpack.c.bf16 %v1968_v4, %v1967_v60  ;;  %v390_v7 = vpop.f32.mrb[7].mxu0  ;;  %v1812_v8 = vpack.c.bf16 %v2254_v5, %v2250_v62  ;;  %v2258_v9 = vpop.f32.mrb[7].mxu1  ;;  %v1089_v18 = vmul.f32 %v1968_v4, %v1968_v4 }
 0x101   :  { %v1149_v10 = vadd.f32 %v1148_v3, %v1086_v2  ;;  %v1017_v11 = vadd.f32 %v1016_v1, %v390_v7  ;;  %v1087_v12 = vmul.f32 %v390_v7, %v390_v7  ;;  %v1727_v13 = vpack.c.bf16 %v390_v7, %v387_v63 }
 0x102   :  { %1876 = vst [vmem:[%s2520_s3 + $0x18] sm:$0xff] %v1732_v6   ;;  %1892 = vst [vmem:[%s2520_s3 + $0x98] sm:$0xff] %v1812_v8   ;;  %v1807_v14 = vpack.c.bf16 %v2258_v9, %v2252_v0 }
 0x103   :  { %v1018_v16 = vadd.f32 %v1967_v60, %v1017_v11  ;;  %v1150_v17 = vadd.f32 %v1149_v10, %v1087_v12  ;;  %1875 = vst [vmem:[%s2520_s3 + $0x10] sm:$0xff] %v1727_v13  }
 0x104   :  { %1891 = vst [vmem:[%s2520_s3 + $0x90] sm:$0xff] %v1807_v14  }
 0x105   :  { %v1151_v19 = vadd.f32 %v1150_v17, %v1088_v15  ;;  %v1971_v20 = vpop.f32.mrb[8].mxu0  ;;  %v1019_v21 = vadd.f32 %v1968_v4, %v1018_v16  ;;  %v2274_v22 = vpop.f32.mrb[8].mxu1 }
 0x106   :  { %v403_v23 = vpop.f32.mrb[9].mxu0  ;;  %v2276_v24 = vpop.f32.mrb[9].mxu1  ;;  %v1092_v39 = vmul.f32 %v1971_v20, %v1971_v20 }
 0x107   :  { %v1020_v25 = vadd.f32 %v1019_v21, %v403_v23  ;;  %v1090_v26 = vmul.f32 %v403_v23, %v403_v23  ;;  %v1152_v27 = vadd.f32 %v1151_v19, %v1089_v18  ;;  %v1972_v28 = vpop.f32.mrb[10].mxu0  ;;  %v2278_v29 = vpop.f32.mrb[10].mxu1 }
 0x108   :  { %v1742_v30 = vpack.c.bf16 %v1972_v28, %v1971_v20  ;;  %v406_v31 = vpop.f32.mrb[11].mxu0  ;;  %v1822_v32 = vpack.c.bf16 %v2278_v29, %v2274_v22  ;;  %v2282_v33 = vpop.f32.mrb[11].mxu1  ;;  %v1093_v44 = vmul.f32 %v1972_v28, %v1972_v28 }
 0x109   :  { %v1153_v34 = vadd.f32 %v1152_v27, %v1090_v26  ;;  %v1021_v35 = vadd.f32 %v1020_v25, %v406_v31  ;;  %v1091_v36 = vmul.f32 %v406_v31, %v406_v31  ;;  %v1737_v37 = vpack.c.bf16 %v406_v31, %v403_v23 }
 0x10a   :  { %1878 = vst [vmem:[%s2520_s3 + $0x28] sm:$0xff] %v1742_v30   ;;  %1894 = vst [vmem:[%s2520_s3 + $0xa8] sm:$0xff] %v1822_v32   ;;  %v1817_v38 = vpack.c.bf16 %v2282_v33, %v2276_v24 }
 0x10b   :  { %v1022_v40 = vadd.f32 %v1971_v20, %v1021_v35  ;;  %v1154_v42 = vadd.f32 %v1153_v34, %v1091_v36  ;;  %1877 = vst [vmem:[%s2520_s3 + $0x20] sm:$0xff] %v1737_v37  }
 0x10c   :  { %1893 = vst [vmem:[%s2520_s3 + $0xa0] sm:$0xff] %v1817_v38  }
 0x10d   :  { %v1155_v46 = vadd.f32 %v1154_v42, %v1092_v39  ;;  %v1975_v47 = vpop.f32.mrb[12].mxu0  ;;  %v1023_v48 = vadd.f32 %v1972_v28, %v1022_v40  ;;  %v2298_v50 = vpop.f32.mrb[12].mxu1 }
 0x10e   :  { %v419_v51 = vpop.f32.mrb[13].mxu0  ;;  %v2300_v52 = vpop.f32.mrb[13].mxu1  ;;  %v1096_v6 = vmul.f32 %v1975_v47, %v1975_v47 }
 0x10f   :  { %v1024_v53 = vadd.f32 %v1023_v48, %v419_v51  ;;  %v1094_v54 = vmul.f32 %v419_v51, %v419_v51  ;;  %v1156_v55 = vadd.f32 %v1155_v46, %v1093_v44  ;;  %v1976_v56 = vpop.f32.mrb[14].mxu0  ;;  %v2302_v57 = vpop.f32.mrb[14].mxu1 }
 0x110   :  { %v1752_v58 = vpack.c.bf16 %v1976_v56, %v1975_v47  ;;  %v422_v59 = vpop.f32.mrb[15].mxu0  ;;  %v1832_v60 = vpack.c.bf16 %v2302_v57, %v2298_v50  ;;  %v2306_v61 = vpop.f32.mrb[15].mxu1  ;;  %v1097_v10 = vmul.f32 %v1976_v56, %v1976_v56 }
 0x111   :  { %v1157_v63 = vadd.f32 %v1156_v55, %v1094_v54  ;;  %v1025_v1 = vadd.f32 %v1024_v53, %v422_v59  ;;  %v1095_v2 = vmul.f32 %v422_v59, %v422_v59  ;;  %v1747_v3 = vpack.c.bf16 %v422_v59, %v419_v51 }
 0x112   :  { %1880 = vst [vmem:[%s2520_s3 + $0x38] sm:$0xff] %v1752_v58   ;;  %1896 = vst [vmem:[%s2520_s3 + $0xb8] sm:$0xff] %v1832_v60   ;;  %v1827_v4 = vpack.c.bf16 %v2306_v61, %v2300_v52 }
 0x113   :  { %v1026_v7 = vadd.f32 %v1975_v47, %v1025_v1  ;;  %v1158_v8 = vadd.f32 %v1157_v63, %v1095_v2  ;;  %1879 = vst [vmem:[%s2520_s3 + $0x30] sm:$0xff] %v1747_v3  }
 0x114   :  { %1895 = vst [vmem:[%s2520_s3 + $0xb0] sm:$0xff] %v1827_v4  }
 0x115   :  { %v1159_v11 = vadd.f32 %v1158_v8, %v1096_v6  ;;  %v1979_v12 = vpop.f32.mrb[16].mxu0  ;;  %v1027_v13 = vadd.f32 %v1976_v56, %v1026_v7  ;;  %v2322_v14 = vpop.f32.mrb[16].mxu1 }
 0x116   :  { %v435_v15 = vpop.f32.mrb[17].mxu0  ;;  %v2324_v16 = vpop.f32.mrb[17].mxu1  ;;  %v1100_v35 = vmul.f32 %v1979_v12, %v1979_v12 }
 0x117   :  { %v1028_v17 = vadd.f32 %v1027_v13, %v435_v15  ;;  %v1098_v18 = vmul.f32 %v435_v15, %v435_v15  ;;  %v1160_v19 = vadd.f32 %v1159_v11, %v1097_v10  ;;  %v1980_v20 = vpop.f32.mrb[18].mxu0  ;;  %v2326_v21 = vpop.f32.mrb[18].mxu1 }
 0x118   :  { %v1762_v23 = vpack.c.bf16 %v1980_v20, %v1979_v12  ;;  %v438_v25 = vpop.f32.mrb[19].mxu0  ;;  %v1842_v26 = vpack.c.bf16 %v2326_v21, %v2322_v14  ;;  %v2330_v27 = vpop.f32.mrb[19].mxu1  ;;  %v1101_v38 = vmul.f32 %v1980_v20, %v1980_v20 }
 0x119   :  { %v1161_v28 = vadd.f32 %v1160_v19, %v1098_v18  ;;  %v1029_v30 = vadd.f32 %v1028_v17, %v438_v25  ;;  %v1099_v31 = vmul.f32 %v438_v25, %v438_v25  ;;  %v1757_v32 = vpack.c.bf16 %v438_v25, %v435_v15 }
 0x11a   :  { %1882 = vst [vmem:[%s2520_s3 + $0x48] sm:$0xff] %v1762_v23   ;;  %1898 = vst [vmem:[%s2520_s3 + $0xc8] sm:$0xff] %v1842_v26   ;;  %v1837_v34 = vpack.c.bf16 %v2330_v27, %v2324_v16 }
 0x11b   :  { %v1030_v36 = vadd.f32 %v1979_v12, %v1029_v30  ;;  %v1162_v37 = vadd.f32 %v1161_v28, %v1099_v31  ;;  %1881 = vst [vmem:[%s2520_s3 + $0x40] sm:$0xff] %v1757_v32  }
 0x11c   :  { %1897 = vst [vmem:[%s2520_s3 + $0xc0] sm:$0xff] %v1837_v34  }
 0x11d   :  { %v1163_v39 = vadd.f32 %v1162_v37, %v1100_v35  ;;  %v1983_v40 = vpop.f32.mrb[20].mxu0  ;;  %v1031_v42 = vadd.f32 %v1980_v20, %v1030_v36  ;;  %v2346_v44 = vpop.f32.mrb[20].mxu1 }
 0x11e   :  { %v451_v46 = vpop.f32.mrb[21].mxu0  ;;  %v2348_v47 = vpop.f32.mrb[21].mxu1  ;;  %v1104_v6 = vmul.f32 %v1983_v40, %v1983_v40 }
 0x11f   :  { %v1032_v48 = vadd.f32 %v1031_v42, %v451_v46  ;;  %v1102_v51 = vmul.f32 %v451_v46, %v451_v46  ;;  %v1164_v53 = vadd.f32 %v1163_v39, %v1101_v38  ;;  %v1984_v54 = vpop.f32.mrb[22].mxu0  ;;  %v2350_v55 = vpop.f32.mrb[22].mxu1 }
 0x120   :  { %v1772_v56 = vpack.c.bf16 %v1984_v54, %v1983_v40  ;;  %v454_v58 = vpop.f32.mrb[23].mxu0  ;;  %v1852_v59 = vpack.c.bf16 %v2350_v55, %v2346_v44  ;;  %v2354_v60 = vpop.f32.mrb[23].mxu1  ;;  %v1105_v10 = vmul.f32 %v1984_v54, %v1984_v54 }
 0x121   :  { %v1165_v63 = vadd.f32 %v1164_v53, %v1102_v51  ;;  %v1033_v1 = vadd.f32 %v1032_v48, %v454_v58  ;;  %v1103_v2 = vmul.f32 %v454_v58, %v454_v58  ;;  %v1767_v3 = vpack.c.bf16 %v454_v58, %v451_v46 }
 0x122   :  { %1884 = vst [vmem:[%s2520_s3 + $0x58] sm:$0xff] %v1772_v56   ;;  %1900 = vst [vmem:[%s2520_s3 + $0xd8] sm:$0xff] %v1852_v59   ;;  %v1847_v4 = vpack.c.bf16 %v2354_v60, %v2348_v47 }
 0x123   :  { %v1034_v7 = vadd.f32 %v1983_v40, %v1033_v1  ;;  %v1166_v8 = vadd.f32 %v1165_v63, %v1103_v2  ;;  %1883 = vst [vmem:[%s2520_s3 + $0x50] sm:$0xff] %v1767_v3  }
 0x124   :  { %1899 = vst [vmem:[%s2520_s3 + $0xd0] sm:$0xff] %v1847_v4  }
 0x125   :  { %v1167_v11 = vadd.f32 %v1166_v8, %v1104_v6  ;;  %v1987_v12 = vpop.f32.mrb[24].mxu0  ;;  %v1035_v13 = vadd.f32 %v1984_v54, %v1034_v7  ;;  %v2370_v15 = vpop.f32.mrb[24].mxu1 }
 0x126   :  { %v467_v17 = vpop.f32.mrb[25].mxu0  ;;  %v2372_v18 = vpop.f32.mrb[25].mxu1  ;;  %v1108_v39 = vmul.f32 %v1987_v12, %v1987_v12 }
 0x127   :  { %v1036_v19 = vadd.f32 %v1035_v13, %v467_v17  ;;  %v1106_v20 = vmul.f32 %v467_v17, %v467_v17  ;;  %v1168_v23 = vadd.f32 %v1167_v11, %v1105_v10  ;;  %v1988_v25 = vpop.f32.mrb[26].mxu0  ;;  %v2374_v26 = vpop.f32.mrb[26].mxu1 }
 0x128   :  { %v1782_v28 = vpack.c.bf16 %v1988_v25, %v1987_v12  ;;  %v470_v30 = vpop.f32.mrb[27].mxu0  ;;  %v1862_v31 = vpack.c.bf16 %v2374_v26, %v2370_v15  ;;  %v2378_v32 = vpop.f32.mrb[27].mxu1  ;;  %v1109_v46 = vmul.f32 %v1988_v25, %v1988_v25 }
 0x129   :  { %v1169_v34 = vadd.f32 %v1168_v23, %v1106_v20  ;;  %v1037_v35 = vadd.f32 %v1036_v19, %v470_v30  ;;  %v1107_v36 = vmul.f32 %v470_v30, %v470_v30  ;;  %v1777_v37 = vpack.c.bf16 %v470_v30, %v467_v17 }
 0x12a   :  { %1886 = vst [vmem:[%s2520_s3 + $0x68] sm:$0xff] %v1782_v28   ;;  %1902 = vst [vmem:[%s2520_s3 + $0xe8] sm:$0xff] %v1862_v31   ;;  %v1857_v38 = vpack.c.bf16 %v2378_v32, %v2372_v18  ;;  %v1114_v31 = vmul.f32 %v2228_v43, %v2228_v43 }
 0x12b   :  { %v1038_v40 = vadd.f32 %v1987_v12, %v1037_v35  ;;  %v1170_v42 = vadd.f32 %v1169_v34, %v1107_v36  ;;  %1885 = vst [vmem:[%s2520_s3 + $0x60] sm:$0xff] %v1777_v37  }
 0x12c   :  { %1901 = vst [vmem:[%s2520_s3 + $0xe0] sm:$0xff] %v1857_v38   ;;  %v1115_v38 = vmul.f32 %v2234_v49, %v2234_v49 }
 0x12d   :  { %v1171_v48 = vadd.f32 %v1170_v42, %v1108_v39  ;;  %v1991_v51 = vpop.f32.mrb[28].mxu0  ;;  %v1039_v53 = vadd.f32 %v1988_v25, %v1038_v40  ;;  %v2394_v54 = vpop.f32.mrb[28].mxu1  ;;  %v1116_v39 = vmul.f32 %v2226_v41, %v2226_v41 }
 0x12e   :  { %v483_v56 = vpop.f32.mrb[29].mxu0  ;;  %v2396_v58 = vpop.f32.mrb[29].mxu1  ;;  %v1112_v19 = vmul.f32 %v1991_v51, %v1991_v51 }
 0x12f   :  { %v1040_v59 = vadd.f32 %v1039_v53, %v483_v56  ;;  %v1110_v63 = vmul.f32 %v483_v56, %v483_v56  ;;  %v1172_v1 = vadd.f32 %v1171_v48, %v1109_v46  ;;  %v1992_v2 = vpop.f32.mrb[30].mxu0  ;;  %v2398_v3 = vpop.f32.mrb[30].mxu1  ;;  %v1117_v46 = vmul.f32 %v2230_v45, %v2230_v45 }
 0x130   :  { %v1792_v4 = vpack.c.bf16 %v1992_v2, %v1991_v51  ;;  %v486_v6 = vpop.f32.mrb[31].mxu0  ;;  %v1872_v7 = vpack.c.bf16 %v2398_v3, %v2394_v54  ;;  %v2402_v8 = vpop.f32.mrb[31].mxu1  ;;  %v1113_v25 = vmul.f32 %v1992_v2, %v1992_v2 }
 0x131   :  { %v1173_v10 = vadd.f32 %v1172_v1, %v1110_v63  ;;  %v1041_v11 = vadd.f32 %v1040_v59, %v486_v6  ;;  %v1111_v12 = vmul.f32 %v486_v6, %v486_v6  ;;  %v1787_v13 = vpack.c.bf16 %v486_v6, %v483_v56 }
 0x132   :  { %1888 = vst [vmem:[%s2520_s3 + $0x78] sm:$0xff] %v1792_v4   ;;  %1904 = vst [vmem:[%s2520_s3 + $0xf8] sm:$0xff] %v1872_v7   ;;  %v1867_v17 = vpack.c.bf16 %v2402_v8, %v2396_v58  ;;  %v1119_v63 = vmul.f32 %v2258_v9, %v2258_v9 }
 0x133   :  { %v1042_v20 = vadd.f32 %v1991_v51, %v1041_v11  ;;  %v1174_v23 = vadd.f32 %v1173_v10, %v1111_v12  ;;  %1887 = vst [vmem:[%s2520_s3 + $0x70] sm:$0xff] %v1787_v13   ;;  %v1123_v12 = vmul.f32 %v2282_v33, %v2282_v33 }
 0x134   :  { %1903 = vst [vmem:[%s2520_s3 + $0xf0] sm:$0xff] %v1867_v17  }
 0x135   :  { %v1175_v28 = vadd.f32 %v1174_v23, %v1112_v19  ;;  %v1043_v30 = vadd.f32 %v1992_v2, %v1042_v20 }
 0x137   :  { %v1044_v34 = vadd.f32 %v1043_v30, %v2228_v43  ;;  %v1176_v35 = vadd.f32 %v1175_v28, %v1113_v25  ;;  %v1118_v43 = vmul.f32 %v2252_v0, %v2252_v0  ;;  %v1127_v30 = vmul.f32 %v2306_v61, %v2306_v61 }
 0x139   :  { %v1177_v36 = vadd.f32 %v1176_v35, %v1114_v31  ;;  %v1045_v37 = vadd.f32 %v1044_v34, %v2234_v49 }
 0x13b   :  { %v1046_v40 = vadd.f32 %v2226_v41, %v1045_v37  ;;  %v1178_v42 = vadd.f32 %v1177_v36, %v1115_v38  ;;  %v1120_v41 = vmul.f32 %v2250_v62, %v2250_v62 }
 0x13d   :  { %v1179_v48 = vadd.f32 %v1178_v42, %v1116_v39  ;;  %v1047_v51 = vadd.f32 %v2230_v45, %v1046_v40  ;;  %v1121_v45 = vmul.f32 %v2254_v5, %v2254_v5  ;;  %v1131_v40 = vmul.f32 %v2330_v27, %v2330_v27 }
 0x13f   :  { %v1048_v53 = vadd.f32 %v1047_v51, %v2252_v0  ;;  %v1180_v56 = vadd.f32 %v1179_v48, %v1117_v46  ;;  %v1122_v0 = vmul.f32 %v2276_v24, %v2276_v24 }
 0x141   :  { %v1181_v59 = vadd.f32 %v1180_v56, %v1118_v43  ;;  %v1049_v49 = vadd.f32 %v1048_v53, %v2258_v9 }
 0x143   :  { %v1050_v1 = vadd.f32 %v2250_v62, %v1049_v49  ;;  %v1182_v2 = vadd.f32 %v1181_v59, %v1119_v63  ;;  %v1124_v62 = vmul.f32 %v2274_v22, %v2274_v22  ;;  %v1135_v59 = vmul.f32 %v2354_v60, %v2354_v60 }
 0x145   :  { %v1183_v4 = vadd.f32 %v1182_v2, %v1120_v41  ;;  %v1051_v6 = vadd.f32 %v2254_v5, %v1050_v1  ;;  %v1125_v5 = vmul.f32 %v2278_v29, %v2278_v29 }
 0x147   :  { %v1052_v7 = vadd.f32 %v1051_v6, %v2276_v24  ;;  %v1184_v10 = vadd.f32 %v1183_v4, %v1121_v45  ;;  %v1126_v24 = vmul.f32 %v2300_v52, %v2300_v52  ;;  %v1139_v6 = vmul.f32 %v2378_v32, %v2378_v32 }
 0x149   :  { %v1185_v11 = vadd.f32 %v1184_v10, %v1122_v0  ;;  %v1053_v9 = vadd.f32 %v1052_v7, %v2282_v33 }
 0x14b   :  { %v1054_v13 = vadd.f32 %v2274_v22, %v1053_v9  ;;  %v1186_v17 = vadd.f32 %v1185_v11, %v1123_v12  ;;  %v1128_v22 = vmul.f32 %v2298_v50, %v2298_v50 }
 0x14d   :  { %v1187_v19 = vadd.f32 %v1186_v17, %v1124_v62  ;;  %v1055_v20 = vadd.f32 %v2278_v29, %v1054_v13  ;;  %v1129_v29 = vmul.f32 %v2302_v57, %v2302_v57  ;;  %v1143_v13 = vmul.f32 %v2402_v8, %v2402_v8 }
 0x14f   :  { %v1056_v23 = vadd.f32 %v1055_v20, %v2300_v52  ;;  %v1188_v25 = vadd.f32 %v1187_v19, %v1125_v5  ;;  %v1130_v52 = vmul.f32 %v2324_v16, %v2324_v16 }
 0x151   :  { %v1189_v28 = vadd.f32 %v1188_v25, %v1126_v24  ;;  %v1057_v33 = vadd.f32 %v1056_v23, %v2306_v61 }
 0x153   :  { %v1058_v31 = vadd.f32 %v2298_v50, %v1057_v33  ;;  %v1190_v34 = vadd.f32 %v1189_v28, %v1127_v30  ;;  %v1132_v50 = vmul.f32 %v2322_v14, %v2322_v14 }
 0x155   :  { %v1191_v35 = vadd.f32 %v1190_v34, %v1128_v22  ;;  %v1059_v36 = vadd.f32 %v2302_v57, %v1058_v31  ;;  %v1133_v57 = vmul.f32 %v2326_v21, %v2326_v21 }
 0x157   :  { %v1060_v37 = vadd.f32 %v1059_v36, %v2324_v16  ;;  %v1192_v38 = vadd.f32 %v1191_v35, %v1129_v29  ;;  %v1134_v16 = vmul.f32 %v2348_v47, %v2348_v47 }
 0x159   :  { %v1193_v39 = vadd.f32 %v1192_v38, %v1130_v52  ;;  %v1061_v61 = vadd.f32 %v1060_v37, %v2330_v27 }
 0x15b   :  { %v1062_v42 = vadd.f32 %v2322_v14, %v1061_v61  ;;  %v1194_v46 = vadd.f32 %v1193_v39, %v1131_v40  ;;  %v1136_v14 = vmul.f32 %v2346_v44, %v2346_v44 }
 0x15d   :  { %v1195_v48 = vadd.f32 %v1194_v46, %v1132_v50  ;;  %v1063_v51 = vadd.f32 %v2326_v21, %v1062_v42  ;;  %v1137_v21 = vmul.f32 %v2350_v55, %v2350_v55 }
 0x15f   :  { %v1064_v43 = vadd.f32 %v1063_v51, %v2348_v47  ;;  %v1196_v53 = vadd.f32 %v1195_v48, %v1133_v57  ;;  %v1138_v47 = vmul.f32 %v2372_v18, %v2372_v18 }
 0x161   :  { %v1197_v56 = vadd.f32 %v1196_v53, %v1134_v16  ;;  %v1065_v27 = vadd.f32 %v1064_v43, %v2354_v60 }
 0x163   :  { %v1066_v49 = vadd.f32 %v2346_v44, %v1065_v27  ;;  %v1198_v63 = vadd.f32 %v1197_v56, %v1135_v59  ;;  %v1140_v44 = vmul.f32 %v2370_v15, %v2370_v15 }
 0x165   :  { %v1199_v41 = vadd.f32 %v1198_v63, %v1136_v14  ;;  %v1067_v1 = vadd.f32 %v2350_v55, %v1066_v49  ;;  %v1141_v55 = vmul.f32 %v2374_v26, %v2374_v26 }
 0x167   :  { %v1068_v2 = vadd.f32 %v1067_v1, %v2372_v18  ;;  %v1200_v45 = vadd.f32 %v1199_v41, %v1137_v21  ;;  %v1142_v18 = vmul.f32 %v2396_v58, %v2396_v58 }
 0x169   :  { %v1201_v4 = vadd.f32 %v1200_v45, %v1138_v47  ;;  %v1069_v60 = vadd.f32 %v1068_v2, %v2378_v32 }
 0x16b   :  { %v1070_v0 = vadd.f32 %v2370_v15, %v1069_v60  ;;  %v1202_v7 = vadd.f32 %v1201_v4, %v1139_v6  ;;  %v1144_v15 = vmul.f32 %v2394_v54, %v2394_v54 }
 0x16d   :  { %v1203_v10 = vadd.f32 %v1202_v7, %v1140_v44  ;;  %v1071_v11 = vadd.f32 %v2374_v26, %v1070_v0  ;;  %v1145_v26 = vmul.f32 %v2398_v3, %v2398_v3 }
 0x16f   :  { %v1072_v9 = vadd.f32 %v1071_v11, %v2396_v58  ;;  %v1204_v12 = vadd.f32 %v1203_v10, %v1141_v55 }
 0x171   :  { %v1205_v62 = vadd.f32 %v1204_v12, %v1142_v18  ;;  %v1073_v32 = vadd.f32 %v1072_v9, %v2402_v8 }
 0x173   :  { %v1074_v17 = vadd.f32 %v2394_v54, %v1073_v32  ;;  %v1206_v5 = vadd.f32 %v1205_v62, %v1143_v13 }
 0x175   :  { %v1075_v19 = vadd.f32 %v2398_v3, %v1074_v17  ;;  %v1207_v20 = vadd.f32 %v1206_v5, %v1144_v15 }
 0x177   :  { %v1076_v58 = vrot.slane %v1075_v19, 4  ;;  %v1208_v24 = vadd.f32 %v1207_v20, %v1145_v26 }
 0x179   :  { %v1077_v23 = vadd.f32 %v1076_v58, %v1075_v19  ;;  %v1209_v25 = vrot.slane %v1208_v24, 4 }
 0x17b   :  { %v1078_v28 = vrot.slane %v1077_v23, 2  ;;  %v1210_v33 = vadd.f32 %v1209_v25, %v1208_v24 }
 0x17d   :  { %v1079_v30 = vadd.f32 %v1078_v28, %v1077_v23  ;;  %v1211_v8 = vrot.slane %v1210_v33, 2 }
 0x17f   :  { %v1080_v22 = vrot.slane %v1079_v30, 1  ;;  %v1212_v31 = vadd.f32 %v1211_v8, %v1210_v33 }
 0x181   :  { %v1213_v34 = vrot.slane %v1212_v31, 1  ;;  %v1081_v54 = vadd.f32 %v1080_v22, %v1079_v30 }
 0x183   :  { %v1214_v29 = vadd.f32 %v1213_v34, %v1212_v31 }
 0x185   :  { %v1216_v35 = vsel %vm1215_vm0, %v1081_v54, %v1214_v29 }
 0x186   :  { %1217 = vst [vmem:[%s2521_s4] sm:$0x3] %v1216_v35 }

// kernel: bottleneck_forward.9
= control target key start
LH: loop header
LB: loop body
LE: loop exit
PB: predicated region body
PF: predicated region fallthrough
CT: control target
= control target key end

     0   :  { %s1500_s0 = inlined_call_operand.vmem [shape: bf16[392,128], index: 0, kind: input, shape index: {}]   ;;  %s1501_s1 = inlined_call_operand.vmem [shape: f32[2,128], index: 1, kind: input, shape index: {}]   ;;  %s1502_s2 = inlined_call_operand.vmem [shape: bf16[392,128], index: 2, kind: input, shape index: {}]   ;;  %s1503_s3 = inlined_call_operand.vmem [shape: bf16[392,128], index: 3, kind: output, shape index: {}]  }
   0x1   :  { %v767_v0 = vld [vmem:[%s1500_s0] sm:$0xff]   ;;  %v1078_v5 = vld [vmem:[%s1500_s0 + $0x8] sm:$0xff]   ;;  %v1079_v12 = vld [vmem:[%s1500_s0 + $0x10] sm:$0xff]  }
   0x2   :  { %v1173_v1 = vld [vmem:[%s1501_s1] ss:$0 sm:$0xff]  ;;  %v768_v2 = vunpack.c.l.bf16 %v767_v0  ;;  %v769_v3 = vunpack.c.h.bf16 %v767_v0  ;;  %v1101_v6 = vld [vmem:[%s1502_s2 + $0x8] sm:$0xff]   ;;  %v1187_v7 = vld [vmem:[%s1501_s1 + $0x1] ss:$0 sm:$0xff]  ;;  %v772_v10 = vunpack.c.l.bf16 %v1078_v5  ;;  %v773_v11 = vunpack.c.h.bf16 %v1078_v5 }
   0x3   :  { %v863_v4 = vld [vmem:[%s1502_s2] sm:$0xff]   ;;  %v1102_v13 = vld [vmem:[%s1502_s2 + $0x10] sm:$0xff]   ;;  %v868_v16 = vunpack.c.l.bf16 %v1101_v6  ;;  %v869_v17 = vunpack.c.h.bf16 %v1101_v6  ;;  %v776_v20 = vunpack.c.l.bf16 %v1079_v12  ;;  %v777_v21 = vunpack.c.h.bf16 %v1079_v12  ;;  %v1080_v22 = vld [vmem:[%s1500_s0 + $0x18] sm:$0xff]  }
   0x4   :  { %v864_v8 = vunpack.c.l.bf16 %v863_v4  ;;  %v865_v9 = vunpack.c.h.bf16 %v863_v4  ;;  %v117_v14 = vmul.f32 %v768_v2, %v1173_v1  ;;  %v118_v15 = vmul.f32 %v769_v3, %v1173_v1  ;;  %v1103_v39 = vld [vmem:[%s1502_s2 + $0x18] sm:$0xff]   ;;  %v1081_v48 = vld [vmem:[%s1500_s0 + $0x20] sm:$0xff]   ;;  %v1082_v54 = vld [vmem:[%s1500_s0 + $0x28] sm:$0xff]  }
   0x5   :  { %v119_v18 = vmul.f32 %v772_v10, %v1173_v1  ;;  %v120_v19 = vmul.f32 %v773_v11, %v1173_v1  ;;  %v872_v25 = vunpack.c.l.bf16 %v1102_v13  ;;  %v873_v26 = vunpack.c.h.bf16 %v1102_v13  ;;  %v1104_v49 = vld [vmem:[%s1502_s2 + $0x20] sm:$0xff]   ;;  %v1105_v63 = vld [vmem:[%s1502_s2 + $0x28] sm:$0xff]   ;;  %v1083_v5 = vld [vmem:[%s1500_s0 + $0x30] sm:$0xff]  }
   0x6   :  { %v171_v23 = vadd.f32 %v1187_v7, %v117_v14  ;;  %v172_v24 = vadd.f32 %v1187_v7, %v118_v15  ;;  %v121_v29 = vmul.f32 %v776_v20, %v1173_v1  ;;  %v122_v30 = vmul.f32 %v777_v21, %v1173_v1  ;;  %v1106_v11 = vld [vmem:[%s1502_s2 + $0x30] sm:$0xff]   ;;  %v1084_v20 = vld [vmem:[%s1500_s0 + $0x38] sm:$0xff]  }
   0x7   :  { %v173_v27 = vadd.f32 %v1187_v7, %v119_v18  ;;  %v174_v28 = vadd.f32 %v1187_v7, %v120_v19  ;;  %v780_v33 = vunpack.c.l.bf16 %v1080_v22  ;;  %v781_v34 = vunpack.c.h.bf16 %v1080_v22 }
   0x8   :  { %v318_v31 = vadd.f32 %v864_v8, %v171_v23  ;;  %v319_v32 = vadd.f32 %v865_v9, %v172_v24  ;;  %v175_v37 = vadd.f32 %v1187_v7, %v121_v29  ;;  %v176_v38 = vadd.f32 %v1187_v7, %v122_v30 }
   0x9   :  { %v320_v35 = vadd.f32 %v868_v16, %v173_v27  ;;  %v321_v36 = vadd.f32 %v869_v17, %v174_v28  ;;  %v123_v42 = vmul.f32 %v780_v33, %v1173_v1  ;;  %v124_v43 = vmul.f32 %v781_v34, %v1173_v1  ;;  %v1107_v33 = vld [vmem:[%s1502_s2 + $0x38] sm:$0xff]  }
   0xa   :  { %v367_v40 = vmax.f32 %v318_v31, 0.0  ;;  %v368_v41 = vmax.f32 %v319_v32, 0.0  ;;  %v322_v46 = vadd.f32 %v872_v25, %v175_v37  ;;  %v323_v47 = vadd.f32 %v873_v26, %v176_v38 }
   0xb   :  { %v369_v44 = vmax.f32 %v320_v35, 0.0  ;;  %v370_v45 = vmax.f32 %v321_v36, 0.0  ;;  %v177_v51 = vadd.f32 %v1187_v7, %v123_v42  ;;  %v178_v52 = vadd.f32 %v1187_v7, %v124_v43  ;;  %v1085_v42 = vld [vmem:[%s1500_s0 + $0x40] sm:$0xff]  }
   0xc   :  { %v961_v50 = vpack.c.bf16 %v368_v41, %v367_v40  ;;  %v876_v53 = vunpack.c.l.bf16 %v1103_v39  ;;  %v371_v56 = vmax.f32 %v322_v46, 0.0  ;;  %v372_v57 = vmax.f32 %v323_v47, 0.0  ;;  %v1108_v47 = vld [vmem:[%s1502_s2 + $0x40] sm:$0xff]  }
   0xd   :  { %v966_v55 = vpack.c.bf16 %v370_v45, %v369_v44  ;;  %v877_v58 = vunpack.c.h.bf16 %v1103_v39  ;;  %v784_v60 = vunpack.c.l.bf16 %v1081_v48  ;;  %v785_v61 = vunpack.c.h.bf16 %v1081_v48 }
   0xe   :  { %962 = vst [vmem:[%s1503_s3] sm:$0xff] %v961_v50   ;;  %v324_v59 = vadd.f32 %v876_v53, %v177_v51  ;;  %v880_v62 = vunpack.c.l.bf16 %v1104_v49  ;;  %v971_v0 = vpack.c.bf16 %v372_v57, %v371_v56  ;;  %v881_v3 = vunpack.c.h.bf16 %v1104_v49 }
   0xf   :  { %1124 = vst [vmem:[%s1503_s3 + $0x8] sm:$0xff] %v966_v55   ;;  %v325_v2 = vadd.f32 %v877_v58, %v178_v52  ;;  %v788_v4 = vunpack.c.l.bf16 %v1082_v54  ;;  %v125_v8 = vmul.f32 %v784_v60, %v1173_v1  ;;  %v126_v9 = vmul.f32 %v785_v61, %v1173_v1  ;;  %v1086_v52 = vld [vmem:[%s1500_s0 + $0x48] sm:$0xff]  }
  0x10   :  { %v373_v6 = vmax.f32 %v324_v59, 0.0  ;;  %v789_v10 = vunpack.c.h.bf16 %v1082_v54  ;;  %1125 = vst [vmem:[%s1503_s3 + $0x10] sm:$0xff] %v971_v0   ;;  %v884_v14 = vunpack.c.l.bf16 %v1105_v63  ;;  %v885_v15 = vunpack.c.h.bf16 %v1105_v63  ;;  %v1109_v61 = vld [vmem:[%s1502_s2 + $0x48] sm:$0xff]  }
  0x11   :  { %v374_v12 = vmax.f32 %v325_v2, 0.0  ;;  %v127_v13 = vmul.f32 %v788_v4, %v1173_v1  ;;  %v179_v16 = vadd.f32 %v1187_v7, %v125_v8  ;;  %v180_v17 = vadd.f32 %v1187_v7, %v126_v9 }
  0x12   :  { %v128_v18 = vmul.f32 %v789_v10, %v1173_v1  ;;  %v792_v19 = vunpack.c.l.bf16 %v1083_v5  ;;  %v793_v23 = vunpack.c.h.bf16 %v1083_v5  ;;  %v888_v24 = vunpack.c.l.bf16 %v1106_v11 }
  0x13   :  { %v976_v21 = vpack.c.bf16 %v374_v12, %v373_v6  ;;  %v181_v22 = vadd.f32 %v1187_v7, %v127_v13  ;;  %v326_v25 = vadd.f32 %v880_v62, %v179_v16  ;;  %v327_v26 = vadd.f32 %v881_v3, %v180_v17  ;;  %v1087_v3 = vld [vmem:[%s1500_s0 + $0x50] sm:$0xff]  }
  0x14   :  { %v182_v27 = vadd.f32 %v1187_v7, %v128_v18  ;;  %v129_v28 = vmul.f32 %v792_v19, %v1173_v1  ;;  %v130_v30 = vmul.f32 %v793_v23, %v1173_v1  ;;  %v889_v31 = vunpack.c.h.bf16 %v1106_v11  ;;  %v1110_v13 = vld [vmem:[%s1502_s2 + $0x50] sm:$0xff]  }
  0x15   :  { %1126 = vst [vmem:[%s1503_s3 + $0x18] sm:$0xff] %v976_v21   ;;  %v328_v29 = vadd.f32 %v884_v14, %v181_v22  ;;  %v796_v32 = vunpack.c.l.bf16 %v1084_v20  ;;  %v375_v34 = vmax.f32 %v326_v25, 0.0  ;;  %v376_v35 = vmax.f32 %v327_v26, 0.0  ;;  %v1088_v22 = vld [vmem:[%s1500_s0 + $0x58] sm:$0xff]  }
  0x16   :  { %v329_v36 = vadd.f32 %v885_v15, %v182_v27  ;;  %v183_v37 = vadd.f32 %v1187_v7, %v129_v28  ;;  %v184_v39 = vadd.f32 %v1187_v7, %v130_v30  ;;  %v797_v40 = vunpack.c.h.bf16 %v1084_v20 }
  0x17   :  { %v377_v38 = vmax.f32 %v328_v29, 0.0  ;;  %v131_v41 = vmul.f32 %v796_v32, %v1173_v1  ;;  %v981_v43 = vpack.c.bf16 %v376_v35, %v375_v34  ;;  %v892_v46 = vunpack.c.l.bf16 %v1107_v33 }
  0x18   :  { %v378_v44 = vmax.f32 %v329_v36, 0.0  ;;  %v330_v45 = vadd.f32 %v888_v24, %v183_v37  ;;  %v331_v48 = vadd.f32 %v889_v31, %v184_v39  ;;  %v132_v49 = vmul.f32 %v797_v40, %v1173_v1  ;;  %v1111_v31 = vld [vmem:[%s1502_s2 + $0x58] sm:$0xff]   ;;  %v1089_v36 = vld [vmem:[%s1500_s0 + $0x60] sm:$0xff]  }
  0x19   :  { %v185_v50 = vadd.f32 %v1187_v7, %v131_v41  ;;  %v893_v51 = vunpack.c.h.bf16 %v1107_v33  ;;  %1127 = vst [vmem:[%s1503_s3 + $0x20] sm:$0xff] %v981_v43   ;;  %v800_v55 = vunpack.c.l.bf16 %v1085_v42  ;;  %v801_v56 = vunpack.c.h.bf16 %v1085_v42 }
  0x1a   :  { %v986_v53 = vpack.c.bf16 %v378_v44, %v377_v38  ;;  %v379_v54 = vmax.f32 %v330_v45, 0.0  ;;  %v380_v57 = vmax.f32 %v331_v48, 0.0  ;;  %v186_v58 = vadd.f32 %v1187_v7, %v132_v49  ;;  %v1112_v45 = vld [vmem:[%s1502_s2 + $0x60] sm:$0xff]  }
  0x1b   :  { %v332_v59 = vadd.f32 %v892_v46, %v185_v50  ;;  %v896_v60 = vunpack.c.l.bf16 %v1108_v47  ;;  %v133_v62 = vmul.f32 %v800_v55, %v1173_v1  ;;  %v134_v63 = vmul.f32 %v801_v56, %v1173_v1  ;;  %v1090_v50 = vld [vmem:[%s1500_s0 + $0x68] sm:$0xff]  }
  0x1c   :  { %1128 = vst [vmem:[%s1503_s3 + $0x28] sm:$0xff] %v986_v53   ;;  %v897_v0 = vunpack.c.h.bf16 %v1108_v47  ;;  %v804_v2 = vunpack.c.l.bf16 %v1086_v52  ;;  %v991_v4 = vpack.c.bf16 %v380_v57, %v379_v54  ;;  %v333_v5 = vadd.f32 %v893_v51, %v186_v58 }
  0x1d   :  { %v381_v6 = vmax.f32 %v332_v59, 0.0  ;;  %v805_v8 = vunpack.c.h.bf16 %v1086_v52  ;;  %v187_v9 = vadd.f32 %v1187_v7, %v133_v62  ;;  %v188_v10 = vadd.f32 %v1187_v7, %v134_v63  ;;  %v1113_v59 = vld [vmem:[%s1502_s2 + $0x68] sm:$0xff]  }
  0x1e   :  { %v135_v11 = vmul.f32 %v804_v2, %v1173_v1  ;;  %v900_v12 = vunpack.c.l.bf16 %v1109_v61  ;;  %1129 = vst [vmem:[%s1503_s3 + $0x30] sm:$0xff] %v991_v4   ;;  %v382_v14 = vmax.f32 %v333_v5, 0.0  ;;  %v901_v16 = vunpack.c.h.bf16 %v1109_v61  ;;  %v1091_v5 = vld [vmem:[%s1500_s0 + $0x70] sm:$0xff]  }
  0x1f   :  { %v136_v15 = vmul.f32 %v805_v8, %v1173_v1  ;;  %v808_v17 = vunpack.c.l.bf16 %v1087_v3  ;;  %v334_v18 = vadd.f32 %v896_v60, %v187_v9  ;;  %v335_v19 = vadd.f32 %v897_v0, %v188_v10 }
  0x20   :  { %v189_v20 = vadd.f32 %v1187_v7, %v135_v11  ;;  %v809_v21 = vunpack.c.h.bf16 %v1087_v3  ;;  %v996_v23 = vpack.c.bf16 %v382_v14, %v381_v6  ;;  %v904_v26 = vunpack.c.l.bf16 %v1110_v13  ;;  %v1114_v11 = vld [vmem:[%s1502_s2 + $0x70] sm:$0xff]  }
  0x21   :  { %v190_v24 = vadd.f32 %v1187_v7, %v136_v15  ;;  %v137_v25 = vmul.f32 %v808_v17, %v1173_v1  ;;  %v383_v27 = vmax.f32 %v334_v18, 0.0  ;;  %v384_v28 = vmax.f32 %v335_v19, 0.0 }
  0x22   :  { %v336_v29 = vadd.f32 %v900_v12, %v189_v20  ;;  %v138_v30 = vmul.f32 %v809_v21, %v1173_v1  ;;  %1130 = vst [vmem:[%s1503_s3 + $0x38] sm:$0xff] %v996_v23   ;;  %v905_v34 = vunpack.c.h.bf16 %v1110_v13  ;;  %v812_v35 = vunpack.c.l.bf16 %v1088_v22  ;;  %v1092_v20 = vld [vmem:[%s1500_s0 + $0x78] sm:$0xff]  }
  0x23   :  { %v337_v32 = vadd.f32 %v901_v16, %v190_v24  ;;  %v191_v33 = vadd.f32 %v1187_v7, %v137_v25  ;;  %v1001_v37 = vpack.c.bf16 %v384_v28, %v383_v27  ;;  %v813_v40 = vunpack.c.h.bf16 %v1088_v22 }
  0x24   :  { %v385_v38 = vmax.f32 %v336_v29, 0.0  ;;  %v192_v39 = vadd.f32 %v1187_v7, %v138_v30  ;;  %v139_v43 = vmul.f32 %v812_v35, %v1173_v1  ;;  %v908_v44 = vunpack.c.l.bf16 %v1111_v31  ;;  %v1115_v29 = vld [vmem:[%s1502_s2 + $0x78] sm:$0xff]  }
  0x25   :  { %v386_v41 = vmax.f32 %v337_v32, 0.0  ;;  %v338_v42 = vadd.f32 %v904_v26, %v191_v33  ;;  %1131 = vst [vmem:[%s1503_s3 + $0x40] sm:$0xff] %v1001_v37   ;;  %v140_v47 = vmul.f32 %v813_v40, %v1173_v1  ;;  %v909_v48 = vunpack.c.h.bf16 %v1111_v31 }
  0x26   :  { %v339_v46 = vadd.f32 %v905_v34, %v192_v39  ;;  %v816_v49 = vunpack.c.l.bf16 %v1089_v36  ;;  %v193_v53 = vadd.f32 %v1187_v7, %v139_v43  ;;  %v817_v54 = vunpack.c.h.bf16 %v1089_v36  ;;  %v1093_v34 = vld [vmem:[%s1500_s0 + $0x80] sm:$0xff]  }
  0x27   :  { %v1006_v51 = vpack.c.bf16 %v386_v41, %v385_v38  ;;  %v387_v52 = vmax.f32 %v338_v42, 0.0  ;;  %v194_v56 = vadd.f32 %v1187_v7, %v140_v47  ;;  %v912_v58 = vunpack.c.l.bf16 %v1112_v45  ;;  %v1116_v43 = vld [vmem:[%s1502_s2 + $0x80] sm:$0xff]  }
  0x28   :  { %v388_v55 = vmax.f32 %v339_v46, 0.0  ;;  %v141_v57 = vmul.f32 %v816_v49, %v1173_v1  ;;  %v340_v60 = vadd.f32 %v908_v44, %v193_v53  ;;  %v142_v61 = vmul.f32 %v817_v54, %v1173_v1 }
  0x29   :  { %1132 = vst [vmem:[%s1503_s3 + $0x48] sm:$0xff] %v1006_v51   ;;  %v913_v62 = vunpack.c.h.bf16 %v1112_v45  ;;  %v820_v63 = vunpack.c.l.bf16 %v1090_v50  ;;  %v341_v2 = vadd.f32 %v909_v48, %v194_v56  ;;  %v821_v4 = vunpack.c.h.bf16 %v1090_v50 }
  0x2a   :  { %v1011_v0 = vpack.c.bf16 %v388_v55, %v387_v52  ;;  %v195_v3 = vadd.f32 %v1187_v7, %v141_v57  ;;  %v389_v6 = vmax.f32 %v340_v60, 0.0  ;;  %v196_v8 = vadd.f32 %v1187_v7, %v142_v61  ;;  %v1094_v52 = vld [vmem:[%s1500_s0 + $0x88] sm:$0xff]  }
  0x2b   :  { %v143_v9 = vmul.f32 %v820_v63, %v1173_v1  ;;  %v916_v10 = vunpack.c.l.bf16 %v1113_v59  ;;  %v390_v12 = vmax.f32 %v341_v2, 0.0  ;;  %v144_v14 = vmul.f32 %v821_v4, %v1173_v1  ;;  %v1117_v57 = vld [vmem:[%s1502_s2 + $0x88] sm:$0xff]  }
  0x2c   :  { %1133 = vst [vmem:[%s1503_s3 + $0x50] sm:$0xff] %v1011_v0   ;;  %v342_v13 = vadd.f32 %v912_v58, %v195_v3  ;;  %v917_v15 = vunpack.c.h.bf16 %v1113_v59  ;;  %v343_v16 = vadd.f32 %v913_v62, %v196_v8  ;;  %v824_v18 = vunpack.c.l.bf16 %v1091_v5  ;;  %v1095_v3 = vld [vmem:[%s1500_s0 + $0x90] sm:$0xff]  }
  0x2d   :  { %v197_v17 = vadd.f32 %v1187_v7, %v143_v9  ;;  %v825_v19 = vunpack.c.h.bf16 %v1091_v5  ;;  %v1016_v21 = vpack.c.bf16 %v390_v12, %v389_v6  ;;  %v198_v23 = vadd.f32 %v1187_v7, %v144_v14  ;;  %v1118_v9 = vld [vmem:[%s1502_s2 + $0x90] sm:$0xff]  }
  0x2e   :  { %v391_v22 = vmax.f32 %v342_v13, 0.0  ;;  %v920_v24 = vunpack.c.l.bf16 %v1114_v11  ;;  %v392_v25 = vmax.f32 %v343_v16, 0.0  ;;  %v145_v27 = vmul.f32 %v824_v18, %v1173_v1  ;;  %v1096_v18 = vld [vmem:[%s1500_s0 + $0x98] sm:$0xff]  }
  0x2f   :  { %v344_v26 = vadd.f32 %v916_v10, %v197_v17  ;;  %v146_v28 = vmul.f32 %v825_v19, %v1173_v1  ;;  %1134 = vst [vmem:[%s1503_s3 + $0x58] sm:$0xff] %v1016_v21   ;;  %v345_v30 = vadd.f32 %v917_v15, %v198_v23  ;;  %v921_v31 = vunpack.c.h.bf16 %v1114_v11  ;;  %v1119_v23 = vld [vmem:[%s1502_s2 + $0x98] sm:$0xff]  }
  0x30   :  { %v828_v32 = vunpack.c.l.bf16 %v1092_v20  ;;  %v829_v33 = vunpack.c.h.bf16 %v1092_v20  ;;  %v1021_v35 = vpack.c.bf16 %v392_v25, %v391_v22  ;;  %v199_v37 = vadd.f32 %v1187_v7, %v145_v27 }
  0x31   :  { %v393_v36 = vmax.f32 %v344_v26, 0.0  ;;  %v200_v38 = vadd.f32 %v1187_v7, %v146_v28  ;;  %v394_v39 = vmax.f32 %v345_v30, 0.0  ;;  %v924_v42 = vunpack.c.l.bf16 %v1115_v29 }
  0x32   :  { %v147_v40 = vmul.f32 %v828_v32, %v1173_v1  ;;  %v148_v41 = vmul.f32 %v829_v33, %v1173_v1  ;;  %1135 = vst [vmem:[%s1503_s3 + $0x60] sm:$0xff] %v1021_v35   ;;  %v346_v44 = vadd.f32 %v920_v24, %v199_v37  ;;  %v925_v46 = vunpack.c.h.bf16 %v1115_v29  ;;  %v1097_v32 = vld [vmem:[%s1500_s0 + $0xa0] sm:$0xff]  }
  0x33   :  { %v347_v45 = vadd.f32 %v921_v31, %v200_v38  ;;  %v832_v47 = vunpack.c.l.bf16 %v1093_v34  ;;  %v1026_v48 = vpack.c.bf16 %v394_v39, %v393_v36  ;;  %v833_v51 = vunpack.c.h.bf16 %v1093_v34 }
  0x34   :  { %v201_v49 = vadd.f32 %v1187_v7, %v147_v40  ;;  %v202_v50 = vadd.f32 %v1187_v7, %v148_v41  ;;  %v395_v53 = vmax.f32 %v346_v44, 0.0  ;;  %v928_v56 = vunpack.c.l.bf16 %v1116_v43  ;;  %v1120_v41 = vld [vmem:[%s1502_s2 + $0xa0] sm:$0xff]  }
  0x35   :  { %v396_v54 = vmax.f32 %v347_v45, 0.0  ;;  %v149_v55 = vmul.f32 %v832_v47, %v1173_v1  ;;  %1136 = vst [vmem:[%s1503_s3 + $0x68] sm:$0xff] %v1026_v48   ;;  %v150_v60 = vmul.f32 %v833_v51, %v1173_v1  ;;  %v929_v61 = vunpack.c.h.bf16 %v1116_v43 }
  0x36   :  { %v348_v58 = vadd.f32 %v924_v42, %v201_v49  ;;  %v349_v59 = vadd.f32 %v925_v46, %v202_v50  ;;  %v836_v0 = vunpack.c.l.bf16 %v1094_v52  ;;  %v837_v2 = vunpack.c.h.bf16 %v1094_v52  ;;  %v1098_v50 = vld [vmem:[%s1500_s0 + $0xa8] sm:$0xff]  }
  0x37   :  { %v1031_v62 = vpack.c.bf16 %v396_v54, %v395_v53  ;;  %v203_v63 = vadd.f32 %v1187_v7, %v149_v55  ;;  %v204_v6 = vadd.f32 %v1187_v7, %v150_v60  ;;  %v932_v8 = vunpack.c.l.bf16 %v1117_v57  ;;  %v1121_v55 = vld [vmem:[%s1502_s2 + $0xa8] sm:$0xff]  }
  0x38   :  { %v397_v4 = vmax.f32 %v348_v58, 0.0  ;;  %v398_v5 = vmax.f32 %v349_v59, 0.0  ;;  %v151_v11 = vmul.f32 %v836_v0, %v1173_v1  ;;  %v152_v12 = vmul.f32 %v837_v2, %v1173_v1  ;;  %v1099_v0 = vld [vmem:[%s1500_s0 + $0xb0] sm:$0xff]  }
  0x39   :  { %1137 = vst [vmem:[%s1503_s3 + $0x70] sm:$0xff] %v1031_v62   ;;  %v350_v10 = vadd.f32 %v928_v56, %v203_v63  ;;  %v933_v13 = vunpack.c.h.bf16 %v1117_v57  ;;  %v351_v15 = vadd.f32 %v929_v61, %v204_v6  ;;  %v840_v16 = vunpack.c.l.bf16 %v1095_v3  ;;  %v1122_v6 = vld [vmem:[%s1502_s2 + $0xb0] sm:$0xff]  }
  0x3a   :  { %v1036_v14 = vpack.c.bf16 %v398_v5, %v397_v4  ;;  %v841_v17 = vunpack.c.h.bf16 %v1095_v3  ;;  %v205_v20 = vadd.f32 %v1187_v7, %v151_v11  ;;  %v206_v21 = vadd.f32 %v1187_v7, %v152_v12 }
  0x3b   :  { %v399_v19 = vmax.f32 %v350_v10, 0.0  ;;  %v936_v22 = vunpack.c.l.bf16 %v1118_v9  ;;  %v400_v24 = vmax.f32 %v351_v15, 0.0  ;;  %v153_v25 = vmul.f32 %v840_v16, %v1173_v1  ;;  %v1100_v16 = vld [vmem:[%s1500_s0 + $0xb8] sm:$0xff]  }
  0x3c   :  { %1138 = vst [vmem:[%s1503_s3 + $0x78] sm:$0xff] %v1036_v14   ;;  %v154_v26 = vmul.f32 %v841_v17, %v1173_v1  ;;  %v937_v27 = vunpack.c.h.bf16 %v1118_v9  ;;  %v352_v28 = vadd.f32 %v932_v8, %v205_v20  ;;  %v353_v29 = vadd.f32 %v933_v13, %v206_v21  ;;  %v1123_v21 = vld [vmem:[%s1502_s2 + $0xb8] sm:$0xff]  }
  0x3d   :  { %v844_v30 = vunpack.c.l.bf16 %v1096_v18  ;;  %v845_v31 = vunpack.c.h.bf16 %v1096_v18  ;;  %v1041_v33 = vpack.c.bf16 %v400_v24, %v399_v19  ;;  %v207_v34 = vadd.f32 %v1187_v7, %v153_v25 }
  0x3e   :  { %v208_v35 = vadd.f32 %v1187_v7, %v154_v26  ;;  %v940_v36 = vunpack.c.l.bf16 %v1119_v23  ;;  %v401_v37 = vmax.f32 %v352_v28, 0.0  ;;  %v402_v38 = vmax.f32 %v353_v29, 0.0 }
  0x3f   :  { %v155_v39 = vmul.f32 %v844_v30, %v1173_v1  ;;  %v156_v40 = vmul.f32 %v845_v31, %v1173_v1  ;;  %1139 = vst [vmem:[%s1503_s3 + $0x80] sm:$0xff] %v1041_v33   ;;  %v354_v42 = vadd.f32 %v936_v22, %v207_v34  ;;  %v941_v44 = vunpack.c.h.bf16 %v1119_v23  ;;  %v62_v30 = vld [vmem:[%s1500_s0 + $0xc0] sm:$0xf] }
  0x40   :  { %v355_v43 = vadd.f32 %v937_v27, %v208_v35  ;;  %v848_v45 = vunpack.c.l.bf16 %v1097_v32  ;;  %v1046_v46 = vpack.c.bf16 %v402_v38, %v401_v37  ;;  %v849_v49 = vunpack.c.h.bf16 %v1097_v32 }
  0x41   :  { %v209_v47 = vadd.f32 %v1187_v7, %v155_v39  ;;  %v210_v48 = vadd.f32 %v1187_v7, %v156_v40  ;;  %v403_v51 = vmax.f32 %v354_v42, 0.0  ;;  %v944_v54 = vunpack.c.l.bf16 %v1120_v41  ;;  %v268_v39 = vld [vmem:[%s1502_s2 + $0xc0] sm:$0xf] }
  0x42   :  { %v404_v52 = vmax.f32 %v355_v43, 0.0  ;;  %v157_v53 = vmul.f32 %v848_v45, %v1173_v1  ;;  %1140 = vst [vmem:[%s1503_s3 + $0x88] sm:$0xff] %v1046_v46   ;;  %v158_v58 = vmul.f32 %v849_v49, %v1173_v1  ;;  %v945_v59 = vunpack.c.h.bf16 %v1120_v41 }
  0x43   :  { %v356_v56 = vadd.f32 %v940_v36, %v209_v47  ;;  %v357_v57 = vadd.f32 %v941_v44, %v210_v48  ;;  %v852_v62 = vunpack.c.l.bf16 %v1098_v50  ;;  %v853_v63 = vunpack.c.h.bf16 %v1098_v50 }
  0x44   :  { %v1051_v60 = vpack.c.bf16 %v404_v52, %v403_v51  ;;  %v211_v61 = vadd.f32 %v1187_v7, %v157_v53  ;;  %v212_v4 = vadd.f32 %v1187_v7, %v158_v58  ;;  %v948_v5 = vunpack.c.l.bf16 %v1121_v55 }
  0x45   :  { %v405_v2 = vmax.f32 %v356_v56, 0.0  ;;  %v406_v3 = vmax.f32 %v357_v57, 0.0  ;;  %v159_v9 = vmul.f32 %v852_v62, %v1173_v1  ;;  %v160_v10 = vmul.f32 %v853_v63, %v1173_v1 }
  0x46   :  { %1141 = vst [vmem:[%s1503_s3 + $0x90] sm:$0xff] %v1051_v60   ;;  %v358_v8 = vadd.f32 %v944_v54, %v211_v61  ;;  %v949_v11 = vunpack.c.h.bf16 %v1121_v55  ;;  %v359_v13 = vadd.f32 %v945_v59, %v212_v4  ;;  %v856_v14 = vunpack.c.l.bf16 %v1099_v0 }
  0x47   :  { %v1056_v12 = vpack.c.bf16 %v406_v3, %v405_v2  ;;  %v857_v15 = vunpack.c.h.bf16 %v1099_v0  ;;  %v213_v18 = vadd.f32 %v1187_v7, %v159_v9  ;;  %v214_v19 = vadd.f32 %v1187_v7, %v160_v10 }
  0x48   :  { %v407_v17 = vmax.f32 %v358_v8, 0.0  ;;  %v952_v20 = vunpack.c.l.bf16 %v1122_v6  ;;  %v408_v22 = vmax.f32 %v359_v13, 0.0  ;;  %v161_v23 = vmul.f32 %v856_v14, %v1173_v1 }
  0x49   :  { %1142 = vst [vmem:[%s1503_s3 + $0x98] sm:$0xff] %v1056_v12   ;;  %v162_v24 = vmul.f32 %v857_v15, %v1173_v1  ;;  %v953_v25 = vunpack.c.h.bf16 %v1122_v6  ;;  %v360_v26 = vadd.f32 %v948_v5, %v213_v18  ;;  %v361_v27 = vadd.f32 %v949_v11, %v214_v19 }
  0x4a   :  { %v860_v28 = vunpack.c.l.bf16 %v1100_v16  ;;  %v861_v29 = vunpack.c.h.bf16 %v1100_v16  ;;  %v1061_v31 = vpack.c.bf16 %v408_v22, %v407_v17  ;;  %v215_v32 = vadd.f32 %v1187_v7, %v161_v23 }
  0x4b   :  { %v216_v33 = vadd.f32 %v1187_v7, %v162_v24  ;;  %v956_v34 = vunpack.c.l.bf16 %v1123_v21  ;;  %v409_v35 = vmax.f32 %v360_v26, 0.0  ;;  %v410_v36 = vmax.f32 %v361_v27, 0.0 }
  0x4c   :  { %v163_v37 = vmul.f32 %v860_v28, %v1173_v1  ;;  %v164_v38 = vmul.f32 %v861_v29, %v1173_v1  ;;  %1143 = vst [vmem:[%s1503_s3 + $0xa0] sm:$0xff] %v1061_v31   ;;  %v362_v40 = vadd.f32 %v952_v20, %v215_v32  ;;  %v957_v42 = vunpack.c.h.bf16 %v1123_v21 }
  0x4d   :  { %v363_v41 = vadd.f32 %v953_v25, %v216_v33  ;;  %v111_v43 = vunpack.c.l.bf16 %v62_v30  ;;  %v1066_v44 = vpack.c.bf16 %v410_v36, %v409_v35  ;;  %v317_v50 = vunpack.c.l.bf16 %v268_v39 }
  0x4e   :  { %v217_v45 = vadd.f32 %v1187_v7, %v163_v37  ;;  %v218_v46 = vadd.f32 %v1187_v7, %v164_v38  ;;  %v411_v47 = vmax.f32 %v362_v40, 0.0 }
  0x4f   :  { %v412_v48 = vmax.f32 %v363_v41, 0.0  ;;  %v165_v49 = vmul.f32 %v1173_v1, %v111_v43  ;;  %1144 = vst [vmem:[%s1503_s3 + $0xa8] sm:$0xff] %v1066_v44  }
  0x50   :  { %v364_v51 = vadd.f32 %v956_v34, %v217_v45  ;;  %v365_v52 = vadd.f32 %v957_v42, %v218_v46 }
  0x51   :  { %v1071_v53 = vpack.c.bf16 %v412_v48, %v411_v47  ;;  %v219_v54 = vadd.f32 %v1187_v7, %v165_v49 }
  0x52   :  { %v413_v55 = vmax.f32 %v364_v51, 0.0  ;;  %v414_v56 = vmax.f32 %v365_v52, 0.0 }
  0x53   :  { %1145 = vst [vmem:[%s1503_s3 + $0xb0] sm:$0xff] %v1071_v53   ;;  %v366_v57 = vadd.f32 %v317_v50, %v219_v54 }
  0x54   :  { %v1076_v58 = vpack.c.bf16 %v414_v56, %v413_v55 }
  0x55   :  { %v415_v59 = vmax.f32 %v366_v57, 0.0 }
  0x56   :  { %1146 = vst [vmem:[%s1503_s3 + $0xb8] sm:$0xff] %v1076_v58  }
  0x57   :  { %v765_v1 = vpack.c.bf16 %v415_v59, %v415_v59 }
  0x59   :  { %661 = vst [vmem:[%s1503_s3 + $0xc0] sm:$0xf] %v765_v1 }

// kernel: bottleneck_forward.7
= control target key start
LH: loop header
LB: loop body
LE: loop exit
PB: predicated region body
PF: predicated region fallthrough
CT: control target
= control target key end

     0   :  { %v1849_v0 = vmov 0.0   ;;  %vm1850_vm0 = vmmov 0   ;;  %vm1047_vm1 = vcmask 1040384   ;;  %s2419_s2 = inlined_call_operand.vmem [shape: bf16[128,128], index: 2, kind: input, shape index: {}]   ;;  %s2420_s0 = inlined_call_operand.vmem [shape: bf16[392,128], index: 0, kind: input, shape index: {}]   ;;  %s2421_s1 = inlined_call_operand.vmem [shape: f32[2,128], index: 1, kind: input, shape index: {}]   ;;  %s2422_s3 = inlined_call_operand.vmem [shape: bf16[392,128], index: 3, kind: output, shape index: {0}]   ;;  %s2423_s4 = inlined_call_operand.vmem [shape: f32[1,2,128], index: 4, kind: output, shape index: {1}]  }
   0x1   :  { %1707 = vmatprep.subr.bf16.mxu0 %v1849_v0  ;;  %v1841_v1 = vld [vmem:[%s2419_s2] sm:$0xff]   ;;  %1723 = vmatprep.mubr.msk.bf16.mxu0 %vm1850_vm0, %v1849_v0  ;;  %v1842_v2 = vld [vmem:[%s2419_s2 + $0x8] sm:$0xff]   ;;  %v1843_v3 = vld [vmem:[%s2419_s2 + $0x10] sm:$0xff]  }
   0x2   :  { %1823 = vmatprep.subr.bf16.mxu1 %v1849_v0  ;;  %1775 = vmatprep.mubr.msk.bf16.mxu1 %vm1850_vm0, %v1849_v0  ;;  %v1844_v4 = vld [vmem:[%s2419_s2 + $0x18] sm:$0xff]   ;;  %v1413_v5 = vld [vmem:[%s2420_s0] sm:$0xff]   ;;  %v1628_v8 = vld [vmem:[%s2420_s0 + $0x8] sm:$0xff]  }
   0x3   :  { %1708 = vmatpush3.bf16.msra.mxu0 %v1841_v1  ;;  %1831 = vmatpush3.bf16.msra.mxu1 %v1841_v1  ;;  %v1414_v6 = vunpack.c.l.bf16 %v1413_v5  ;;  %v1415_v7 = vunpack.c.h.bf16 %v1413_v5  ;;  %v1845_v9 = vld [vmem:[%s2419_s2 + $0x20] sm:$0xff]   ;;  %v1629_v11 = vld [vmem:[%s2420_s0 + $0x10] sm:$0xff]   ;;  %v1418_v12 = vunpack.c.l.bf16 %v1628_v8  ;;  %v1419_v13 = vunpack.c.h.bf16 %v1628_v8  ;;  %v1630_v14 = vld [vmem:[%s2420_s0 + $0x18] sm:$0xff]  }
   0x4   :  { %1709 = vmatprep.subr.bf16.mxu0 %v1849_v0  ;;  %1824 = vmatprep.subr.bf16.mxu1 %v1849_v0  ;;  %v1912_v10 = vld [vmem:[%s2421_s1] ss:$0 sm:$0xff]  ;;  %v1422_v17 = vunpack.c.l.bf16 %v1629_v11  ;;  %v1640_v18 = vld [vmem:[%s2420_s0 + $0x68] sm:$0xff]   ;;  %v1933_v20 = vld [vmem:[%s2421_s1 + $0x1] ss:$0 sm:$0xff]  ;;  %v1423_v21 = vunpack.c.h.bf16 %v1629_v11  ;;  %v1426_v22 = vunpack.c.l.bf16 %v1630_v14  ;;  %v1427_v23 = vunpack.c.h.bf16 %v1630_v14 }
   0x5   :  { %v120_v15 = vmul.f32 %v1414_v6, %v1912_v10  ;;  %v121_v16 = vmul.f32 %v1415_v7, %v1912_v10  ;;  %v1846_v19 = vld [vmem:[%s2419_s2 + $0x28] sm:$0xff]   ;;  %v122_v24 = vmul.f32 %v1418_v12, %v1912_v10  ;;  %v123_v25 = vmul.f32 %v1419_v13, %v1912_v10  ;;  %v1847_v31 = vld [vmem:[%s2419_s2 + $0x30] sm:$0xff]   ;;  %v1635_v45 = vld [vmem:[%s2420_s0 + $0x40] sm:$0xff]  }
   0x6   :  { %v1466_v26 = vunpack.c.l.bf16 %v1640_v18  ;;  %v124_v29 = vmul.f32 %v1422_v17, %v1912_v10  ;;  %v1467_v30 = vunpack.c.h.bf16 %v1640_v18  ;;  %v125_v32 = vmul.f32 %v1423_v21, %v1912_v10  ;;  %v1641_v40 = vld [vmem:[%s2420_s0 + $0x70] sm:$0xff]   ;;  %v1848_v46 = vld [vmem:[%s2419_s2 + $0x38] sm:$0xff]   ;;  %v1993_v5 = vld [vmem:[%s2420_s0 + $0x20] sm:$0xff]  }
   0x7   :  { %1710 = vmatpush3.bf16.msra.mxu0 %v1842_v2  ;;  %1832 = vmatpush3.bf16.msra.mxu1 %v1842_v2  ;;  %v174_v27 = vadd.f32 %v1933_v20, %v120_v15  ;;  %v175_v28 = vadd.f32 %v1933_v20, %v121_v16  ;;  %v126_v34 = vmul.f32 %v1426_v22, %v1912_v10  ;;  %v1470_v52 = vunpack.c.l.bf16 %v1641_v40  ;;  %v1642_v53 = vld [vmem:[%s2420_s0 + $0x78] sm:$0xff]   ;;  %v1643_v18 = vld [vmem:[%s2420_s0 + $0x80] sm:$0xff]  }
   0x8   :  { %1711 = vmatprep.subr.bf16.mxu0 %v1849_v0  ;;  %1825 = vmatprep.subr.bf16.mxu1 %v1849_v0  ;;  %v146_v33 = vmul.f32 %v1466_v26, %v1912_v10  ;;  %v127_v35 = vmul.f32 %v1427_v23, %v1912_v10  ;;  %v147_v36 = vmul.f32 %v1467_v30, %v1912_v10  ;;  %v1471_v56 = vunpack.c.h.bf16 %v1641_v40 }
   0x9   :  { %v1952_v37 = vadd.f32 %v1933_v20, %v122_v24  ;;  %v1955_v38 = vadd.f32 %v1933_v20, %v123_v25  ;;  %v223_v41 = vmax.f32 %v174_v27, 0.0  ;;  %v224_v42 = vmax.f32 %v175_v28, 0.0  ;;  %v1637_v28 = vld [vmem:[%s2420_s0 + $0x50] sm:$0xff]  }
   0xa   :  { %v200_v39 = vadd.f32 %v1933_v20, %v146_v33  ;;  %v178_v43 = vadd.f32 %v1933_v20, %v124_v29  ;;  %v201_v44 = vadd.f32 %v1933_v20, %v147_v36  ;;  %v179_v47 = vadd.f32 %v1933_v20, %v125_v32 }
   0xb   :  { %1712 = vmatpush3.bf16.msra.mxu0 %v1843_v3  ;;  %1833 = vmatpush3.bf16.msra.mxu1 %v1843_v3  ;;  %v1973_v49 = vadd.f32 %v1933_v20, %v126_v34  ;;  %v1976_v50 = vadd.f32 %v1933_v20, %v127_v35  ;;  %v225_v54 = vmax.f32 %v1952_v37, 0.0  ;;  %v226_v55 = vmax.f32 %v1955_v38, 0.0  ;;  %v1636_v3 = vld [vmem:[%s2420_s0 + $0x48] sm:$0xff]  }
   0xc   :  { %1713 = vmatprep.subr.bf16.mxu0 %v1849_v0  ;;  %1826 = vmatprep.subr.bf16.mxu1 %v1849_v0  ;;  %v249_v48 = vmax.f32 %v200_v39, 0.0  ;;  %v250_v51 = vmax.f32 %v201_v44, 0.0  ;;  %v1446_v57 = vunpack.c.l.bf16 %v1635_v45  ;;  %v272_v58 = vpack.c.bf16 %v224_v42, %v223_v41  ;;  %v1644_v42 = vld [vmem:[%s2420_s0 + $0x88] sm:$0xff]  }
   0xd   :  { %v227_v59 = vmax.f32 %v178_v43, 0.0  ;;  %v148_v60 = vmul.f32 %v1470_v52, %v1912_v10  ;;  %v1447_v61 = vunpack.c.h.bf16 %v1635_v45  ;;  %v149_v63 = vmul.f32 %v1471_v56, %v1912_v10  ;;  %v1638_v43 = vld [vmem:[%s2420_s0 + $0x58] sm:$0xff]  }
   0xe   :  { %v285_v62 = vpack.c.bf16 %v250_v51, %v249_v48  ;;  %v136_v1 = vmul.f32 %v1446_v57, %v1912_v10  ;;  %v1474_v2 = vunpack.c.l.bf16 %v1642_v53  ;;  %v1475_v8 = vunpack.c.h.bf16 %v1642_v53 }
   0xf   :  { %1714 = vmatpush3.bf16.msra.mxu0 %v1844_v4  ;;  %1834 = vmatpush3.bf16.msra.mxu1 %v1844_v4  ;;  %v228_v4 = vmax.f32 %v179_v47, 0.0  ;;  %v202_v6 = vadd.f32 %v1933_v20, %v148_v60  ;;  %v137_v7 = vmul.f32 %v1447_v61, %v1912_v10  ;;  %v203_v11 = vadd.f32 %v1933_v20, %v149_v63 }
  0x10   :  { %1715 = vmatprep.subr.bf16.mxu0 %v1849_v0  ;;  %1827 = vmatprep.subr.bf16.mxu1 %v1849_v0  ;;  %v190_v12 = vadd.f32 %v1933_v20, %v136_v1  ;;  %v150_v13 = vmul.f32 %v1474_v2, %v1912_v10  ;;  %v230_v14 = vmax.f32 %v1976_v50, 0.0  ;;  %v151_v16 = vmul.f32 %v1475_v8, %v1912_v10  ;;  %v1639_v1 = vld [vmem:[%s2420_s0 + $0x60] sm:$0xff]   ;;  %v2058_v2 = vld [vmem:[%s2420_s0 + $0x30] sm:$0xff]  }
  0x11   :  { %v191_v15 = vadd.f32 %v1933_v20, %v137_v7  ;;  %v1450_v17 = vunpack.c.l.bf16 %v1636_v3  ;;  %v251_v21 = vmax.f32 %v202_v6, 0.0  ;;  %v252_v22 = vmax.f32 %v203_v11, 0.0 }
  0x12   :  { %v239_v23 = vmax.f32 %v190_v12, 0.0  ;;  %v204_v25 = vadd.f32 %v1933_v20, %v150_v13  ;;  %v1451_v26 = vunpack.c.h.bf16 %v1636_v3  ;;  %v273_v29 = vpack.c.bf16 %v226_v55, %v225_v54 }
  0x13   :  { %1716 = vmatpush3.bf16.msra.mxu0 %v1845_v9  ;;  %1835 = vmatpush3.bf16.msra.mxu1 %v1845_v9  ;;  %v229_v9 = vmax.f32 %v1973_v49, 0.0  ;;  %v240_v24 = vmax.f32 %v191_v15, 0.0  ;;  %v138_v27 = vmul.f32 %v1450_v17, %v1912_v10  ;;  %v274_v30 = vpack.c.bf16 %v228_v4, %v227_v59 }
  0x14   :  { %1717 = vmatprep.subr.bf16.mxu0 %v1849_v0  ;;  %1828 = vmatprep.subr.bf16.mxu1 %v1849_v0  ;;  %v205_v32 = vadd.f32 %v1933_v20, %v151_v16  ;;  %v1478_v33 = vunpack.c.l.bf16 %v1643_v18  ;;  %v139_v35 = vmul.f32 %v1451_v26, %v1912_v10  ;;  %v1479_v37 = vunpack.c.h.bf16 %v1643_v18 }
  0x15   :  { %v2023_v34 = vpack.c.bf16 %v240_v24, %v239_v23  ;;  %v192_v36 = vadd.f32 %v1933_v20, %v138_v27  ;;  %v1431_v38 = vunpack.c.h.bf16 %v1993_v5  ;;  %v286_v39 = vpack.c.bf16 %v252_v22, %v251_v21  ;;  %v1645_v24 = vld [vmem:[%s2420_s0 + $0x90] sm:$0xff]  }
  0x16   :  { %v1454_v40 = vunpack.c.l.bf16 %v1637_v28  ;;  %v1455_v41 = vunpack.c.h.bf16 %v1637_v28  ;;  %v253_v45 = vmax.f32 %v204_v25, 0.0  ;;  %v254_v48 = vmax.f32 %v205_v32, 0.0 }
  0x17   :  { %1718 = vmatpush3.bf16.msra.mxu0 %v1846_v19  ;;  %1836 = vmatpush3.bf16.msra.mxu1 %v1846_v19  ;;  %v1430_v19 = vunpack.c.l.bf16 %v1993_v5  ;;  %v241_v47 = vmax.f32 %v192_v36, 0.0  ;;  %v152_v49 = vmul.f32 %v1478_v33, %v1912_v10  ;;  %v153_v53 = vmul.f32 %v1479_v37, %v1912_v10 }
  0x18   :  { %1719 = vmatprep.subr.bf16.mxu0 %v1849_v0  ;;  %1829 = vmatprep.subr.bf16.mxu1 %v1849_v0  ;;  %v140_v50 = vmul.f32 %v1454_v40, %v1912_v10  ;;  %v141_v51 = vmul.f32 %v1455_v41, %v1912_v10  ;;  %v1482_v54 = vunpack.c.l.bf16 %v1644_v42  ;;  %v1458_v55 = vunpack.c.l.bf16 %v1638_v43 }
  0x19   :  { %v2042_v56 = vpack.c.bf16 %v230_v14, %v229_v9  ;;  %v1483_v59 = vunpack.c.h.bf16 %v1644_v42  ;;  %v128_v60 = vmul.f32 %v1430_v19, %v1912_v10  ;;  %v129_v61 = vmul.f32 %v1431_v38, %v1912_v10 }
  0x1a   :  { %v194_v57 = vadd.f32 %v1933_v20, %v140_v50  ;;  %v1459_v63 = vunpack.c.h.bf16 %v1638_v43  ;;  %v287_v3 = vpack.c.bf16 %v254_v48, %v253_v45  ;;  %v142_v6 = vmul.f32 %v1458_v55, %v1912_v10  ;;  %v1649_v48 = vld [vmem:[%s2420_s0 + $0xb0] sm:$0xff]  }
  0x1b   :  { %1720 = vmatpush3.bf16.msra.mxu0 %v1847_v31  ;;  %1837 = vmatpush3.bf16.msra.mxu1 %v1847_v31  ;;  %v2020_v31 = vld [vmem:[%s2420_s0 + $0x28] sm:$0xff]   ;;  %v206_v7 = vadd.f32 %v1933_v20, %v152_v49  ;;  %v207_v8 = vadd.f32 %v1933_v20, %v153_v53  ;;  %v154_v9 = vmul.f32 %v1482_v54, %v1912_v10  ;;  %v1462_v15 = vunpack.c.l.bf16 %v1639_v1  ;;  %v1650_v54 = vld [vmem:[%s2420_s0 + $0xb8] sm:$0xff]  }
  0x1c   :  { %1721 = vmatprep.subr.bf16.mxu0 %v1849_v0  ;;  %1830 = vmatprep.subr.bf16.mxu1 %v1849_v0  ;;  %v1434_v44 = vunpack.c.l.bf16 %v2020_v31  ;;  %v243_v4 = vmax.f32 %v194_v57, 0.0  ;;  %v143_v11 = vmul.f32 %v1459_v63, %v1912_v10  ;;  %v155_v13 = vmul.f32 %v1483_v59, %v1912_v10 }
  0x1d   :  { %v196_v14 = vadd.f32 %v1933_v20, %v142_v6  ;;  %v1435_v16 = vunpack.c.h.bf16 %v2020_v31  ;;  %v1438_v17 = vunpack.c.l.bf16 %v2058_v2  ;;  %v1463_v19 = vunpack.c.h.bf16 %v1639_v1 }
  0x1e   :  { %v197_v18 = vadd.f32 %v1933_v20, %v143_v11  ;;  %v182_v21 = vadd.f32 %v1933_v20, %v128_v60  ;;  %v183_v22 = vadd.f32 %v1933_v20, %v129_v61  ;;  %v144_v25 = vmul.f32 %v1462_v15, %v1912_v10 }
  0x1f   :  { %1722 = vmatpush3.bf16.msra.mxu0 %v1848_v46  ;;  %1838 = vmatpush3.bf16.msra.mxu1 %v1848_v46  ;;  %v193_v46 = vadd.f32 %v1933_v20, %v139_v35  ;;  %v245_v23 = vmax.f32 %v196_v14, 0.0  ;;  %v130_v26 = vmul.f32 %v1434_v44, %v1912_v10  ;;  %v255_v27 = vmax.f32 %v206_v7, 0.0  ;;  %v65_v7 = vld [vmem:[%s2420_s0 + $0xc0] sm:$0xf] }
  0x20   :  { %v246_v28 = vmax.f32 %v197_v18, 0.0  ;;  %v256_v31 = vmax.f32 %v207_v8, 0.0  ;;  %v208_v32 = vadd.f32 %v1933_v20, %v154_v9  ;;  %v209_v33 = vadd.f32 %v1933_v20, %v155_v13 }
  0x21   :  { %v242_v52 = vmax.f32 %v193_v46, 0.0  ;;  %v198_v35 = vadd.f32 %v1933_v20, %v144_v25  ;;  %v131_v36 = vmul.f32 %v1435_v16, %v1912_v10  ;;  %v1486_v38 = vunpack.c.l.bf16 %v1645_v24 }
  0x22   :  { %1724 = vmatmul.mubr.bf16.vlgmr.msra.gmra.mrb[0].mxu0 %v272_v58  ;;  %1776 = vmatmul.mubr.bf16.vlgmr.msra.gmra.mrb[0].mxu1 %v285_v62  ;;  %v195_v58 = vadd.f32 %v1933_v20, %v141_v51  ;;  %v2091_v37 = vpack.c.bf16 %v246_v28, %v245_v23  ;;  %v231_v40 = vmax.f32 %v182_v21, 0.0  ;;  %v232_v41 = vmax.f32 %v183_v22, 0.0 }
  0x23   :  { %1727 = vmatprep.mubr.msk.bf16.mxu0 %vm1850_vm0, %v1849_v0  ;;  %1779 = vmatprep.mubr.msk.bf16.mxu1 %vm1850_vm0, %v1849_v0  ;;  %v2050_v62 = vpack.c.bf16 %v242_v52, %v241_v47  ;;  %v1439_v42 = vunpack.c.h.bf16 %v2058_v2  ;;  %v247_v43 = vmax.f32 %v198_v35, 0.0  ;;  %v2096_v44 = vadd.f32 %v1933_v20, %v130_v26  ;;  %v1646_v52 = vld [vmem:[%s2420_s0 + $0x98] sm:$0xff]  }
  0x24   :  { %v244_v5 = vmax.f32 %v195_v58, 0.0  ;;  %v1487_v45 = vunpack.c.h.bf16 %v1645_v24  ;;  %v288_v49 = vpack.c.bf16 %v256_v31, %v255_v27  ;;  %v257_v50 = vmax.f32 %v208_v32, 0.0  ;;  %v1634_v2 = vld [vmem:[%s2420_s0 + $0x38] sm:$0xff]  }
  0x25   :  { %v258_v51 = vmax.f32 %v209_v33, 0.0  ;;  %v185_v55 = vadd.f32 %v1933_v20, %v131_v36  ;;  %v156_v57 = vmul.f32 %v1486_v38, %v1912_v10  ;;  %v276_v60 = vpack.c.bf16 %v232_v41, %v231_v40 }
  0x26   :  { %v2065_v12 = vpack.c.bf16 %v244_v5, %v243_v4  ;;  %v1502_v63 = vunpack.c.l.bf16 %v1649_v48  ;;  %v1503_v1 = vunpack.c.h.bf16 %v1649_v48  ;;  %v1490_v4 = vunpack.c.l.bf16 %v1646_v52 }
  0x27   :  { %v1506_v6 = vunpack.c.l.bf16 %v1650_v54  ;;  %v289_v8 = vpack.c.bf16 %v258_v51, %v257_v50  ;;  %v210_v13 = vadd.f32 %v1933_v20, %v156_v57  ;;  %v114_v22 = vunpack.c.l.bf16 %v65_v7 }
  0x28   :  { %v164_v11 = vmul.f32 %v1502_v63, %v1912_v10  ;;  %v165_v15 = vmul.f32 %v1503_v1, %v1912_v10  ;;  %v1491_v24 = vunpack.c.h.bf16 %v1646_v52  ;;  %v132_v35 = vmul.f32 %v1438_v17, %v1912_v10 }
  0x29   :  { %v166_v16 = vmul.f32 %v1506_v6, %v1912_v10  ;;  %v168_v31 = vmul.f32 %v1912_v10, %v114_v22  ;;  %v234_v40 = vmax.f32 %v185_v55, 0.0  ;;  %v158_v41 = vmul.f32 %v1490_v4, %v1912_v10 }
  0x2a   :  { %1728 = vmatmul.mubr.bf16.gmra.mrb[4].mxu0 %v273_v29  ;;  %1780 = vmatmul.mubr.bf16.gmra.mrb[4].mxu1 %v286_v39  ;;  %v145_v29 = vmul.f32 %v1463_v19, %v1912_v10  ;;  %v218_v19 = vadd.f32 %v1933_v20, %v164_v11  ;;  %v219_v25 = vadd.f32 %v1933_v20, %v165_v15  ;;  %v259_v17 = vmax.f32 %v210_v13, 0.0 }
  0x2b   :  { %1731 = vmatprep.mubr.msk.bf16.mxu0 %vm1850_vm0, %v1849_v0  ;;  %1783 = vmatprep.mubr.msk.bf16.mxu1 %vm1850_vm0, %v1849_v0  ;;  %v220_v26 = vadd.f32 %v1933_v20, %v166_v16  ;;  %v2142_v38 = vadd.f32 %v1933_v20, %v168_v31  ;;  %v1442_v50 = vunpack.c.l.bf16 %v1634_v2  ;;  %v1443_v51 = vunpack.c.h.bf16 %v1634_v2 }
  0x2c   :  { %v199_v39 = vadd.f32 %v1933_v20, %v145_v29  ;;  %v267_v28 = vmax.f32 %v218_v19, 0.0  ;;  %v268_v32 = vmax.f32 %v219_v25, 0.0 }
  0x2d   :  { %v269_v33 = vmax.f32 %v220_v26, 0.0  ;;  %v135_v63 = vmul.f32 %v1443_v51, %v1912_v10 }
  0x2e   :  { %v248_v46 = vmax.f32 %v199_v39, 0.0  ;;  %v233_v39 = vmax.f32 %v2096_v44, 0.0  ;;  %v1647_v44 = vld [vmem:[%s2420_s0 + $0xa0] sm:$0xff]  }
  0x2f   :  { %v1494_v52 = vunpack.c.l.bf16 %v1647_v44  ;;  %v1495_v57 = vunpack.c.h.bf16 %v1647_v44 }
  0x30   :  { %v2109_v58 = vpack.c.bf16 %v248_v46, %v247_v43  ;;  %v294_v43 = vpack.c.bf16 %v268_v32, %v267_v28 }
  0x31   :  { %v160_v4 = vmul.f32 %v1494_v52, %v1912_v10 }
  0x32   :  { %1732 = vmatmul.mubr.bf16.gmra.mrb[8].mxu0 %v274_v30  ;;  %1784 = vmatmul.mubr.bf16.gmra.mrb[8].mxu1 %v287_v3  ;;  %v1648_v30 = vld [vmem:[%s2420_s0 + $0xa8] sm:$0xff]   ;;  %v157_v3 = vmul.f32 %v1487_v45, %v1912_v10  ;;  %v159_v45 = vmul.f32 %v1491_v24, %v1912_v10 }
  0x33   :  { %1735 = vmatprep.mubr.msk.bf16.mxu0 %vm1850_vm0, %v1849_v0  ;;  %1787 = vmatprep.mubr.msk.bf16.mxu1 %vm1850_vm0, %v1849_v0  ;;  %v1498_v47 = vunpack.c.l.bf16 %v1648_v30  ;;  %v1499_v53 = vunpack.c.h.bf16 %v1648_v30  ;;  %v133_v30 = vmul.f32 %v1439_v42, %v1912_v10  ;;  %v214_v11 = vadd.f32 %v1933_v20, %v160_v4 }
  0x34   :  { %v211_v23 = vadd.f32 %v1933_v20, %v157_v3  ;;  %v213_v55 = vadd.f32 %v1933_v20, %v159_v45 }
  0x35   :  { %v162_v59 = vmul.f32 %v1498_v47, %v1912_v10  ;;  %v163_v61 = vmul.f32 %v1499_v53, %v1912_v10  ;;  %v186_v47 = vadd.f32 %v1933_v20, %v132_v35  ;;  %v187_v48 = vadd.f32 %v1933_v20, %v133_v30 }
  0x36   :  { %v260_v42 = vmax.f32 %v211_v23, 0.0  ;;  %v262_v3 = vmax.f32 %v213_v55, 0.0 }
  0x37   :  { %v216_v5 = vadd.f32 %v1933_v20, %v162_v59  ;;  %v217_v9 = vadd.f32 %v1933_v20, %v163_v61  ;;  %v235_v59 = vmax.f32 %v186_v47, 0.0  ;;  %v134_v61 = vmul.f32 %v1442_v50, %v1912_v10 }
  0x38   :  { %v290_v53 = vpack.c.bf16 %v260_v42, %v259_v17 }
  0x39   :  { %v265_v14 = vmax.f32 %v216_v5, 0.0  ;;  %v266_v18 = vmax.f32 %v217_v9, 0.0  ;;  %v161_v5 = vmul.f32 %v1495_v57, %v1912_v10  ;;  %v188_v7 = vadd.f32 %v1933_v20, %v134_v61 }
  0x3a   :  { %1736 = vmatmul.mubr.bf16.gmra.mrb[12].mxu0 %v2042_v56  ;;  %1788 = vmatmul.mubr.bf16.gmra.mrb[12].mxu1 %v288_v49  ;;  %v1507_v56 = vunpack.c.h.bf16 %v1650_v54  ;;  %v277_v49 = vpack.c.bf16 %v234_v40, %v233_v39  ;;  %v212_v54 = vadd.f32 %v1933_v20, %v158_v41 }
  0x3b   :  { %1739 = vmatprep.mubr.msk.bf16.mxu0 %vm1850_vm0, %v1849_v0  ;;  %1791 = vmatprep.mubr.msk.bf16.mxu1 %vm1850_vm0, %v1849_v0  ;;  %v2133_v27 = vpack.c.bf16 %v266_v18, %v265_v14  ;;  %v237_v13 = vmax.f32 %v188_v7, 0.0 }
  0x3c   :  { %v167_v21 = vmul.f32 %v1507_v56, %v1912_v10  ;;  %v261_v1 = vmax.f32 %v212_v54, 0.0  ;;  %v215_v56 = vadd.f32 %v1933_v20, %v161_v5  ;;  %v263_v10 = vmax.f32 %v214_v11, 0.0 }
  0x3e   :  { %v221_v29 = vadd.f32 %v1933_v20, %v167_v21  ;;  %v291_v9 = vpack.c.bf16 %v262_v3, %v261_v1  ;;  %v264_v15 = vmax.f32 %v215_v56, 0.0 }
  0x40   :  { %v270_v36 = vmax.f32 %v221_v29, 0.0  ;;  %v292_v18 = vpack.c.bf16 %v264_v15, %v263_v10 }
  0x42   :  { %1740 = vmatmul.mubr.bf16.gmra.mrb[16].mxu0 %v276_v60  ;;  %1792 = vmatmul.mubr.bf16.gmra.mrb[16].mxu1 %v289_v8  ;;  %v295_v46 = vpack.c.bf16 %v270_v36, %v269_v33  ;;  %v236_v60 = vmax.f32 %v187_v48, 0.0  ;;  %v189_v8 = vadd.f32 %v1933_v20, %v135_v63  ;;  %v271_v20 = vmax.f32 %v2142_v38, 0.0 }
  0x43   :  { %1743 = vmatprep.mubr.msk.bf16.mxu0 %vm1850_vm0, %v1849_v0  ;;  %1795 = vmatprep.mubr.msk.bf16.mxu1 %vm1850_vm0, %v1849_v0 }
  0x44   :  { %v278_v6 = vpack.c.bf16 %v236_v60, %v235_v59  ;;  %v238_v14 = vmax.f32 %v189_v8, 0.0 }
  0x46   :  { %v279_v16 = vpack.c.bf16 %v238_v14, %v237_v13 }
  0x4a   :  { %1744 = vmatmul.mubr.bf16.gmra.mrb[20].mxu0 %v277_v49  ;;  %1796 = vmatmul.mubr.bf16.gmra.mrb[20].mxu1 %v290_v53 }
  0x4b   :  { %1747 = vmatprep.mubr.msk.bf16.mxu0 %vm1850_vm0, %v1849_v0  ;;  %1799 = vmatprep.mubr.msk.bf16.mxu1 %vm1850_vm0, %v1849_v0 }
  0x52   :  { %1748 = vmatmul.mubr.bf16.gmra.mrb[24].mxu0 %v278_v6  ;;  %1800 = vmatmul.mubr.bf16.gmra.mrb[24].mxu1 %v291_v9 }
  0x53   :  { %1751 = vmatprep.mubr.msk.bf16.mxu0 %vm1850_vm0, %v1849_v0  ;;  %1803 = vmatprep.mubr.msk.bf16.mxu1 %vm1850_vm0, %v1849_v0 }
  0x5a   :  { %1752 = vmatmul.mubr.bf16.gmra.mrb[28].mxu0 %v279_v16  ;;  %1804 = vmatmul.mubr.bf16.gmra.mrb[28].mxu1 %v292_v18 }
  0x5b   :  { %1755 = vmatprep.mubr.msk.bf16.mxu0 %vm1850_vm0, %v1849_v0  ;;  %1807 = vmatprep.mubr.msk.bf16.mxu1 %vm1850_vm0, %v1849_v0 }
  0x62   :  { %1756 = vmatmul.mubr.bf16.gmra.mrb[32].mxu0 %v2023_v34  ;;  %1808 = vmatmul.mubr.bf16.gmra.mrb[32].mxu1 %v2133_v27  ;;  %v296_v34 = vpack.c.bf16 %v271_v20, %v271_v20 }
  0x63   :  { %1759 = vmatprep.mubr.msk.bf16.mxu0 %vm1850_vm0, %v1849_v0  ;;  %1811 = vmatprep.mubr.msk.bf16.mxu1 %vm1850_vm0, %v1849_v0 }
  0x6a   :  { %1760 = vmatmul.mubr.bf16.gmra.mrb[36].mxu0 %v2050_v62  ;;  %1812 = vmatmul.mubr.bf16.gmra.mrb[36].mxu1 %v294_v43 }
  0x6b   :  { %1763 = vmatprep.mubr.msk.bf16.mxu0 %vm1850_vm0, %v1849_v0  ;;  %1815 = vmatprep.mubr.msk.bf16.mxu1 %vm1850_vm0, %v1849_v0 }
  0x72   :  { %1764 = vmatmul.mubr.bf16.gmra.mrb[40].mxu0 %v2065_v12  ;;  %1816 = vmatmul.mubr.bf16.gmra.mrb[40].mxu1 %v295_v46 }
  0x73   :  { %1767 = vmatprep.mubr.msk.bf16.mxu0 %vm1850_vm0, %v1849_v0  ;;  %1819 = vmatprep.mubr.msk.bf16.mxu1 %vm1850_vm0, %v1849_v0 }
  0x7a   :  { %1768 = vmatmul.mubr.bf16.gmra.mrb[44].mxu0 %v2091_v37  ;;  %1820 = vmatmul.mubr.bf16.gmra.mrb[44].mxu1 %v296_v34 }
  0x7b   :  { %1771 = vmatprep.mubr.msk.bf16.mxu0 %vm1850_vm0, %v1849_v0 }
  0x82   :  { %1772 = vmatmul.mubr.bf16.gmra.mrb[48].mxu0 %v2109_v58 }
  0xf5   :  { %v395_v62 = vpop.f32.mrb[0].mxu0  ;;  %v2202_v19 = vpop.f32.mrb[0].mxu1 }
  0xf6   :  { %v1725_v12 = vpop.f32.mrb[1].mxu0  ;;  %v1777_v22 = vpop.f32.mrb[1].mxu1  ;;  %v944_v23 = vmul.f32 %v395_v62, %v395_v62 }
  0xf7   :  { %v398_v21 = vpop.f32.mrb[2].mxu0  ;;  %v2204_v28 = vpop.f32.mrb[2].mxu1 }
  0xf8   :  { %v890_v24 = vadd.f32 %v398_v21, %v395_v62  ;;  %v945_v25 = vmul.f32 %v398_v21, %v398_v21  ;;  %v1511_v26 = vpack.c.bf16 %v398_v21, %v395_v62  ;;  %v1726_v27 = vpop.f32.mrb[3].mxu0  ;;  %v1576_v37 = vpack.c.bf16 %v2204_v28, %v2202_v19  ;;  %v1778_v0 = vpop.f32.mrb[3].mxu1 }
  0xfa   :  { %v993_v29 = vadd.f32 %v945_v25, %v944_v23  ;;  %1512 = vst [vmem:[%s2422_s3] sm:$0xff] %v1511_v26   ;;  %1663 = vst [vmem:[%s2422_s3 + $0x68] sm:$0xff] %v1576_v37  }
  0xfd   :  { %v403_v58 = vpop.f32.mrb[4].mxu0  ;;  %v2214_v35 = vpop.f32.mrb[4].mxu1 }
  0xfe   :  { %v891_v31 = vadd.f32 %v890_v24, %v403_v58  ;;  %v946_v32 = vmul.f32 %v403_v58, %v403_v58  ;;  %v1729_v33 = vpop.f32.mrb[5].mxu0  ;;  %v1781_v36 = vpop.f32.mrb[5].mxu1 }
  0xff   :  { %v406_v30 = vpop.f32.mrb[6].mxu0  ;;  %v2216_v2 = vpop.f32.mrb[6].mxu1 }
 0x100   :  { %v994_v38 = vadd.f32 %v993_v29, %v946_v32  ;;  %v892_v39 = vadd.f32 %v891_v31, %v406_v30  ;;  %v947_v40 = vmul.f32 %v406_v30, %v406_v30  ;;  %v1516_v41 = vpack.c.bf16 %v406_v30, %v403_v58  ;;  %v1730_v43 = vpop.f32.mrb[7].mxu0  ;;  %v1782_v42 = vpop.f32.mrb[7].mxu1 }
 0x101   :  { %v1581_v17 = vpack.c.bf16 %v2216_v2, %v2214_v35 }
 0x102   :  { %v995_v45 = vadd.f32 %v994_v38, %v947_v40  ;;  %1651 = vst [vmem:[%s2422_s3 + $0x8] sm:$0xff] %v1516_v41  }
 0x103   :  { %1664 = vst [vmem:[%s2422_s3 + $0x70] sm:$0xff] %v1581_v17  }
 0x105   :  { %v411_v44 = vpop.f32.mrb[8].mxu0  ;;  %v2226_v49 = vpop.f32.mrb[8].mxu1 }
 0x106   :  { %v893_v46 = vadd.f32 %v892_v39, %v411_v44  ;;  %v948_v47 = vmul.f32 %v411_v44, %v411_v44  ;;  %v1733_v48 = vpop.f32.mrb[9].mxu0  ;;  %v1785_v51 = vpop.f32.mrb[9].mxu1 }
 0x107   :  { %v414_v50 = vpop.f32.mrb[10].mxu0  ;;  %v2228_v59 = vpop.f32.mrb[10].mxu1 }
 0x108   :  { %v996_v52 = vadd.f32 %v995_v45, %v948_v47  ;;  %v894_v53 = vadd.f32 %v893_v46, %v414_v50  ;;  %v949_v54 = vmul.f32 %v414_v50, %v414_v50  ;;  %v1521_v55 = vpack.c.bf16 %v414_v50, %v411_v44  ;;  %v1734_v57 = vpop.f32.mrb[11].mxu0  ;;  %v1786_v61 = vpop.f32.mrb[11].mxu1 }
 0x109   :  { %v1586_v60 = vpack.c.bf16 %v2228_v59, %v2226_v49 }
 0x10a   :  { %v997_v63 = vadd.f32 %v996_v52, %v949_v54  ;;  %1652 = vst [vmem:[%s2422_s3 + $0x10] sm:$0xff] %v1521_v55  }
 0x10b   :  { %1665 = vst [vmem:[%s2422_s3 + $0x78] sm:$0xff] %v1586_v60  }
 0x10d   :  { %v419_v1 = vpop.f32.mrb[12].mxu0  ;;  %v2238_v6 = vpop.f32.mrb[12].mxu1 }
 0x10e   :  { %v895_v3 = vadd.f32 %v894_v53, %v419_v1  ;;  %v950_v4 = vmul.f32 %v419_v1, %v419_v1  ;;  %v1737_v5 = vpop.f32.mrb[13].mxu0  ;;  %v1789_v8 = vpop.f32.mrb[13].mxu1 }
 0x10f   :  { %v422_v7 = vpop.f32.mrb[14].mxu0  ;;  %v2240_v10 = vpop.f32.mrb[14].mxu1 }
 0x110   :  { %v998_v9 = vadd.f32 %v997_v63, %v950_v4  ;;  %v896_v11 = vadd.f32 %v895_v3, %v422_v7  ;;  %v951_v56 = vmul.f32 %v422_v7, %v422_v7  ;;  %v1526_v13 = vpack.c.bf16 %v422_v7, %v419_v1  ;;  %v1738_v14 = vpop.f32.mrb[15].mxu0  ;;  %v1790_v16 = vpop.f32.mrb[15].mxu1 }
 0x111   :  { %v1591_v15 = vpack.c.bf16 %v2240_v10, %v2238_v6 }
 0x112   :  { %v999_v18 = vadd.f32 %v998_v9, %v951_v56  ;;  %1653 = vst [vmem:[%s2422_s3 + $0x18] sm:$0xff] %v1526_v13  }
 0x113   :  { %1666 = vst [vmem:[%s2422_s3 + $0x80] sm:$0xff] %v1591_v15  }
 0x115   :  { %v427_v20 = vpop.f32.mrb[16].mxu0  ;;  %v2250_v21 = vpop.f32.mrb[16].mxu1 }
 0x116   :  { %v897_v34 = vadd.f32 %v896_v11, %v427_v20  ;;  %v952_v62 = vmul.f32 %v427_v20, %v427_v20  ;;  %v1741_v12 = vpop.f32.mrb[17].mxu0  ;;  %v1793_v23 = vpop.f32.mrb[17].mxu1 }
 0x117   :  { %v430_v22 = vpop.f32.mrb[18].mxu0  ;;  %v2252_v0 = vpop.f32.mrb[18].mxu1 }
 0x118   :  { %v1000_v24 = vadd.f32 %v999_v18, %v952_v62  ;;  %v898_v25 = vadd.f32 %v897_v34, %v430_v22  ;;  %v953_v26 = vmul.f32 %v430_v22, %v430_v22  ;;  %v1531_v27 = vpack.c.bf16 %v430_v22, %v427_v20  ;;  %v1742_v37 = vpop.f32.mrb[19].mxu0  ;;  %v1794_v58 = vpop.f32.mrb[19].mxu1 }
 0x119   :  { %v1596_v29 = vpack.c.bf16 %v2252_v0, %v2250_v21 }
 0x11a   :  { %v1001_v31 = vadd.f32 %v1000_v24, %v953_v26  ;;  %1654 = vst [vmem:[%s2422_s3 + $0x20] sm:$0xff] %v1531_v27  }
 0x11b   :  { %1667 = vst [vmem:[%s2422_s3 + $0x88] sm:$0xff] %v1596_v29  }
 0x11d   :  { %v435_v32 = vpop.f32.mrb[20].mxu0  ;;  %v2262_v38 = vpop.f32.mrb[20].mxu1 }
 0x11e   :  { %v899_v33 = vadd.f32 %v898_v25, %v435_v32  ;;  %v954_v30 = vmul.f32 %v435_v32, %v435_v32  ;;  %v1745_v36 = vpop.f32.mrb[21].mxu0  ;;  %v1797_v40 = vpop.f32.mrb[21].mxu1 }
 0x11f   :  { %v438_v39 = vpop.f32.mrb[22].mxu0  ;;  %v2264_v44 = vpop.f32.mrb[22].mxu1 }
 0x120   :  { %v1002_v41 = vadd.f32 %v1001_v31, %v954_v30  ;;  %v900_v43 = vadd.f32 %v899_v33, %v438_v39  ;;  %v955_v17 = vmul.f32 %v438_v39, %v438_v39  ;;  %v1536_v42 = vpack.c.bf16 %v438_v39, %v435_v32  ;;  %v1746_v45 = vpop.f32.mrb[23].mxu0  ;;  %v1798_v47 = vpop.f32.mrb[23].mxu1 }
 0x121   :  { %v1601_v46 = vpack.c.bf16 %v2264_v44, %v2262_v38 }
 0x122   :  { %v1003_v48 = vadd.f32 %v1002_v41, %v955_v17  ;;  %1655 = vst [vmem:[%s2422_s3 + $0x28] sm:$0xff] %v1536_v42  }
 0x123   :  { %1668 = vst [vmem:[%s2422_s3 + $0x90] sm:$0xff] %v1601_v46  }
 0x125   :  { %v443_v50 = vpop.f32.mrb[24].mxu0  ;;  %v2274_v54 = vpop.f32.mrb[24].mxu1 }
 0x126   :  { %v901_v51 = vadd.f32 %v900_v43, %v443_v50  ;;  %v956_v52 = vmul.f32 %v443_v50, %v443_v50  ;;  %v1749_v53 = vpop.f32.mrb[25].mxu0  ;;  %v1801_v57 = vpop.f32.mrb[25].mxu1 }
 0x127   :  { %v446_v55 = vpop.f32.mrb[26].mxu0  ;;  %v2276_v4 = vpop.f32.mrb[26].mxu1 }
 0x128   :  { %v1004_v60 = vadd.f32 %v1003_v48, %v956_v52  ;;  %v902_v61 = vadd.f32 %v901_v51, %v446_v55  ;;  %v957_v63 = vmul.f32 %v446_v55, %v446_v55  ;;  %v1541_v1 = vpack.c.bf16 %v446_v55, %v443_v50  ;;  %v1750_v3 = vpop.f32.mrb[27].mxu0  ;;  %v1802_v7 = vpop.f32.mrb[27].mxu1 }
 0x129   :  { %v1606_v5 = vpack.c.bf16 %v2276_v4, %v2274_v54 }
 0x12a   :  { %v1005_v8 = vadd.f32 %v1004_v60, %v957_v63  ;;  %1656 = vst [vmem:[%s2422_s3 + $0x30] sm:$0xff] %v1541_v1  }
 0x12b   :  { %1669 = vst [vmem:[%s2422_s3 + $0x98] sm:$0xff] %v1606_v5  }
 0x12d   :  { %v451_v9 = vpop.f32.mrb[28].mxu0  ;;  %v2286_v14 = vpop.f32.mrb[28].mxu1 }
 0x12e   :  { %v903_v11 = vadd.f32 %v902_v61, %v451_v9  ;;  %v958_v56 = vmul.f32 %v451_v9, %v451_v9  ;;  %v1753_v13 = vpop.f32.mrb[29].mxu0  ;;  %v1805_v16 = vpop.f32.mrb[29].mxu1 }
 0x12f   :  { %v454_v15 = vpop.f32.mrb[30].mxu0  ;;  %v2288_v22 = vpop.f32.mrb[30].mxu1 }
 0x130   :  { %v1006_v18 = vadd.f32 %v1005_v8, %v958_v56  ;;  %v904_v20 = vadd.f32 %v903_v11, %v454_v15  ;;  %v959_v34 = vmul.f32 %v454_v15, %v454_v15  ;;  %v1546_v62 = vpack.c.bf16 %v454_v15, %v451_v9  ;;  %v1754_v12 = vpop.f32.mrb[31].mxu0  ;;  %v1806_v24 = vpop.f32.mrb[31].mxu1 }
 0x131   :  { %v1611_v23 = vpack.c.bf16 %v2288_v22, %v2286_v14 }
 0x132   :  { %v1007_v25 = vadd.f32 %v1006_v18, %v959_v34  ;;  %1657 = vst [vmem:[%s2422_s3 + $0x38] sm:$0xff] %v1546_v62  }
 0x133   :  { %1670 = vst [vmem:[%s2422_s3 + $0xa0] sm:$0xff] %v1611_v23  }
 0x135   :  { %v459_v26 = vpop.f32.mrb[32].mxu0  ;;  %v2298_v58 = vpop.f32.mrb[32].mxu1 }
 0x136   :  { %v905_v27 = vadd.f32 %v904_v20, %v459_v26  ;;  %v960_v37 = vmul.f32 %v459_v26, %v459_v26  ;;  %v1757_v29 = vpop.f32.mrb[33].mxu0  ;;  %v1809_v32 = vpop.f32.mrb[33].mxu1 }
 0x137   :  { %v462_v31 = vpop.f32.mrb[34].mxu0  ;;  %v2300_v41 = vpop.f32.mrb[34].mxu1 }
 0x138   :  { %v1008_v33 = vadd.f32 %v1007_v25, %v960_v37  ;;  %v906_v30 = vadd.f32 %v905_v27, %v462_v31  ;;  %v961_v36 = vmul.f32 %v462_v31, %v462_v31  ;;  %v1551_v39 = vpack.c.bf16 %v462_v31, %v459_v26  ;;  %v1758_v40 = vpop.f32.mrb[35].mxu0  ;;  %v1810_v17 = vpop.f32.mrb[35].mxu1 }
 0x139   :  { %v1616_v43 = vpack.c.bf16 %v2300_v41, %v2298_v58 }
 0x13a   :  { %v1009_v42 = vadd.f32 %v1008_v33, %v961_v36  ;;  %1658 = vst [vmem:[%s2422_s3 + $0x40] sm:$0xff] %v1551_v39  }
 0x13b   :  { %1671 = vst [vmem:[%s2422_s3 + $0xa8] sm:$0xff] %v1616_v43  }
 0x13d   :  { %v467_v45 = vpop.f32.mrb[36].mxu0  ;;  %v2310_v50 = vpop.f32.mrb[36].mxu1 }
 0x13e   :  { %v907_v46 = vadd.f32 %v906_v30, %v467_v45  ;;  %v962_v47 = vmul.f32 %v467_v45, %v467_v45  ;;  %v1761_v48 = vpop.f32.mrb[37].mxu0  ;;  %v1813_v52 = vpop.f32.mrb[37].mxu1 }
 0x13f   :  { %v470_v51 = vpop.f32.mrb[38].mxu0  ;;  %v2312_v63 = vpop.f32.mrb[38].mxu1 }
 0x140   :  { %v1010_v53 = vadd.f32 %v1009_v42, %v962_v47  ;;  %v908_v55 = vadd.f32 %v907_v46, %v470_v51  ;;  %v963_v57 = vmul.f32 %v470_v51, %v470_v51  ;;  %v1556_v60 = vpack.c.bf16 %v470_v51, %v467_v45  ;;  %v1762_v61 = vpop.f32.mrb[39].mxu0  ;;  %v1814_v3 = vpop.f32.mrb[39].mxu1 }
 0x141   :  { %v1621_v1 = vpack.c.bf16 %v2312_v63, %v2310_v50  ;;  %v970_v3 = vmul.f32 %v2202_v19, %v2202_v19 }
 0x142   :  { %v1011_v5 = vadd.f32 %v1010_v53, %v963_v57  ;;  %1659 = vst [vmem:[%s2422_s3 + $0x48] sm:$0xff] %v1556_v60  }
 0x143   :  { %1672 = vst [vmem:[%s2422_s3 + $0xb0] sm:$0xff] %v1621_v1  }
 0x145   :  { %v475_v7 = vpop.f32.mrb[40].mxu0  ;;  %v2322_v56 = vpop.f32.mrb[40].mxu1 }
 0x146   :  { %v909_v8 = vadd.f32 %v908_v55, %v475_v7  ;;  %v964_v9 = vmul.f32 %v475_v7, %v475_v7  ;;  %v1765_v11 = vpop.f32.mrb[41].mxu0  ;;  %v1817_v15 = vpop.f32.mrb[41].mxu1 }
 0x147   :  { %v478_v13 = vpop.f32.mrb[42].mxu0  ;;  %v2324_v12 = vpop.f32.mrb[42].mxu1 }
 0x148   :  { %v1012_v16 = vadd.f32 %v1011_v5, %v964_v9  ;;  %v910_v18 = vadd.f32 %v909_v8, %v478_v13  ;;  %v965_v20 = vmul.f32 %v478_v13, %v478_v13  ;;  %v1561_v34 = vpack.c.bf16 %v478_v13, %v475_v7  ;;  %v1766_v62 = vpop.f32.mrb[43].mxu0  ;;  %v1818_v24 = vpop.f32.mrb[43].mxu1 }
 0x149   :  { %v1626_v23 = vpack.c.bf16 %v2324_v12, %v2322_v56  ;;  %v971_v8 = vmul.f32 %v2204_v28, %v2204_v28  ;;  %v972_v13 = vmul.f32 %v2214_v35, %v2214_v35 }
 0x14a   :  { %v1013_v25 = vadd.f32 %v1012_v16, %v965_v20  ;;  %1660 = vst [vmem:[%s2422_s3 + $0x50] sm:$0xff] %v1561_v34   ;;  %v974_v34 = vmul.f32 %v2226_v49, %v2226_v49 }
 0x14b   :  { %1673 = vst [vmem:[%s2422_s3 + $0xb8] sm:$0xff] %v1626_v23  }
 0x14d   :  { %v483_v26 = vpop.f32.mrb[44].mxu0  ;;  %v2334_v31 = vpop.f32.mrb[44].mxu1 }
 0x14e   :  { %v911_v27 = vadd.f32 %v910_v18, %v483_v26  ;;  %v966_v37 = vmul.f32 %v483_v26, %v483_v26  ;;  %v1769_v29 = vpop.f32.mrb[45].mxu0  ;;  %v1411_v33 = vpack.c.bf16 %v2334_v31, %v2334_v31  ;;  %v1821_v30 = vpop.f32.mrb[45].mxu1 }
 0x14f   :  { %v486_v32 = vpop.f32.mrb[46].mxu0  ;;  %v590_v42 = vpop.f32.mrb[46].mxu1 }
 0x150   :  { %v1014_v36 = vadd.f32 %v1013_v25, %v966_v37  ;;  %v912_v39 = vadd.f32 %v911_v27, %v486_v32  ;;  %v967_v40 = vmul.f32 %v486_v32, %v486_v32  ;;  %v1566_v43 = vpack.c.bf16 %v486_v32, %v483_v26  ;;  %v1770_v17 = vpop.f32.mrb[47].mxu0  ;;  %1295 = vst [vmem:[%s2422_s3 + $0xc0] sm:$0xf] %v1411_v33  ;;  %v1822_v45 = vpop.f32.mrb[47].mxu1 }
 0x151   :  { %v982_v42 = vmul.f32 %v2274_v54, %v2274_v54 }
 0x152   :  { %v1015_v46 = vadd.f32 %v1014_v36, %v967_v40  ;;  %1661 = vst [vmem:[%s2422_s3 + $0x58] sm:$0xff] %v1566_v43  }
 0x155   :  { %v491_v47 = vpop.f32.mrb[48].mxu0 }
 0x156   :  { %v913_v48 = vadd.f32 %v912_v39, %v491_v47  ;;  %v968_v51 = vmul.f32 %v491_v47, %v491_v47  ;;  %v1773_v52 = vpop.f32.mrb[49].mxu0 }
 0x157   :  { %v494_v53 = vpop.f32.mrb[50].mxu0 }
 0x158   :  { %v1016_v55 = vadd.f32 %v1015_v46, %v968_v51  ;;  %v914_v57 = vadd.f32 %v913_v48, %v494_v53  ;;  %v969_v60 = vmul.f32 %v494_v53, %v494_v53  ;;  %v1571_v61 = vpack.c.bf16 %v494_v53, %v491_v47  ;;  %v1774_v1 = vpop.f32.mrb[51].mxu0 }
 0x159   :  { %v983_v47 = vmul.f32 %v2276_v4, %v2276_v4  ;;  %v984_v51 = vmul.f32 %v2286_v14, %v2286_v14  ;;  %v985_v53 = vmul.f32 %v2288_v22, %v2288_v22 }
 0x15a   :  { %v915_v5 = vadd.f32 %v914_v57, %v2202_v19  ;;  %v1017_v7 = vadd.f32 %v1016_v55, %v969_v60  ;;  %1662 = vst [vmem:[%s2422_s3 + $0x60] sm:$0xff] %v1571_v61   ;;  %v973_v19 = vmul.f32 %v2216_v2, %v2216_v2  ;;  %v986_v57 = vmul.f32 %v2298_v58, %v2298_v58 }
 0x15b   :  { %v987_v61 = vmul.f32 %v2300_v41, %v2300_v41 }
 0x15c   :  { %v916_v9 = vadd.f32 %v915_v5, %v2204_v28  ;;  %v1018_v11 = vadd.f32 %v1017_v7, %v970_v3  ;;  %v975_v28 = vmul.f32 %v2228_v59, %v2228_v59  ;;  %v988_v3 = vmul.f32 %v2310_v50, %v2310_v50 }
 0x15d   :  { %v989_v7 = vmul.f32 %v2312_v63, %v2312_v63 }
 0x15e   :  { %v917_v15 = vadd.f32 %v916_v9, %v2214_v35  ;;  %v1019_v16 = vadd.f32 %v1018_v11, %v971_v8  ;;  %v976_v35 = vmul.f32 %v2238_v6, %v2238_v6  ;;  %v990_v9 = vmul.f32 %v2322_v56, %v2322_v56 }
 0x160   :  { %v918_v18 = vadd.f32 %v917_v15, %v2216_v2  ;;  %v1020_v20 = vadd.f32 %v1019_v16, %v972_v13  ;;  %v977_v2 = vmul.f32 %v2240_v10, %v2240_v10  ;;  %v991_v13 = vmul.f32 %v2324_v12, %v2324_v12 }
 0x162   :  { %v919_v62 = vadd.f32 %v918_v18, %v2226_v49  ;;  %v1021_v23 = vadd.f32 %v1020_v20, %v973_v19  ;;  %v978_v49 = vmul.f32 %v2250_v21, %v2250_v21 }
 0x164   :  { %v920_v24 = vadd.f32 %v919_v62, %v2228_v59  ;;  %v1022_v25 = vadd.f32 %v1021_v23, %v974_v34  ;;  %v979_v59 = vmul.f32 %v2252_v0, %v2252_v0 }
 0x166   :  { %v1023_v26 = vadd.f32 %v1022_v25, %v975_v28  ;;  %v921_v27 = vadd.f32 %v920_v24, %v2238_v6  ;;  %v980_v6 = vmul.f32 %v2262_v38, %v2262_v38 }
 0x168   :  { %v922_v37 = vadd.f32 %v921_v27, %v2240_v10  ;;  %v1024_v29 = vadd.f32 %v1023_v26, %v976_v35  ;;  %v981_v10 = vmul.f32 %v2264_v44, %v2264_v44 }
 0x16a   :  { %v923_v32 = vadd.f32 %v922_v37, %v2250_v21  ;;  %v1025_v33 = vadd.f32 %v1024_v29, %v977_v2 }
 0x16c   :  { %v924_v30 = vadd.f32 %v923_v32, %v2252_v0  ;;  %v1026_v36 = vadd.f32 %v1025_v33, %v978_v49 }
 0x16e   :  { %v925_v39 = vadd.f32 %v924_v30, %v2262_v38  ;;  %v1027_v40 = vadd.f32 %v1026_v36, %v979_v59 }
 0x170   :  { %v926_v43 = vadd.f32 %v925_v39, %v2264_v44  ;;  %v1028_v17 = vadd.f32 %v1027_v40, %v980_v6 }
 0x172   :  { %v927_v21 = vadd.f32 %v926_v43, %v2274_v54  ;;  %v1029_v45 = vadd.f32 %v1028_v17, %v981_v10 }
 0x174   :  { %v1030_v0 = vadd.f32 %v1029_v45, %v982_v42  ;;  %v928_v46 = vadd.f32 %v927_v21, %v2276_v4 }
 0x176   :  { %v1031_v38 = vadd.f32 %v1030_v0, %v983_v47  ;;  %v929_v48 = vadd.f32 %v928_v46, %v2286_v14 }
 0x178   :  { %v1032_v44 = vadd.f32 %v1031_v38, %v984_v51  ;;  %v930_v52 = vadd.f32 %v929_v48, %v2288_v22 }
 0x17a   :  { %v1033_v54 = vadd.f32 %v1032_v44, %v985_v53  ;;  %v931_v55 = vadd.f32 %v930_v52, %v2298_v58 }
 0x17c   :  { %v1034_v60 = vadd.f32 %v1033_v54, %v986_v57  ;;  %v932_v4 = vadd.f32 %v931_v55, %v2300_v41 }
 0x17e   :  { %v1035_v1 = vadd.f32 %v1034_v60, %v987_v61  ;;  %v933_v14 = vadd.f32 %v932_v4, %v2310_v50  ;;  %v992_v50 = vmul.f32 %v2334_v31, %v2334_v31 }
 0x180   :  { %v1036_v5 = vadd.f32 %v1035_v1, %v988_v3  ;;  %v934_v22 = vadd.f32 %v933_v14, %v2312_v63 }
 0x182   :  { %v1037_v8 = vadd.f32 %v1036_v5, %v989_v7  ;;  %v935_v58 = vadd.f32 %v934_v22, %v2322_v56 }
 0x184   :  { %v1038_v11 = vadd.f32 %v1037_v8, %v990_v9  ;;  %v936_v41 = vadd.f32 %v935_v58, %v2324_v12 }
 0x186   :  { %v1039_v15 = vadd.f32 %v1038_v11, %v991_v13  ;;  %v937_v16 = vadd.f32 %v936_v41, %v2334_v31 }
 0x188   :  { %v938_v19 = vrot.slane %v937_v16, 4  ;;  %v1040_v63 = vadd.f32 %v1039_v15, %v992_v50 }
 0x18a   :  { %v939_v18 = vadd.f32 %v938_v19, %v937_v16  ;;  %v1041_v20 = vrot.slane %v1040_v63, 4 }
 0x18c   :  { %v940_v34 = vrot.slane %v939_v18, 2  ;;  %v1042_v62 = vadd.f32 %v1041_v20, %v1040_v63 }
 0x18e   :  { %v941_v23 = vadd.f32 %v940_v34, %v939_v18  ;;  %v1043_v56 = vrot.slane %v1042_v62, 2 }
 0x190   :  { %v942_v28 = vrot.slane %v941_v23, 1  ;;  %v1044_v24 = vadd.f32 %v1043_v56, %v1042_v62 }
 0x192   :  { %v1045_v25 = vrot.slane %v1044_v24, 1  ;;  %v943_v35 = vadd.f32 %v942_v28, %v941_v23 }
 0x194   :  { %v1046_v12 = vadd.f32 %v1045_v25, %v1044_v24 }
 0x196   :  { %v1048_v26 = vsel %vm1047_vm1, %v943_v35, %v1046_v12 }
 0x197   :  { %1049 = vst [vmem:[%s2423_s4] sm:$0x3] %v1048_v26 }

// kernel: bottleneck_forward.8
= control target key start
LH: loop header
LB: loop body
LE: loop exit
PB: predicated region body
PF: predicated region fallthrough
CT: control target
= control target key end

     0   :  { %s4103_s15 = smov 0   ;;  %s4754_s0 = inlined_call_operand.vmem [shape: bf16[2,256,128], index: 0, kind: input, shape index: {}]   ;;  %s4755_s1 = inlined_call_operand.vmem [shape: f32[2,128], index: 1, kind: input, shape index: {}]   ;;  %s4756_s2 = inlined_call_operand.vmem [shape: bf16[9,128,128], index: 2, kind: input, shape index: {}]   ;;  %s4757_s3 = inlined_call_operand.vmem [shape: f32[1,128], index: 3, kind: input, shape index: {}]   ;;  %s4758_s4 = inlined_call_operand.vmem [shape: bf16[2,14,14,128], index: 4, kind: output, shape index: {}]  }
   0x1 LB: > { %s2842_s1 = sadd.s32 4294967295, %s4075_s15   ;;  %p2846_p0 = scmp.ge.s32.totalorder %s4075_s15, 1  ;;  %s4075_s15 = sphi %s4103_s15, %s14_s15  }
   0x2   : > { %p162_p1 = scmp.lt.s32.totalorder %s4075_s15, 3 }
   0x4   : > { %p163_p2 = pnand %p2846_p0, %p162_p1 }
   0x5   : > { %v3970_v0 = vld [vmem:[%s4756_s2 + $0x40] sm:$0xff] (!%p163_p2)   ;;  %v3972_v2 = vld [vmem:[%s4756_s2 + $0x48] sm:$0xff] (!%p163_p2)   ;;  %p188_p3 = scmp.lt.s32.totalorder (!%p163_p2), %s2842_s1, 1  ;;  %v3974_v4 = vld [vmem:[%s4756_s2 + $0x50] sm:$0xff] (!%p163_p2)   ;;  %vm360_vm0 = vsmask.f32 (!%p163_p2), 7424 }
   0x6   : > { %166 = sbr.rel (%p163_p2) target bundleno = 509 (0x1fd), region = 36  ;;  %v3971_v1 = vld [vmem:[%s4756_s2 + $0x100] sm:$0xff] (!%p163_p2)   ;;  %3324 = vmatprep.subr.bf16.mxu1 (!%p163_p2), %v3970_v0  ;;  %v3973_v3 = vld [vmem:[%s4756_s2 + $0x108] sm:$0xff] (!%p163_p2)   ;;  %v3975_v5 = vld [vmem:[%s4756_s2 + $0x110] sm:$0xff] (!%p163_p2)   ;;  %vm894_vm1 = vcmask (!%p163_p2), 1046528  }
   0x7   : > { %3500 = vmatprep.subr.bf16.mxu0 (!%p163_p2), %v3971_v1  ;;  %3325 = vmatpush3.bf16.msra.mxu1 (!%p163_p2), %v3970_v0  ;;  %v3976_v6 = vld [vmem:[%s4756_s2 + $0x58] sm:$0xff] (!%p163_p2)   ;;  %v3978_v8 = vld [vmem:[%s4756_s2 + $0x60] sm:$0xff] (!%p163_p2)   ;;  %v3980_v10 = vld [vmem:[%s4756_s2 + $0x68] sm:$0xff] (!%p163_p2)  }
   0x8   : > { %3501 = vmatpush3.bf16.msra.mxu0 (!%p163_p2), %v3971_v1  ;;  %3326 = vmatprep.subr.bf16.mxu1 (!%p163_p2), %v3972_v2  ;;  %v3977_v7 = vld [vmem:[%s4756_s2 + $0x118] sm:$0xff] (!%p163_p2)   ;;  %v3979_v9 = vld [vmem:[%s4756_s2 + $0x120] sm:$0xff] (!%p163_p2)   ;;  %v3981_v11 = vld [vmem:[%s4756_s2 + $0x128] sm:$0xff] (!%p163_p2)  }
   0x9   : > { %3502 = vmatprep.subr.bf16.mxu0 (!%p163_p2), %v3973_v3  ;;  %v3982_v14 = vld [vmem:[%s4756_s2 + $0x70] sm:$0xff] (!%p163_p2)   ;;  %v3984_v27 = vld [vmem:[%s4756_s2 + $0x78] sm:$0xff] (!%p163_p2)   ;;  %v3990_v40 = vld [vmem:[%s4756_s2 + $0x140] sm:$0xff] (!%p163_p2)  }
   0xa   : > { %v3983_v16 = vld [vmem:[%s4756_s2 + $0x130] sm:$0xff] (!%p163_p2)   ;;  %v3985_v32 = vld [vmem:[%s4756_s2 + $0x138] sm:$0xff] (!%p163_p2)   ;;  %v3993_v42 = vld [vmem:[%s4756_s2] sm:$0xff] (!%p163_p2)  }
   0xb   : > { %3327 = vmatpush3.bf16.msra.mxu1 (!%p163_p2), %v3972_v2  ;;  %v3991_v49 = vld [vmem:[%s4756_s2 + $0x148] sm:$0xff] (!%p163_p2)   ;;  %v3995_v56 = vld [vmem:[%s4756_s2 + $0x150] sm:$0xff] (!%p163_p2)   ;;  %v3996_v63 = vld [vmem:[%s4756_s2 + $0x158] sm:$0xff] (!%p163_p2)  }
   0xc   : > { %3503 = vmatpush3.bf16.msra.mxu0 (!%p163_p2), %v3973_v3  ;;  %3328 = vmatprep.subr.bf16.mxu1 (!%p163_p2), %v3974_v4  ;;  %v3997_v52 = vld [vmem:[%s4756_s2 + $0x8] sm:$0xff] (!%p163_p2)   ;;  %v4002_v60 = vld [vmem:[%s4756_s2 + $0x10] sm:$0xff] (!%p163_p2)  }
   0xd   : > { %s4760_s1 = smov (!%p188_p3, %s2842_s1), 1  ;;  %3504 = vmatprep.subr.bf16.mxu0 %v3975_v5 }
   0xe   : > { %s3097_s6 = sshll.u32 %s4760_s1, 7  ;;  %s3960_s8 = smul.u32 112, %s4760_s1 }
   0xf   : > { %3329 = vmatpush3.bf16.msra.mxu1 %v3974_v4  ;;  %s4150_s16 = scalar_lea.vmem %s4754_s0, %s3097_s6  ;;  %v4007_v4 = vld [vmem:[%s4756_s2 + $0x18] sm:$0xff]  }
  0x10   : > { %3505 = vmatpush3.bf16.msra.mxu0 %v3975_v5  ;;  %3330 = vmatprep.subr.bf16.mxu1 %v3976_v6  ;;  %v4156_v12 = vld [vmem:[%s4150_s16] sm:$0xff]   ;;  %v4159_v13 = vld [vmem:[%s4150_s16 + $0x8] sm:$0xff]   ;;  %v4165_v15 = vld [vmem:[%s4150_s16 + $0x10] sm:$0xff]   ;;  %s4690_s13 = scalar_lea.vmem %s4758_s4, %s3960_s8 }
  0x11   : > { %3506 = vmatprep.subr.bf16.mxu0 %v3977_v7  ;;  %v362_v17 = vshrl.u32 %v4156_v12, 16  ;;  %v364_v18 = vshll.u32 %v4156_v12, 16  ;;  %v369_v19 = vshll.u32 %v4159_v13, 16  ;;  %v373_v20 = vshrl.u32 %v4159_v13, 16  ;;  %v4176_v22 = vld [vmem:[%s4150_s16 + $0x18] sm:$0xff]   ;;  %v4184_v31 = vld [vmem:[%s4150_s16 + $0x20] sm:$0xff]  }
  0x12   : > { %v377_v21 = vshll.u32 %v4165_v15, 16  ;;  %v385_v26 = vshll.u32 %v4176_v22, 16  ;;  %v381_v30 = vshrl.u32 %v4165_v15, 16  ;;  %v389_v35 = vshrl.u32 %v4176_v22, 16  ;;  %v4194_v38 = vld [vmem:[%s4150_s16 + $0x28] sm:$0xff]   ;;  %v4204_v45 = vld [vmem:[%s4150_s16 + $0x30] sm:$0xff]  }
  0x13   : > { %3331 = vmatpush3.bf16.msra.mxu1 %v3976_v6  ;;  %v366_v23 = vrot.slane %v364_v18, 1  ;;  %v371_v24 = vrot.slane %v369_v19, 1  ;;  %v393_v37 = vshll.u32 %v4184_v31, 16  ;;  %v401_v44 = vshll.u32 %v4194_v38, 16  ;;  %v4224_v54 = vld [vmem:[%s4150_s16 + $0x38] sm:$0xff]   ;;  %v4231_v58 = vld [vmem:[%s4150_s16 + $0x40] sm:$0xff]  }
  0x14   : > { %3507 = vmatpush3.bf16.msra.mxu0 %v3977_v7  ;;  %3332 = vmatprep.subr.bf16.mxu1 %v3978_v8  ;;  %v379_v25 = vrot.slane %v377_v21, 1  ;;  %v387_v36 = vrot.slane %v385_v26, 1  ;;  %v397_v47 = vshrl.u32 %v4184_v31, 16  ;;  %v409_v48 = vshll.u32 %v4204_v45, 16  ;;  %v4257_v7 = vld [vmem:[%s4150_s16 + $0x48] sm:$0xff]   ;;  %v4288_v26 = vld [vmem:[%s4150_s16 + $0x58] sm:$0xff]  }
  0x15   : > { %3508 = vmatprep.subr.bf16.mxu0 %v3979_v9  ;;  %v367_v28 = vor.u32 %v366_v23, %v362_v17  ;;  %v375_v29 = vor.u32 %v373_v20, %v371_v24  ;;  %v395_v41 = vrot.slane %v393_v37, 1  ;;  %v405_v51 = vshrl.u32 %v4194_v38, 16  ;;  %v4001_v18 = vld [vmem:[%s4756_s2 + $0x168] sm:$0xff]   ;;  %v4278_v20 = vld [vmem:[%s4150_s16 + $0x50] sm:$0xff]  }
  0x16   : > { %v383_v39 = vor.u32 %v381_v30, %v379_v25  ;;  %v391_v43 = vor.u32 %v389_v35, %v387_v36  ;;  %v403_v53 = vrot.slane %v401_v44, 1  ;;  %v411_v57 = vrot.slane %v409_v48, 1  ;;  %v4014_v21 = vld [vmem:[%s4756_s2 + $0x28] sm:$0xff]   ;;  %v4018_v30 = vld [vmem:[%s4756_s2 + $0x30] sm:$0xff]   ;;  %v4009_v44 = vld [vmem:[%s4756_s2 + $0x180] sm:$0xff]  }
  0x17   : > { %3333 = vmatpush3.bf16.msra.mxu1 %v3978_v8  ;;  %v372_v33 = vsel %vm360_vm0, %v367_v28, %v371_v24  ;;  %v380_v34 = vsel %vm360_vm0, %v375_v29, %v379_v25  ;;  %v399_v55 = vor.u32 %v397_v47, %v395_v41  ;;  %v417_v61 = vshll.u32 %v4224_v54, 16  ;;  %v4000_v8 = vld [vmem:[%s4756_s2 + $0x160] sm:$0xff]  }
  0x18   : > { %3509 = vmatpush3.bf16.msra.mxu0 %v3979_v9  ;;  %3334 = vmatprep.subr.bf16.mxu1 %v3980_v10  ;;  %v4207_v46 = vsel %vm360_vm0, %v383_v39, %v387_v36  ;;  %v4215_v50 = vsel %vm360_vm0, %v391_v43, %v395_v41  ;;  %v407_v59 = vor.u32 %v405_v51, %v403_v53  ;;  %v413_v0 = vshrl.u32 %v4204_v45, 16  ;;  %v4313_v41 = vld [vmem:[%s4150_s16 + $0x60] sm:$0xff]  }
  0x19   : > { %3510 = vmatprep.subr.bf16.mxu0 %v3981_v11  ;;  %3340 = vmatprep.mubr.bf16.mxu1 %v372_v33  ;;  %v4238_v62 = vsel %vm360_vm0, %v399_v55, %v403_v53  ;;  %v421_v2 = vshrl.u32 %v4224_v54, 16  ;;  %v425_v3 = vshll.u32 %v4231_v58, 16  ;;  %v419_v5 = vrot.slane %v417_v61, 1  ;;  %v4333_v55 = vld [vmem:[%s4756_s2 + $0x80] sm:$0xff]  }
  0x1a   : > { %3516 = vmatprep.mubr.bf16.mxu0 %v380_v34  ;;  %v4245_v1 = vsel %vm360_vm0, %v407_v59, %v411_v57  ;;  %v415_v6 = vor.u32 %v413_v0, %v411_v57  ;;  %v433_v17 = vshll.u32 %v4257_v7, 16  ;;  %v896_v23 = vrot.slane %v4159_v13, 1 }
  0x1b   : > { %3335 = vmatpush3.bf16.msra.mxu1 %v3980_v10  ;;  %v423_v9 = vor.u32 %v421_v2, %v419_v5  ;;  %v427_v10 = vrot.slane %v425_v3, 1  ;;  %v898_v28 = vrot.slane %v4165_v15, 1  ;;  %v441_v29 = vshll.u32 %v4278_v20, 16  ;;  %v4012_v3 = vld [vmem:[%s4756_s2 + $0x188] sm:$0xff]  }
  0x1c   : > { %3511 = vmatpush3.bf16.msra.mxu0 %v3981_v11  ;;  %3336 = vmatprep.subr.bf16.mxu1 %v3982_v14  ;;  %v4010_v11 = vld [vmem:[%s4756_s2 + $0x20] sm:$0xff]   ;;  %v435_v25 = vrot.slane %v433_v17, 1  ;;  %v437_v33 = vshrl.u32 %v4257_v7, 16  ;;  %v445_v35 = vshrl.u32 %v4278_v20, 16  ;;  %v449_v36 = vshll.u32 %v4288_v26, 16 }
  0x1d   : > { %3512 = vmatprep.subr.bf16.mxu0 %v3983_v16  ;;  %v4274_v19 = vsel %vm360_vm0, %v423_v9, %v427_v10  ;;  %v4308_v37 = vsel %vm894_vm1, %v896_v23, %v898_v28  ;;  %v443_v39 = vrot.slane %v441_v29, 1  ;;  %v902_v51 = vrot.slane %v4184_v31, 1 }
  0x1e   : > { %v439_v43 = vor.u32 %v437_v33, %v435_v25  ;;  %v451_v48 = vrot.slane %v449_v36, 1  ;;  %v457_v53 = vshll.u32 %v4313_v41, 16  ;;  %v453_v57 = vshrl.u32 %v4288_v26, 16  ;;  %v4021_v33 = vld [vmem:[%s4756_s2 + $0x1a0] sm:$0xff]  }
  0x1f   : > { %3337 = vmatpush3.bf16.msra.mxu1 %v3982_v14  ;;  %v4266_v14 = vsel %vm360_vm0, %v415_v6, %v419_v5  ;;  %v447_v47 = vor.u32 %v445_v35, %v443_v39  ;;  %v4361_v6 = vld [vmem:[%s4150_s16 + $0x70] sm:$0xff]  }
  0x20   : > { %3513 = vmatpush3.bf16.msra.mxu0 %v3983_v16  ;;  %3338 = vmatprep.subr.bf16.mxu1 %v3984_v27  ;;  %v429_v16 = vshrl.u32 %v4231_v58, 16  ;;  %v455_v5 = vor.u32 %v453_v57, %v451_v48  ;;  %v4030_v57 = vld [vmem:[%s4756_s2 + $0x1c0] sm:$0xff]  }
  0x21   : > { %3514 = vmatprep.subr.bf16.mxu0 %v3985_v32  ;;  %v4346_v61 = vsel %vm360_vm0, %v447_v47, %v451_v48 }
  0x22   : > { %v431_v24 = vor.u32 %v429_v16, %v427_v10  ;;  %v906_v16 = vrot.slane %v4204_v45, 1 }
  0x23   : > { %3339 = vmatpush3.bf16.msra.mxu1 %v3984_v27  ;;  %v4005_v27 = vld [vmem:[%s4756_s2 + $0x170] sm:$0xff]  }
  0x24   : > { %3515 = vmatpush3.bf16.msra.mxu0 %v3985_v32  ;;  %3368 = vmatprep.subr.bf16.mxu1 %v3993_v42  ;;  %v4006_v32 = vld [vmem:[%s4756_s2 + $0x178] sm:$0xff]  }
  0x25   : > { %3544 = vmatprep.subr.bf16.mxu0 %v3990_v40 }
  0x26   : > { %3341 = vmatmul.mubr.bf16.vlgmr.msra.gmra.mrb[0].mxu1 %v380_v34  ;;  %v4303_v34 = vsel %vm360_vm0, %v431_v24, %v435_v25 }
  0x27   : > { %3517 = vmatmul.mubr.bf16.vlgmr.msra.gmra.mrb[0].mxu0 %v4207_v46  ;;  %3344 = vmatprep.mubr.bf16.mxu1 %v4207_v46 }
  0x28   : > { %3545 = vmatpush3.bf16.msra.mxu0 %v3990_v40  ;;  %3520 = vmatprep.mubr.bf16.mxu0 %v4215_v50  ;;  %v900_v40 = vrot.slane %v4176_v22, 1 }
  0x29   : > { %3546 = vmatprep.subr.bf16.mxu0 %v3991_v49  ;;  %3369 = vmatpush3.bf16.msra.mxu1 %v3993_v42  ;;  %v4019_v42 = vld [vmem:[%s4756_s2 + $0x38] sm:$0xff]  }
  0x2a   : > { %3370 = vmatprep.subr.bf16.mxu1 %v3997_v52  ;;  %v4351_v2 = vsel %vm894_vm1, %v900_v40, %v902_v51 }
  0x2c   : > { %3547 = vmatpush3.bf16.msra.mxu0 %v3991_v49  ;;  %v4325_v49 = vld [vmem:[%s4150_s16 + $0x68] sm:$0xff]  }
  0x2d   : > { %3548 = vmatprep.subr.bf16.mxu0 %v3995_v56  ;;  %3371 = vmatpush3.bf16.msra.mxu1 %v3997_v52  ;;  %v895_v52 = vrot.slane %v4156_v12, 1  ;;  %v465_v0 = vshll.u32 %v4325_v49, 16 }
  0x2e   : > { %3345 = vmatmul.mubr.bf16.gmra.mrb[4].mxu1 %v4215_v50  ;;  %3372 = vmatprep.subr.bf16.mxu1 %v4002_v60 }
  0x2f   : > { %3521 = vmatmul.mubr.bf16.gmra.mrb[4].mxu0 %v4238_v62  ;;  %3348 = vmatprep.mubr.bf16.mxu1 %v4238_v62  ;;  %v4340_v59 = vsel %vm894_vm1, %v895_v52, %v896_v23  ;;  %v467_v10 = vrot.slane %v465_v0, 1  ;;  %v916_v52 = vrot.slane %v4288_v26, 1  ;;  %v4029_v0 = vld [vmem:[%s4756_s2 + $0x98] sm:$0xff]  }
  0x30   : > { %3549 = vmatpush3.bf16.msra.mxu0 %v3995_v56  ;;  %3524 = vmatprep.mubr.bf16.mxu0 %v4245_v1  ;;  %v4336_v56 = vsel %vm360_vm0, %v439_v43, %v443_v39  ;;  %v914_v43 = vrot.slane %v4278_v20, 1 }
  0x31   : > { %3550 = vmatprep.subr.bf16.mxu0 %v3996_v63  ;;  %3373 = vmatpush3.bf16.msra.mxu1 %v4002_v60  ;;  %v4343_v60 = vsel %vm894_vm1, %v898_v28, %v900_v40  ;;  %v4023_v40 = vld [vmem:[%s4756_s2 + $0x1a8] sm:$0xff]  }
  0x32   : > { %3374 = vmatprep.subr.bf16.mxu1 %v4007_v4 }
  0x34   : > { %3551 = vmatpush3.bf16.msra.mxu0 %v3996_v63  ;;  %v461_v63 = vshrl.u32 %v4313_v41, 16 }
  0x35   : > { %3552 = vmatprep.subr.bf16.mxu0 %v4000_v8  ;;  %3375 = vmatpush3.bf16.msra.mxu1 %v4007_v4  ;;  %v459_v4 = vrot.slane %v457_v53, 1  ;;  %v918_v53 = vrot.slane %v4313_v41, 1 }
  0x36   : > { %3349 = vmatmul.mubr.bf16.gmra.mrb[8].mxu1 %v4245_v1  ;;  %3376 = vmatprep.subr.bf16.mxu1 %v4010_v11 }
  0x37   : > { %3525 = vmatmul.mubr.bf16.gmra.mrb[8].mxu0 %v4266_v14  ;;  %3352 = vmatprep.mubr.bf16.mxu1 %v4266_v14  ;;  %v463_v9 = vor.u32 %v461_v63, %v459_v4  ;;  %v4370_v17 = vsel %vm360_vm0, %v455_v5, %v459_v4  ;;  %v4445_v63 = vsel %vm894_vm1, %v914_v43, %v916_v52  ;;  %v922_v4 = vrot.slane %v4361_v6, 1  ;;  %v4031_v5 = vld [vmem:[%s4756_s2 + $0xa0] sm:$0xff]  }
  0x38   : > { %3553 = vmatpush3.bf16.msra.mxu0 %v4000_v8  ;;  %3528 = vmatprep.mubr.bf16.mxu0 %v4274_v19  ;;  %v904_v8 = vrot.slane %v4194_v38, 1 }
  0x39   : > { %3554 = vmatprep.subr.bf16.mxu0 %v4001_v18  ;;  %3377 = vmatpush3.bf16.msra.mxu1 %v4010_v11  ;;  %v4015_v11 = vld [vmem:[%s4756_s2 + $0x190] sm:$0xff]   ;;  %v4378_v24 = vsel %vm360_vm0, %v463_v9, %v467_v10  ;;  %v4466_v9 = vld [vmem:[%s4150_s16 + $0x78] sm:$0xff]  }
  0x3a   : > { %3378 = vmatprep.subr.bf16.mxu1 %v4014_v21  ;;  %v4375_v23 = vsel %vm894_vm1, %v902_v51, %v904_v8  ;;  %v4381_v25 = vsel %vm894_vm1, %v904_v8, %v906_v16  ;;  %v4028_v51 = vld [vmem:[%s4756_s2 + $0x1b8] sm:$0xff]  }
  0x3c   : > { %3555 = vmatpush3.bf16.msra.mxu0 %v4001_v18  ;;  %v469_v18 = vshrl.u32 %v4325_v49, 16 }
  0x3d   : > { %3556 = vmatprep.subr.bf16.mxu0 %v4005_v27  ;;  %3379 = vmatpush3.bf16.msra.mxu1 %v4014_v21  ;;  %v473_v21 = vshll.u32 %v4361_v6, 16 }
  0x3e   : > { %3353 = vmatmul.mubr.bf16.gmra.mrb[12].mxu1 %v4274_v19  ;;  %3380 = vmatprep.subr.bf16.mxu1 %v4018_v30  ;;  %v471_v28 = vor.u32 %v469_v18, %v467_v10  ;;  %v4035_v18 = vld [vmem:[%s4756_s2 + $0xb0] sm:$0xff]  }
  0x3f   : > { %3529 = vmatmul.mubr.bf16.gmra.mrb[12].mxu0 %v4303_v34  ;;  %3356 = vmatprep.mubr.bf16.mxu1 %v4303_v34  ;;  %v4389_v29 = vrot.slane %v473_v21, 1 }
  0x40   : > { %3557 = vmatpush3.bf16.msra.mxu0 %v4005_v27  ;;  %3560 = vmatprep.mubr.bf16.mxu0 %v4308_v37  ;;  %v4020_v27 = vld [vmem:[%s4756_s2 + $0x198] sm:$0xff]  }
  0x41   : > { %3558 = vmatprep.subr.bf16.mxu0 %v4006_v32  ;;  %3381 = vmatpush3.bf16.msra.mxu1 %v4018_v30  ;;  %v908_v30 = vrot.slane %v4224_v54, 1  ;;  %v4399_v35 = vsel %vm360_vm0, %v471_v28, %v4389_v29  ;;  %v4039_v28 = vld [vmem:[%s4756_s2 + $0xc0] sm:$0xff]  }
  0x42   : > { %3382 = vmatprep.subr.bf16.mxu1 %v4019_v42 }
  0x43   : > { %v4402_v36 = vsel %vm894_vm1, %v906_v16, %v908_v30  ;;  %v1661_v16 = vrot.slane %v4466_v9, 1 }
  0x44   : > { %3559 = vmatpush3.bf16.msra.mxu0 %v4006_v32  ;;  %v910_v32 = vrot.slane %v4231_v58, 1 }
  0x45   : > { %3588 = vmatprep.subr.bf16.mxu0 %v4009_v44  ;;  %3383 = vmatpush3.bf16.msra.mxu1 %v4019_v42  ;;  %v912_v42 = vrot.slane %v4257_v7, 1  ;;  %v4485_v21 = vsel %vm894_vm1, %v922_v4, %v1661_v16 }
  0x46   : > { %3357 = vmatmul.mubr.bf16.gmra.mrb[16].mxu1 %v4336_v56  ;;  %3412 = vmatprep.subr.bf16.mxu1 %v4333_v55  ;;  %v4405_v39 = vsel %vm894_vm1, %v908_v30, %v910_v32  ;;  %v4032_v30 = vld [vmem:[%s4756_s2 + $0x1c8] sm:$0xff]  }
  0x47   : > { %3561 = vmatmul.mubr.bf16.vlgmr.msra.gmra.mrb[0].mxu0 %v4343_v60  ;;  %3360 = vmatprep.mubr.bf16.mxu1 %v4346_v61  ;;  %v4420_v47 = vsel %vm894_vm1, %v910_v32, %v912_v42  ;;  %v4423_v48 = vsel %vm894_vm1, %v912_v42, %v914_v43  ;;  %v4037_v32 = vld [vmem:[%s4756_s2 + $0x1d8] sm:$0xff]   ;;  %v4041_v42 = vld [vmem:[%s4756_s2 + $0xc8] sm:$0xff]   ;;  %v4043_v43 = vld [vmem:[%s4756_s2 + $0xd0] sm:$0xff]  }
  0x48   : > { %3589 = vmatpush3.bf16.msra.mxu0 %v4009_v44  ;;  %3564 = vmatprep.mubr.bf16.mxu0 %v4351_v2  ;;  %v4025_v44 = vld [vmem:[%s4756_s2 + $0x1b0] sm:$0xff]  }
  0x49   : > { %3590 = vmatprep.subr.bf16.mxu0 %v4012_v3 }
  0x4c   : > { %3591 = vmatpush3.bf16.msra.mxu0 %v4012_v3  ;;  %v920_v3 = vrot.slane %v4325_v49, 1 }
  0x4d   : > { %3592 = vmatprep.subr.bf16.mxu0 %v4015_v11 }
  0x4e   : > { %3361 = vmatmul.mubr.bf16.gmra.mrb[20].mxu1 %v4370_v17  ;;  %v4463_v8 = vsel %vm894_vm1, %v918_v53, %v920_v3  ;;  %v4469_v10 = vsel %vm894_vm1, %v920_v3, %v922_v4  ;;  %v4060_v3 = vld [vmem:[%s4150_s16 + $0x10] sm:$0xff]   ;;  %v4057_v4 = vld [vmem:[%s4756_s2 + $0x238] sm:$0xff]  }
  0x4f   : > { %3565 = vmatmul.mubr.bf16.gmra.mrb[4].mxu0 %v4375_v23  ;;  %3364 = vmatprep.mubr.bf16.mxu1 %v4378_v24 }
  0x50   : > { %3568 = vmatprep.mubr.bf16.mxu0 %v4381_v25  ;;  %3593 = vmatpush3.bf16.msra.mxu0 %v4015_v11  ;;  %v4033_v11 = vld [vmem:[%s4756_s2 + $0xa8] sm:$0xff]  }
  0x51   : > { %3594 = vmatprep.subr.bf16.mxu0 %v4020_v27 }
  0x54   : > { %3595 = vmatpush3.bf16.msra.mxu0 %v4020_v27  ;;  %v4036_v27 = vld [vmem:[%s4756_s2 + $0xb8] sm:$0xff]  }
  0x55   : > { %3596 = vmatprep.subr.bf16.mxu0 %v4021_v33 }
  0x56   : > { %3365 = vmatmul.mubr.bf16.gmra.mrb[24].mxu1 %v4399_v35 }
  0x57   : > { %3569 = vmatmul.mubr.bf16.gmra.mrb[8].mxu0 %v4402_v36  ;;  %3384 = vmatprep.mubr.bf16.mxu1 %v4156_v12  ;;  %v4024_v12 = vld [vmem:[%s4756_s2 + $0x88] sm:$0xff]  }
  0x58   : > { %3572 = vmatprep.mubr.bf16.mxu0 %v4405_v39  ;;  %3597 = vmatpush3.bf16.msra.mxu0 %v4021_v33  ;;  %v4040_v33 = vld [vmem:[%s4756_s2 + $0x1e8] sm:$0xff]  }
  0x59   : > { %3598 = vmatprep.subr.bf16.mxu0 %v4023_v40 }
  0x5c   : > { %3599 = vmatpush3.bf16.msra.mxu0 %v4023_v40  ;;  %v4042_v40 = vld [vmem:[%s4756_s2 + $0x1f0] sm:$0xff]  }
  0x5d   : > { %3600 = vmatprep.subr.bf16.mxu0 %v4025_v44 }
  0x5e   : > { %3385 = vmatmul.mubr.bf16.vlgmr.msra.gmra.mrb[0].mxu1 %v4159_v13  ;;  %v4026_v13 = vld [vmem:[%s4756_s2 + $0x90] sm:$0xff]  }
  0x5f   : > { %3573 = vmatmul.mubr.bf16.gmra.mrb[12].mxu0 %v4420_v47  ;;  %3388 = vmatprep.mubr.bf16.mxu1 %v4165_v15 }
  0x60   : > { %3576 = vmatprep.mubr.bf16.mxu0 %v4423_v48  ;;  %3413 = vmatpush3.bf16.msra.mxu1 %v4333_v55  ;;  %v4448_v55 = vsel %vm894_vm1, %v916_v52, %v918_v53  ;;  %v4051_v52 = vld [vmem:[%s4756_s2 + $0xf0] sm:$0xff]   ;;  %v4052_v53 = vld [vmem:[%s4756_s2 + $0xf8] sm:$0xff]  }
  0x61   : > { %3414 = vmatprep.subr.bf16.mxu1 %v4024_v12  ;;  %3601 = vmatpush3.bf16.msra.mxu0 %v4025_v44  ;;  %v4045_v44 = vld [vmem:[%s4756_s2 + $0xd8] sm:$0xff]  }
  0x62   : > { %3602 = vmatprep.subr.bf16.mxu0 %v4028_v51 }
  0x64   : > { %3415 = vmatpush3.bf16.msra.mxu1 %v4024_v12  ;;  %v4047_v12 = vld [vmem:[%s4756_s2 + $0xe0] sm:$0xff]  }
  0x65   : > { %3416 = vmatprep.subr.bf16.mxu1 %v4026_v13  ;;  %3603 = vmatpush3.bf16.msra.mxu0 %v4028_v51  ;;  %v4049_v51 = vld [vmem:[%s4756_s2 + $0xe8] sm:$0xff]  }
  0x66   : > { %3389 = vmatmul.mubr.bf16.gmra.mrb[4].mxu1 %v4176_v22  ;;  %3632 = vmatprep.subr.bf16.mxu0 %v4030_v57 }
  0x67   : > { %3577 = vmatmul.mubr.bf16.gmra.mrb[16].mxu0 %v4445_v63  ;;  %3392 = vmatprep.mubr.bf16.mxu1 %v4184_v31 }
  0x68   : > { %3580 = vmatprep.mubr.bf16.mxu0 %v4448_v55  ;;  %3417 = vmatpush3.bf16.msra.mxu1 %v4026_v13  ;;  %v4048_v13 = vld [vmem:[%s4756_s2 + $0x208] sm:$0xff]  }
  0x69   : > { %3418 = vmatprep.subr.bf16.mxu1 %v4029_v0 }
  0x6c   : > { %3419 = vmatpush3.bf16.msra.mxu1 %v4029_v0  ;;  %v4053_v0 = vld [vmem:[%s4756_s2 + $0x218] sm:$0xff]  }
  0x6d   : > { %3420 = vmatprep.subr.bf16.mxu1 %v4031_v5 }
  0x6e   : > { %3393 = vmatmul.mubr.bf16.gmra.mrb[8].mxu1 %v4194_v38 }
  0x6f   : > { %3581 = vmatmul.mubr.bf16.gmra.mrb[20].mxu0 %v4463_v8  ;;  %3396 = vmatprep.mubr.bf16.mxu1 %v4204_v45 }
  0x70   : > { %3584 = vmatprep.mubr.bf16.mxu0 %v4469_v10  ;;  %3421 = vmatpush3.bf16.msra.mxu1 %v4031_v5  ;;  %v4063_v5 = vld [vmem:[%s4756_s2 + $0x110] sm:$0xff]  }
  0x71   : > { %3422 = vmatprep.subr.bf16.mxu1 %v4033_v11 }
  0x74   : > { %3423 = vmatpush3.bf16.msra.mxu1 %v4033_v11  ;;  %v1414_v11 = vshrl.u32 %v4361_v6, 16 }
  0x75   : > { %3424 = vmatprep.subr.bf16.mxu1 %v4035_v18 }
  0x76   : > { %3397 = vmatmul.mubr.bf16.gmra.mrb[12].mxu1 %v4224_v54 }
  0x77   : > { %3585 = vmatmul.mubr.bf16.gmra.mrb[24].mxu0 %v4485_v21  ;;  %3400 = vmatprep.mubr.bf16.mxu1 %v4231_v58 }
  0x78   : > { %3604 = vmatprep.mubr.bf16.mxu0 %v4165_v15  ;;  %3425 = vmatpush3.bf16.msra.mxu1 %v4035_v18  ;;  %v4034_v15 = vld [vmem:[%s4756_s2 + $0x1d0] sm:$0xff]   ;;  %v1418_v18 = vshll.u32 %v4466_v9, 16 }
  0x79   : > { %3426 = vmatprep.subr.bf16.mxu1 %v4036_v27 }
  0x7c   : > { %3427 = vmatpush3.bf16.msra.mxu1 %v4036_v27  ;;  %v1416_v27 = vor.u32 %v1414_v11, %v4389_v29 }
  0x7d   : > { %3456 = vmatprep.subr.bf16.mxu1 %v4039_v28 }
  0x7e   : > { %3401 = vmatmul.mubr.bf16.gmra.mrb[16].mxu1 %v4257_v7 }
  0x7f   : > { %3605 = vmatmul.mubr.bf16.vlgmr.msra.gmra.mrb[0].mxu0 %v4176_v22  ;;  %3404 = vmatprep.mubr.bf16.mxu1 %v4278_v20  ;;  %v4038_v22 = vld [vmem:[%s4756_s2 + $0x1e0] sm:$0xff]  }
  0x80   : > { %3633 = vmatpush3.bf16.msra.mxu0 %v4030_v57  ;;  %3608 = vmatprep.mubr.bf16.mxu0 %v4184_v31  ;;  %v4058_v57 = vld [vmem:[%s4756_s2 + $0x100] sm:$0xff]  }
  0x81   : > { %3634 = vmatprep.subr.bf16.mxu0 %v4032_v30 }
  0x84   : > { %3635 = vmatpush3.bf16.msra.mxu0 %v4032_v30  ;;  %v4064_v30 = vld [vmem:[%s4756_s2 + $0x118] sm:$0xff]  }
  0x85   : > { %3636 = vmatprep.subr.bf16.mxu0 %v4034_v15 }
  0x86   : > { %3405 = vmatmul.mubr.bf16.gmra.mrb[20].mxu1 %v4288_v26 }
  0x87   : > { %3609 = vmatmul.mubr.bf16.gmra.mrb[4].mxu0 %v4194_v38  ;;  %3408 = vmatprep.mubr.bf16.mxu1 %v4313_v41 }
  0x88   : > { %3612 = vmatprep.mubr.bf16.mxu0 %v4204_v45  ;;  %3637 = vmatpush3.bf16.msra.mxu0 %v4034_v15  ;;  %v2140_v15 = vshrl.u32 %v4466_v9, 16 }
  0x89   : > { %3638 = vmatprep.subr.bf16.mxu0 %v4037_v32 }
  0x8c   : > { %3639 = vmatpush3.bf16.msra.mxu0 %v4037_v32  ;;  %v4077_v32 = vmov 0  }
  0x8d   : > { %3640 = vmatprep.subr.bf16.mxu0 %v4038_v22 }
  0x8e   : > { %3409 = vmatmul.mubr.bf16.gmra.mrb[24].mxu1 %v4325_v49 }
  0x8f   : > { %3613 = vmatmul.mubr.bf16.gmra.mrb[8].mxu0 %v4224_v54  ;;  %3428 = vmatprep.mubr.bf16.mxu1 %v4340_v59  ;;  %v4044_v59 = vld [vmem:[%s4756_s2 + $0x1f8] sm:$0xff]  }
  0x90   : > { %3616 = vmatprep.mubr.bf16.mxu0 %v4231_v58  ;;  %3641 = vmatpush3.bf16.msra.mxu0 %v4038_v22  ;;  %v2146_v22 = vrot.slane %v4077_v32, 1 }
  0x91   : > { %3642 = vmatprep.subr.bf16.mxu0 %v4040_v33 }
  0x94   : > { %3643 = vmatpush3.bf16.msra.mxu0 %v4040_v33  ;;  %v4066_v33 = vld [vmem:[%s4756_s2 + $0x128] sm:$0xff]  }
  0x95   : > { %3644 = vmatprep.subr.bf16.mxu0 %v4042_v40 }
  0x96   : > { %3429 = vmatmul.mubr.bf16.vlgmr.msra.gmra.mrb[0].mxu1 %v4308_v37  ;;  %v4046_v37 = vld [vmem:[%s4756_s2 + $0x200] sm:$0xff]  }
  0x97   : > { %3617 = vmatmul.mubr.bf16.gmra.mrb[12].mxu0 %v4257_v7  ;;  %3432 = vmatprep.mubr.bf16.mxu1 %v4343_v60 }
  0x98   : > { %3620 = vmatprep.mubr.bf16.mxu0 %v4278_v20  ;;  %3457 = vmatpush3.bf16.msra.mxu1 %v4039_v28  ;;  %v1420_v28 = vrot.slane %v1418_v18, 1 }
  0x99   : > { %3458 = vmatprep.subr.bf16.mxu1 %v4041_v42  ;;  %3645 = vmatpush3.bf16.msra.mxu0 %v4042_v40 }
  0x9a   : > { %3646 = vmatprep.subr.bf16.mxu0 %v4044_v59  ;;  %v2142_v29 = vor.u32 %v2140_v15, %v1420_v28 }
  0x9c   : > { %3459 = vmatpush3.bf16.msra.mxu1 %v4041_v42  ;;  %v2147_v40 = vsel %vm360_vm0, %v2142_v29, %v2146_v22 }
  0x9d   : > { %3460 = vmatprep.subr.bf16.mxu1 %v4043_v43  ;;  %3647 = vmatpush3.bf16.msra.mxu0 %v4044_v59 }
  0x9e   : > { %3433 = vmatmul.mubr.bf16.gmra.mrb[4].mxu1 %v4351_v2  ;;  %3676 = vmatprep.subr.bf16.mxu0 %v4046_v37 }
  0x9f   : > { %3621 = vmatmul.mubr.bf16.gmra.mrb[16].mxu0 %v4288_v26  ;;  %3436 = vmatprep.mubr.bf16.mxu1 %v4375_v23 }
  0xa0   : > { %3624 = vmatprep.mubr.bf16.mxu0 %v4313_v41  ;;  %3461 = vmatpush3.bf16.msra.mxu1 %v4043_v43 }
  0xa1   : > { %3462 = vmatprep.subr.bf16.mxu1 %v4045_v44 }
  0xa4   : > { %3463 = vmatpush3.bf16.msra.mxu1 %v4045_v44 }
  0xa5   : > { %3464 = vmatprep.subr.bf16.mxu1 %v4047_v12 }
  0xa6   : > { %3437 = vmatmul.mubr.bf16.gmra.mrb[8].mxu1 %v4381_v25 }
  0xa7   : > { %3625 = vmatmul.mubr.bf16.gmra.mrb[20].mxu0 %v4325_v49  ;;  %3440 = vmatprep.mubr.bf16.mxu1 %v4402_v36 }
  0xa8   : > { %3628 = vmatprep.mubr.bf16.mxu0 %v4361_v6  ;;  %3465 = vmatpush3.bf16.msra.mxu1 %v4047_v12 }
  0xa9   : > { %3466 = vmatprep.subr.bf16.mxu1 %v4049_v51 }
  0xac   : > { %3467 = vmatpush3.bf16.msra.mxu1 %v4049_v51 }
  0xad   : > { %3468 = vmatprep.subr.bf16.mxu1 %v4051_v52 }
  0xae   : > { %3441 = vmatmul.mubr.bf16.gmra.mrb[12].mxu1 %v4405_v39 }
  0xaf   : > { %3629 = vmatmul.mubr.bf16.gmra.mrb[24].mxu0 %v4466_v9  ;;  %3444 = vmatprep.mubr.bf16.mxu1 %v4420_v47 }
  0xb0   : > { %3648 = vmatprep.mubr.bf16.mxu0 %v4207_v46  ;;  %3469 = vmatpush3.bf16.msra.mxu1 %v4051_v52  ;;  %v4050_v46 = vld [vmem:[%s4756_s2 + $0x210] sm:$0xff]  }
  0xb1   : > { %3470 = vmatprep.subr.bf16.mxu1 %v4052_v53 }
  0xb4   : > { %3471 = vmatpush3.bf16.msra.mxu1 %v4052_v53 }
  0xb5   : > { %3720 = vmatprep.subr.bf16.mxu1 %v4058_v57 }
  0xb6   : > { %3445 = vmatmul.mubr.bf16.gmra.mrb[16].mxu1 %v4423_v48 }
  0xb7   : > { %3649 = vmatmul.mubr.bf16.vlgmr.msra.gmra.mrb[0].mxu0 %v4215_v50  ;;  %3448 = vmatprep.mubr.bf16.mxu1 %v4445_v63  ;;  %v4054_v50 = vld [vmem:[%s4756_s2 + $0x220] sm:$0xff]  }
  0xb8   : > { %3677 = vmatpush3.bf16.msra.mxu0 %v4046_v37  ;;  %3652 = vmatprep.mubr.bf16.mxu0 %v4238_v62  ;;  %v4055_v62 = vld [vmem:[%s4756_s2 + $0x228] sm:$0xff]  }
  0xb9   : > { %3678 = vmatprep.subr.bf16.mxu0 %v4048_v13 }
  0xbc   : > { %3679 = vmatpush3.bf16.msra.mxu0 %v4048_v13 }
  0xbd   : > { %3680 = vmatprep.subr.bf16.mxu0 %v4050_v46 }
  0xbe   : > { %3449 = vmatmul.mubr.bf16.gmra.mrb[20].mxu1 %v4448_v55 }
  0xbf   : > { %3653 = vmatmul.mubr.bf16.gmra.mrb[4].mxu0 %v4245_v1  ;;  %3452 = vmatprep.mubr.bf16.mxu1 %v4463_v8  ;;  %v4059_v1 = vld [vmem:[%s4150_s16 + $0x8] sm:$0xff]  }
  0xc0   : > { %3656 = vmatprep.mubr.bf16.mxu0 %v4266_v14  ;;  %3681 = vmatpush3.bf16.msra.mxu0 %v4050_v46  ;;  %v4056_v14 = vld [vmem:[%s4756_s2 + $0x230] sm:$0xff]  }
  0xc1   : > { %3682 = vmatprep.subr.bf16.mxu0 %v4053_v0 }
  0xc4   : > { %3683 = vmatpush3.bf16.msra.mxu0 %v4053_v0 }
  0xc5   : > { %3684 = vmatprep.subr.bf16.mxu0 %v4054_v50 }
  0xc6   : > { %3453 = vmatmul.mubr.bf16.gmra.mrb[24].mxu1 %v4469_v10 }
  0xc7   : > { %3657 = vmatmul.mubr.bf16.gmra.mrb[8].mxu0 %v4274_v19  ;;  %3472 = vmatprep.mubr.bf16.mxu1 %v4059_v1  ;;  %v4061_v19 = vld [vmem:[%s4150_s16 + $0x18] sm:$0xff]  }
  0xc8   : > { %3660 = vmatprep.mubr.bf16.mxu0 %v4303_v34  ;;  %3685 = vmatpush3.bf16.msra.mxu0 %v4054_v50  ;;  %v4062_v34 = vld [vmem:[%s4756_s2 + $0x108] sm:$0xff]  }
  0xc9   : > { %3686 = vmatprep.subr.bf16.mxu0 %v4055_v62 }
  0xcc   : > { %3687 = vmatpush3.bf16.msra.mxu0 %v4055_v62 }
  0xcd   : > { %3688 = vmatprep.subr.bf16.mxu0 %v4056_v14 }
  0xce   : > { %3473 = vmatmul.mubr.bf16.vlgmr.msra.gmra.mrb[0].mxu1 %v4060_v3 }
  0xcf   : > { %3661 = vmatmul.mubr.bf16.gmra.mrb[12].mxu0 %v4336_v56  ;;  %3476 = vmatprep.mubr.bf16.mxu1 %v4061_v19 }
  0xd0   : > { %3664 = vmatprep.mubr.bf16.mxu0 %v4346_v61  ;;  %3728 = vmatpush3.bf16.msra.mxu1 %v4058_v57 }
  0xd1   : > { %3721 = vmatprep.subr.bf16.mxu1 %v4062_v34  ;;  %3689 = vmatpush3.bf16.msra.mxu0 %v4056_v14 }
  0xd2   : > { %3690 = vmatprep.subr.bf16.mxu0 %v4057_v4 }
  0xd4   : > { %3729 = vmatpush3.bf16.msra.mxu1 %v4062_v34 }
  0xd5   : > { %3722 = vmatprep.subr.bf16.mxu1 %v4063_v5  ;;  %3691 = vmatpush3.bf16.msra.mxu0 %v4057_v4 }
  0xd6   : > { %3477 = vmatmul.mubr.bf16.gmra.mrb[4].mxu1 %v4184_v31  ;;  %v1421_v31 = vsel %vm360_vm0, %v1416_v27, %v1420_v28 }
  0xd7   : > { %3665 = vmatmul.mubr.bf16.gmra.mrb[16].mxu0 %v4370_v17  ;;  %3480 = vmatprep.mubr.bf16.mxu1 %v4194_v38  ;;  %v4065_v38 = vld [vmem:[%s4756_s2 + $0x120] sm:$0xff]  }
  0xd8   : > { %3668 = vmatprep.mubr.bf16.mxu0 %v4378_v24  ;;  %3730 = vmatpush3.bf16.msra.mxu1 %v4063_v5 }
  0xd9   : > { %3723 = vmatprep.subr.bf16.mxu1 %v4064_v30 }
  0xdc   : > { %3731 = vmatpush3.bf16.msra.mxu1 %v4064_v30 }
  0xdd   : > { %3724 = vmatprep.subr.bf16.mxu1 %v4065_v38 }
  0xde   : > { %3481 = vmatmul.mubr.bf16.gmra.mrb[8].mxu1 %v4204_v45  ;;  %v4067_v45 = vld [vmem:[%s4756_s2 + $0x130] sm:$0xff]  }
  0xdf   : > { %3669 = vmatmul.mubr.bf16.gmra.mrb[20].mxu0 %v4399_v35  ;;  %3484 = vmatprep.mubr.bf16.mxu1 %v4224_v54  ;;  %v4068_v54 = vld [vmem:[%s4756_s2 + $0x138] sm:$0xff]  }
  0xe0   : > { %3672 = vmatprep.mubr.bf16.mxu0 %v1421_v31  ;;  %3732 = vmatpush3.bf16.msra.mxu1 %v4065_v38 }
  0xe1   : > { %3725 = vmatprep.subr.bf16.mxu1 %v4066_v33 }
  0xe4   : > { %3733 = vmatpush3.bf16.msra.mxu1 %v4066_v33 }
  0xe5   : > { %3726 = vmatprep.subr.bf16.mxu1 %v4067_v45 }
  0xe6   : > { %3485 = vmatmul.mubr.bf16.gmra.mrb[12].mxu1 %v4231_v58  ;;  %v2389_v58 = vsel %vm894_vm1, %v1661_v16, %v2146_v22 }
  0xe7   : > { %3673 = vmatmul.mubr.bf16.gmra.mrb[24].mxu0 %v2147_v40  ;;  %3488 = vmatprep.mubr.bf16.mxu1 %v4257_v7 }
  0xe8   : > { %3692 = vmatprep.mubr.bf16.mxu0 %v4343_v60  ;;  %3734 = vmatpush3.bf16.msra.mxu1 %v4067_v45 }
  0xe9   : > { %3727 = vmatprep.subr.bf16.mxu1 %v4068_v54 }
  0xec   : > { %3735 = vmatpush3.bf16.msra.mxu1 %v4068_v54 }
  0xee   : > { %3489 = vmatmul.mubr.bf16.gmra.mrb[16].mxu1 %v4278_v20 }
  0xef   : > { %3693 = vmatmul.mubr.bf16.vlgmr.msra.gmra.mrb[0].mxu0 %v4351_v2  ;;  %3492 = vmatprep.mubr.bf16.mxu1 %v4288_v26 }
  0xf0   : > { %3696 = vmatprep.mubr.bf16.mxu0 %v4375_v23 }
  0xf6   : > { %3493 = vmatmul.mubr.bf16.gmra.mrb[20].mxu1 %v4313_v41 }
  0xf7   : > { %3697 = vmatmul.mubr.bf16.gmra.mrb[4].mxu0 %v4381_v25  ;;  %3496 = vmatprep.mubr.bf16.mxu1 %v4325_v49 }
  0xf8   : > { %3700 = vmatprep.mubr.bf16.mxu0 %v4402_v36 }
  0xfe   : > { %3497 = vmatmul.mubr.bf16.gmra.mrb[24].mxu1 %v4361_v6 }
  0xff   : > { %3701 = vmatmul.mubr.bf16.gmra.mrb[8].mxu0 %v4405_v39  ;;  %3532 = vmatprep.mubr.bf16.mxu1 %v4336_v56 }
 0x100   : > { %3704 = vmatprep.mubr.bf16.mxu0 %v4420_v47  ;;  %v4684_v47 = vld [vmem:[%s4757_s3] ss:$0 sm:$0xff] }
 0x106   : > { %3533 = vmatmul.mubr.bf16.vlgmr.msra.gmra.mrb[16].mxu1 %v4346_v61 }
 0x107   : > { %3705 = vmatmul.mubr.bf16.gmra.mrb[12].mxu0 %v4423_v48  ;;  %3536 = vmatprep.mubr.bf16.mxu1 %v4370_v17 }
 0x108   : > { %3708 = vmatprep.mubr.bf16.mxu0 %v4445_v63 }
 0x10e   : > { %3537 = vmatmul.mubr.bf16.gmra.mrb[20].mxu1 %v4378_v24 }
 0x10f   : > { %3709 = vmatmul.mubr.bf16.gmra.mrb[16].mxu0 %v4448_v55  ;;  %3540 = vmatprep.mubr.bf16.mxu1 %v4399_v35 }
 0x110   : > { %3712 = vmatprep.mubr.bf16.mxu0 %v4463_v8 }
 0x116   : > { %3541 = vmatmul.mubr.bf16.gmra.mrb[24].mxu1 %v1421_v31 }
 0x117   : > { %3713 = vmatmul.mubr.bf16.gmra.mrb[20].mxu0 %v4469_v10 }
 0x118   : > { %3716 = vmatprep.mubr.bf16.mxu0 %v4485_v21 }
 0x11f   : > { %3717 = vmatmul.mubr.bf16.gmra.mrb[24].mxu0 %v2389_v58 }
 0x1a1   : > { %v3474_v7 = vpop.f32.mrb[0].mxu1 }
 0x1a2   : > { %v1258_v20 = vpop.f32.mrb[1].mxu1 }
 0x1a3   : > { %v3475_v26 = vpop.f32.mrb[2].mxu1 }
 0x1a4   : > { %v1261_v41 = vpop.f32.mrb[3].mxu1 }
 0x1a9   : > { %v3478_v49 = vpop.f32.mrb[4].mxu1 }
 0x1aa   : > { %v1274_v56 = vpop.f32.mrb[5].mxu1 }
 0x1ab   : > { %v3479_v60 = vpop.f32.mrb[6].mxu1 }
 0x1ac   : > { %v1277_v61 = vpop.f32.mrb[7].mxu1 }
 0x1b1   : > { %v3482_v2 = vpop.f32.mrb[8].mxu1 }
 0x1b2   : > { %v1290_v6 = vpop.f32.mrb[9].mxu1 }
 0x1b3   : > { %v3483_v17 = vpop.f32.mrb[10].mxu1 }
 0x1b4   : > { %v1293_v23 = vpop.f32.mrb[11].mxu1 }
 0x1b9   : > { %v4672_v24 = vpop.f32.mrb[12].mxu1 }
 0x1ba   : > { %v4674_v25 = vpop.f32.mrb[13].mxu1 }
 0x1bb   : > { %v4676_v35 = vpop.f32.mrb[14].mxu1 }
 0x1bc   : > { %v4678_v36 = vpop.f32.mrb[15].mxu1 }
 0x1c2   : > { %v3694_v39 = vpop.f32.mrb[0].mxu0 }
 0x1c3   : > { %v3736_v48 = vadd.f32 %v3694_v39, %v3474_v7  ;;  %v2473_v63 = vpop.f32.mrb[1].mxu0 }
 0x1c4   : > { %v3737_v55 = vadd.f32 %v2473_v63, %v1258_v20  ;;  %v3695_v8 = vpop.f32.mrb[2].mxu0 }
 0x1c5   : > { %v2621_v9 = vadd.f32 %v3736_v48, %v4684_v47  ;;  %v3738_v10 = vadd.f32 %v3695_v8, %v3475_v26  ;;  %v2476_v16 = vpop.f32.mrb[3].mxu0 }
 0x1c6   : > { %v2619_v21 = vadd.f32 %v3737_v55, %v4684_v47  ;;  %v3739_v42 = vadd.f32 %v2476_v16, %v1261_v41 }
 0x1c7   : > { %v3100_v59 = vpack.c.bf16 %v2621_v9, %v2621_v9  ;;  %v2622_v43 = vadd.f32 %v3738_v10, %v4684_v47 }
 0x1c8   : > { %v3098_v37 = vpack.c.bf16 %v2619_v21, %v2619_v21  ;;  %v2620_v44 = vadd.f32 %v3739_v42, %v4684_v47 }
 0x1c9   : > { %2761 = vst [vmem:[%s4690_s13 + $0x8] sm:$0xf] %v3100_v59  ;;  %v3101_v12 = vpack.c.bf16 %v2622_v43, %v2622_v43 }
 0x1ca   : > { %2759 = vst [vmem:[%s4690_s13] sm:$0xf] %v3098_v37  ;;  %v3099_v51 = vpack.c.bf16 %v2620_v44, %v2620_v44  ;;  %v3698_v52 = vpop.f32.mrb[4].mxu0 }
 0x1cb   : > { %2762 = vst [vmem:[%s4690_s13 + $0xc] sm:$0x7] %v3101_v12  ;;  %v3740_v53 = vadd.f32 %v3698_v52, %v3478_v49  ;;  %v2489_v13 = vpop.f32.mrb[5].mxu0 }
 0x1cc   : > { %2760 = vst [vmem:[%s4690_s13 + $0x4] sm:$0x7] %v3099_v51  ;;  %v3741_v57 = vadd.f32 %v2489_v13, %v1274_v56  ;;  %v3699_v46 = vpop.f32.mrb[6].mxu0 }
 0x1cd   : > { %v2625_v0 = vadd.f32 %v3740_v53, %v4684_v47  ;;  %v3742_v50 = vadd.f32 %v3699_v46, %v3479_v60  ;;  %v2492_v62 = vpop.f32.mrb[7].mxu0 }
 0x1ce   : > { %v2623_v1 = vadd.f32 %v3741_v57, %v4684_v47  ;;  %v3743_v14 = vadd.f32 %v2492_v62, %v1277_v61 }
 0x1cf   : > { %v3104_v3 = vpack.c.bf16 %v2625_v0, %v2625_v0  ;;  %v2626_v4 = vadd.f32 %v3742_v50, %v4684_v47 }
 0x1d0   : > { %v3102_v19 = vpack.c.bf16 %v2623_v1, %v2623_v1  ;;  %v2624_v34 = vadd.f32 %v3743_v14, %v4684_v47 }
 0x1d1   : > { %2765 = vst [vmem:[%s4690_s13 + $0x18] sm:$0xf] %v3104_v3  ;;  %v3105_v5 = vpack.c.bf16 %v2626_v4, %v2626_v4 }
 0x1d2   : > { %2763 = vst [vmem:[%s4690_s13 + $0x10] sm:$0xf] %v3102_v19  ;;  %v3103_v11 = vpack.c.bf16 %v2624_v34, %v2624_v34  ;;  %v3702_v18 = vpop.f32.mrb[8].mxu0 }
 0x1d3   : > { %2766 = vst [vmem:[%s4690_s13 + $0x1c] sm:$0x7] %v3105_v5  ;;  %v3744_v27 = vadd.f32 %v3702_v18, %v3482_v2  ;;  %v2505_v28 = vpop.f32.mrb[9].mxu0 }
 0x1d4   : > { %2764 = vst [vmem:[%s4690_s13 + $0x14] sm:$0x7] %v3103_v11  ;;  %v3745_v30 = vadd.f32 %v2505_v28, %v1290_v6  ;;  %v3703_v15 = vpop.f32.mrb[10].mxu0 }
 0x1d5   : > { %v2629_v31 = vadd.f32 %v3744_v27, %v4684_v47  ;;  %v3746_v38 = vadd.f32 %v3703_v15, %v3483_v17  ;;  %v2508_v29 = vpop.f32.mrb[11].mxu0 }
 0x1d6   : > { %v2627_v32 = vadd.f32 %v3745_v30, %v4684_v47  ;;  %v3747_v22 = vadd.f32 %v2508_v29, %v1293_v23 }
 0x1d7   : > { %v3108_v33 = vpack.c.bf16 %v2629_v31, %v2629_v31  ;;  %v2630_v40 = vadd.f32 %v3746_v38, %v4684_v47 }
 0x1d8   : > { %v3106_v45 = vpack.c.bf16 %v2627_v32, %v2627_v32  ;;  %v2628_v54 = vadd.f32 %v3747_v22, %v4684_v47 }
 0x1d9   : > { %2769 = vst [vmem:[%s4690_s13 + $0x28] sm:$0xf] %v3108_v33  ;;  %v3109_v58 = vpack.c.bf16 %v2630_v40, %v2630_v40  ;;  %v3534_v7 = vpop.f32.mrb[16].mxu1 }
 0x1da   : > { %2767 = vst [vmem:[%s4690_s13 + $0x20] sm:$0xf] %v3106_v45  ;;  %v3107_v20 = vpack.c.bf16 %v2628_v54, %v2628_v54  ;;  %v3706_v26 = vpop.f32.mrb[12].mxu0  ;;  %v1569_v41 = vpop.f32.mrb[17].mxu1 }
 0x1db   : > { %2770 = vst [vmem:[%s4690_s13 + $0x2c] sm:$0x7] %v3109_v58  ;;  %v3748_v49 = vadd.f32 %v3706_v26, %v4672_v24  ;;  %v2521_v56 = vpop.f32.mrb[13].mxu0  ;;  %v3535_v60 = vpop.f32.mrb[18].mxu1 }
 0x1dc   : > { %2768 = vst [vmem:[%s4690_s13 + $0x24] sm:$0x7] %v3107_v20  ;;  %v3749_v61 = vadd.f32 %v2521_v56, %v4674_v25  ;;  %v3707_v2 = vpop.f32.mrb[14].mxu0  ;;  %v1572_v6 = vpop.f32.mrb[19].mxu1 }
 0x1dd   : > { %v2633_v17 = vadd.f32 %v3748_v49, %v4684_v47  ;;  %v3750_v23 = vadd.f32 %v3707_v2, %v4676_v35  ;;  %v2524_v39 = vpop.f32.mrb[15].mxu0 }
 0x1de   : > { %v2631_v48 = vadd.f32 %v3749_v61, %v4684_v47  ;;  %v3751_v63 = vadd.f32 %v2524_v39, %v4678_v36 }
 0x1df   : > { %v3112_v24 = vpack.c.bf16 %v2633_v17, %v2633_v17  ;;  %v2634_v55 = vadd.f32 %v3750_v23, %v4684_v47 }
 0x1e0   : > { %v3110_v8 = vpack.c.bf16 %v2631_v48, %v2631_v48  ;;  %v2632_v9 = vadd.f32 %v3751_v63, %v4684_v47 }
 0x1e1   : > { %2773 = vst [vmem:[%s4690_s13 + $0x38] sm:$0xf] %v3112_v24  ;;  %v3113_v25 = vpack.c.bf16 %v2634_v55, %v2634_v55  ;;  %v3538_v10 = vpop.f32.mrb[20].mxu1 }
 0x1e2   : > { %2771 = vst [vmem:[%s4690_s13 + $0x30] sm:$0xf] %v3110_v8  ;;  %v3111_v16 = vpack.c.bf16 %v2632_v9, %v2632_v9  ;;  %v3710_v21 = vpop.f32.mrb[16].mxu0  ;;  %v1585_v42 = vpop.f32.mrb[21].mxu1 }
 0x1e3   : > { %2774 = vst [vmem:[%s4690_s13 + $0x3c] sm:$0x7] %v3113_v25  ;;  %v3752_v35 = vadd.f32 %v3710_v21, %v3534_v7  ;;  %v2537_v59 = vpop.f32.mrb[17].mxu0  ;;  %v3539_v43 = vpop.f32.mrb[22].mxu1 }
 0x1e4   : > { %2772 = vst [vmem:[%s4690_s13 + $0x34] sm:$0x7] %v3111_v16  ;;  %v3753_v36 = vadd.f32 %v2537_v59, %v1569_v41  ;;  %v3711_v37 = vpop.f32.mrb[18].mxu0  ;;  %v1588_v44 = vpop.f32.mrb[23].mxu1 }
 0x1e5   : > { %v2637_v12 = vadd.f32 %v3752_v35, %v4684_v47  ;;  %v3754_v51 = vadd.f32 %v3711_v37, %v3535_v60  ;;  %v2540_v52 = vpop.f32.mrb[19].mxu0 }
 0x1e6   : > { %v2635_v53 = vadd.f32 %v3753_v36, %v4684_v47  ;;  %v3755_v13 = vadd.f32 %v2540_v52, %v1572_v6 }
 0x1e7   : > { %v3116_v57 = vpack.c.bf16 %v2637_v12, %v2637_v12  ;;  %v2638_v46 = vadd.f32 %v3754_v51, %v4684_v47 }
 0x1e8   : > { %v3114_v0 = vpack.c.bf16 %v2635_v53, %v2635_v53  ;;  %v2636_v50 = vadd.f32 %v3755_v13, %v4684_v47 }
 0x1e9   : > { %2777 = vst [vmem:[%s4690_s13 + $0x48] sm:$0xf] %v3116_v57  ;;  %v3117_v62 = vpack.c.bf16 %v2638_v46, %v2638_v46  ;;  %v3542_v1 = vpop.f32.mrb[24].mxu1 }
 0x1ea   : > { %2775 = vst [vmem:[%s4690_s13 + $0x40] sm:$0xf] %v3114_v0  ;;  %v3115_v14 = vpack.c.bf16 %v2636_v50, %v2636_v50  ;;  %v3714_v3 = vpop.f32.mrb[20].mxu0  ;;  %v1601_v4 = vpop.f32.mrb[25].mxu1 }
 0x1eb   : > { %2778 = vst [vmem:[%s4690_s13 + $0x4c] sm:$0x7] %v3117_v62  ;;  %v3756_v19 = vadd.f32 %v3714_v3, %v3538_v10  ;;  %v2553_v34 = vpop.f32.mrb[21].mxu0  ;;  %v3543_v5 = vpop.f32.mrb[26].mxu1 }
 0x1ec   : > { %2776 = vst [vmem:[%s4690_s13 + $0x44] sm:$0x7] %v3115_v14  ;;  %v3757_v11 = vadd.f32 %v2553_v34, %v1585_v42  ;;  %v3715_v18 = vpop.f32.mrb[22].mxu0  ;;  %v1604_v27 = vpop.f32.mrb[27].mxu1 }
 0x1ed   : > { %v2641_v28 = vadd.f32 %v3756_v19, %v4684_v47  ;;  %v3758_v30 = vadd.f32 %v3715_v18, %v3539_v43  ;;  %v2556_v15 = vpop.f32.mrb[23].mxu0 }
 0x1ee   : > { %v2639_v31 = vadd.f32 %v3757_v11, %v4684_v47  ;;  %v3759_v38 = vadd.f32 %v2556_v15, %v1588_v44 }
 0x1ef   : > { %v3120_v29 = vpack.c.bf16 %v2641_v28, %v2641_v28  ;;  %v2642_v32 = vadd.f32 %v3758_v30, %v4684_v47 }
 0x1f0   : > { %v3118_v22 = vpack.c.bf16 %v2639_v31, %v2639_v31  ;;  %v2640_v33 = vadd.f32 %v3759_v38, %v4684_v47 }
 0x1f1   : > { %2781 = vst [vmem:[%s4690_s13 + $0x58] sm:$0xf] %v3120_v29  ;;  %v3121_v40 = vpack.c.bf16 %v2642_v32, %v2642_v32 }
 0x1f2   : > { %2779 = vst [vmem:[%s4690_s13 + $0x50] sm:$0xf] %v3118_v22  ;;  %v3119_v45 = vpack.c.bf16 %v2640_v33, %v2640_v33  ;;  %v3718_v54 = vpop.f32.mrb[24].mxu0 }
 0x1f3   : > { %2782 = vst [vmem:[%s4690_s13 + $0x5c] sm:$0x7] %v3121_v40  ;;  %v3760_v58 = vadd.f32 %v3718_v54, %v3542_v1  ;;  %v2569_v7 = vpop.f32.mrb[25].mxu0 }
 0x1f4   : > { %2780 = vst [vmem:[%s4690_s13 + $0x54] sm:$0x7] %v3119_v45  ;;  %v3761_v20 = vadd.f32 %v2569_v7, %v1601_v4  ;;  %v3719_v26 = vpop.f32.mrb[26].mxu0 }
 0x1f5   : > { %v2645_v41 = vadd.f32 %v3760_v58, %v4684_v47  ;;  %v3762_v49 = vadd.f32 %v3719_v26, %v3543_v5  ;;  %v2572_v56 = vpop.f32.mrb[27].mxu0 }
 0x1f6   : > { %v2643_v60 = vadd.f32 %v3761_v20, %v4684_v47  ;;  %v3763_v61 = vadd.f32 %v2572_v56, %v1604_v27 }
 0x1f7   : > { %v3124_v2 = vpack.c.bf16 %v2645_v41, %v2645_v41  ;;  %v2646_v6 = vadd.f32 %v3762_v49, %v4684_v47 }
 0x1f8   : > { %v3122_v17 = vpack.c.bf16 %v2643_v60, %v2643_v60  ;;  %v2644_v23 = vadd.f32 %v3763_v61, %v4684_v47 }
 0x1f9   : > { %2785 = vst [vmem:[%s4690_s13 + $0x68] sm:$0xf] %v3124_v2  ;;  %v3125_v39 = vpack.c.bf16 %v2646_v6, %v2646_v6 }
 0x1fa   : > { %2783 = vst [vmem:[%s4690_s13 + $0x60] sm:$0xf] %v3122_v17  ;;  %v3123_v48 = vpack.c.bf16 %v2644_v23, %v2644_v23 }
 0x1fb   : > { %2786 = vst [vmem:[%s4690_s13 + $0x6c] sm:$0x7] %v3125_v39 }
 0x1fc   : > { %2784 = vst [vmem:[%s4690_s13 + $0x64] sm:$0x7] %v3123_v48 }
 0x1fd PF: > { %s14_s15 = sadd.s32 1, %s4075_s15  }
 0x1fe   : > { %p11_p4 = scmp.ge.s32.totalorder %s14_s15, 4  }
 0x200   :  { %13 = sbr.rel (!%p11_p4) target bundleno = 1 (0x1), region = 74 }

</bundles_post_ra>
